<compile_context>
chip_gen: v5e
topology: v5e:2x2
jax: 0.10.0
libtpu: 0.0.40
codegen_flags: <defaults>
</compile_context>

<pallas_src>
import functools

import jax
import jax.numpy as jnp
from jax.experimental import pallas as pl
from jax.experimental.pallas import tpu as pltpu


# ----------------------------- in-kernel helpers -----------------------------

def _erf(x):
    # Abramowitz & Stegun 7.1.26 (abs err ~1.5e-7); only Mosaic-friendly ops.
    a1, a2, a3, a4, a5 = 0.254829592, -0.284496736, 1.421413741, -1.453152027, 1.061405429
    p = 0.3275911
    s = jnp.where(x >= 0.0, 1.0, -1.0)
    ax = jnp.abs(x)
    t = 1.0 / (1.0 + p * ax)
    poly = ((((a5 * t + a4) * t + a3) * t + a2) * t + a1) * t
    return s * (1.0 - poly * jnp.exp(-ax * ax))


def _gelu(x):
    # nn.GELU() exact (erf) form used by timm ViT blocks.
    return 0.5 * x * (1.0 + _erf(x * 0.7071067811865476))


def _layernorm(x, g, b, eps=1e-6):
    mu = jnp.mean(x, axis=-1, keepdims=True)
    var = jnp.mean((x - mu) * (x - mu), axis=-1, keepdims=True)
    return (x - mu) * jax.lax.rsqrt(var + eps) * g + b


def _lin(a, w, b):
    # y = a @ w.T + b   (PyTorch F.linear convention, w: (out, in))
    y = jax.lax.dot_general(a, w, (((1,), (1,)), ((), ())),
                            preferred_element_type=jnp.float32)
    return y + b


# ------------------------- fused backbone Pallas kernel ------------------------

def fused_backbone_kernel(plen_ref,
                          patches_ref, cls_pos_ref, patch_w_ref,
                          pk_ref, pv_ref,
                          ln1g_ref, ln1b_ref, qkvw_ref, qkvb_ref,
                          projw_ref, projb_ref, ln2g_ref, ln2b_ref,
                          fc1w_ref, fc1b_ref, fc2w_ref, fc2b_ref,
                          normg_ref, normb_ref, ekey_ref, fcw_ref, fcb_ref,
                          tok_ref, cos_ref, logit_ref,
                          x_sc,
                          *, num_heads, n_real):
    d = pl.program_id(1)

    # ---- layer-0 prologue: patch embedding (+cls/pos, bias folded into cls_pos) ----
    @pl.when(d == 0)
    def _():
        emb = jax.lax.dot_general(patches_ref[0], patch_w_ref[...],
                                  (((1,), (1,)), ((), ())),
                                  preferred_element_type=jnp.float32)
        x_sc[...] = emb + cls_pos_ref[...]

    x = x_sc[...]                                   # (Npad, C) carry
    npad, C = x.shape
    hd = C // num_heads
    scale = 1.0 / float(hd) ** 0.5

    # ---- attention (with optional prefix keys/values) ----
    xq = _layernorm(x, ln1g_ref[0], ln1b_ref[0])
    pk = pk_ref[...][0, 0]                          # (Npad, C), prefix rows pre-placed
    pv = pv_ref[...][0, 0]

    # splice prefix rows into K/V inputs with a single row-range select.
    # rows >= n_real are either prefix tokens or zero padding; unused/extra key
    # rows are masked out of the softmax below, so the select can be static.
    row_ids = jax.lax.broadcasted_iota(jnp.int32, (npad, C), 0)
    is_pref = row_ids >= n_real
    xk_in = jnp.where(is_pref, pk, xq)
    xv_in = jnp.where(is_pref, pv, xq)

    W = qkvw_ref[0]                                 # (3C, C)
    bqkv = qkvb_ref[0]                              # (1, 3C)
    q = _lin(xq, W[:C], bqkv[:, :C])
    k = _lin(xk_in, W[C:2 * C], bqkv[:, C:2 * C])
    v = _lin(xv_in, W[2 * C:], bqkv[:, 2 * C:])

    # additive key mask computed once per layer (runtime prefix length)
    nk_valid = n_real + plen_ref[d]
    key_ids = jax.lax.broadcasted_iota(jnp.int32, (npad, npad), 1)
    key_bias = jnp.where(key_ids < nk_valid, 0.0, -1e30)

    projw = projw_ref[0]                            # (C, C)
    attn = jnp.zeros((npad, C), jnp.float32)
    for h in range(num_heads):
        sl = slice(h * hd, (h + 1) * hd)
        s = jax.lax.dot_general(q[:, sl], k[:, sl], (((1,), (1,)), ((), ())),
                                preferred_element_type=jnp.float32) * scale
        s = s + key_bias
        m = jnp.max(s, axis=-1, keepdims=True)
        e = jnp.exp(s - m)
        p = e * pl.reciprocal(jnp.sum(e, axis=-1, keepdims=True), approx=True)
        oh = jnp.dot(p, v[:, sl], preferred_element_type=jnp.float32)    # (Npad, hd)
        # fold head h straight into the output projection (no head concat)
        attn = attn + jax.lax.dot_general(oh, projw[:, sl], (((1,), (1,)), ((), ())),
                                          preferred_element_type=jnp.float32)
    attn = attn + projb_ref[0]

    x1 = x + attn                                   # ls1 / drop_path1 = identity
    y = _layernorm(x1, ln2g_ref[0], ln2b_ref[0])
    h1 = _gelu(_lin(y, fc1w_ref[0], fc1b_ref[0]))
    h2 = _lin(h1, fc2w_ref[0], fc2b_ref[0])
    x_sc[...] = x1 + h2                             # ls2 / drop_path2 = identity

    # ---- last-layer epilogue: final LN + cosine prompt-key scores + head ----
    @pl.when(d == pl.num_programs(1) - 1)
    def _():
        xn = _layernorm(x_sc[...], normg_ref[...], normb_ref[...])
        tok_ref[0] = xn
        feat = xn[0:1, :]                           # cls token (1, C)
        fn = feat / jnp.maximum(
            jnp.sqrt(jnp.sum(feat * feat, axis=-1, keepdims=True)), 1e-12)
        ek = ekey_ref[...]
        kn = ek / jnp.maximum(
            jnp.sqrt(jnp.sum(ek * ek, axis=-1, keepdims=True)), 1e-12)
        cos_ref[0] = jax.lax.dot_general(fn, kn, (((1,), (1,)), ((), ())),
                                         preferred_element_type=jnp.float32)
        logit_ref[0] = _lin(feat, fcw_ref[...], fcb_ref[...])


def fused_backbone(plen, patches_pad, cls_pos, prefix_k, prefix_v, P, cfg):
    B, Npad, PK = patches_pad.shape
    C = cfg['dim']
    depth = cfg['depth']
    Hm = cfg['mlp_hidden']
    Pp = P['e_key'].shape[0]
    NC = P['fc_w'].shape[0]
    n_real = cfg['num_patches'] + 1

    kern = functools.partial(fused_backbone_kernel,
                             num_heads=cfg['heads'], n_real=n_real)

    def fullspec(shape):
        nd = len(shape)
        return pl.BlockSpec(shape, lambda b, d, s, _n=nd: (0,) * _n)

    def layerspec(shape):
        nd = len(shape)
        return pl.BlockSpec((1,) + tuple(shape[1:]),
                            lambda b, d, s, _n=nd: (d,) + (0,) * (_n - 1))

    grid_spec = pltpu.PrefetchScalarGridSpec(
        num_scalar_prefetch=1,
        grid=(B, depth),
        in_specs=[
            pl.BlockSpec((1, Npad, PK), lambda b, d, s: (b, 0, 0)),       # padded patches
            fullspec((Npad, C)),                                          # cls/pos (+patch bias)
            fullspec((C, PK)),                                            # patch-embed weight
            pl.BlockSpec((1, 1, Npad, C), lambda b, d, s: (b, d, 0, 0)),  # prefix K (padded rows)
            pl.BlockSpec((1, 1, Npad, C), lambda b, d, s: (b, d, 0, 0)),  # prefix V (padded rows)
            layerspec((depth, 1, C)), layerspec((depth, 1, C)),           # ln1 g/b
            layerspec((depth, 3 * C, C)), layerspec((depth, 1, 3 * C)),   # qkv
            layerspec((depth, C, C)), layerspec((depth, 1, C)),           # proj
            layerspec((depth, 1, C)), layerspec((depth, 1, C)),           # ln2 g/b
            layerspec((depth, Hm, C)), layerspec((depth, 1, Hm)),         # mlp fc1
            layerspec((depth, C, Hm)), layerspec((depth, 1, C)),          # mlp fc2
            fullspec((1, C)), fullspec((1, C)),                           # final norm g/b
            fullspec((Pp, C)),                                            # e-prompt keys
            fullspec((NC, C)), fullspec((1, NC)),                         # classifier head
        ],
        out_specs=(
            pl.BlockSpec((1, Npad, C), lambda b, d, s: (b, 0, 0)),        # normalized tokens
            pl.BlockSpec((1, 1, Pp), lambda b, d, s: (b, 0, 0)),          # cosine scores
            pl.BlockSpec((1, 1, NC), lambda b, d, s: (b, 0, 0)),          # logits
        ),
        scratch_shapes=[pltpu.VMEM((Npad, C), jnp.float32)],
    )
    tok, cos, logits = pl.pallas_call(
        kern,
        out_shape=(jax.ShapeDtypeStruct((B, Npad, C), jnp.float32),
                   jax.ShapeDtypeStruct((B, 1, Pp), jnp.float32),
                   jax.ShapeDtypeStruct((B, 1, NC), jnp.float32)),
        grid_spec=grid_spec,
        compiler_params=pltpu.CompilerParams(
            dimension_semantics=("parallel", "arbitrary")),
    )(plen, patches_pad, cls_pos, P['patch_w'], prefix_k, prefix_v,
      P['ln1_g'], P['ln1_b'], P['qkv_w'], P['qkv_b'],
      P['proj_w'], P['proj_b'], P['ln2_g'], P['ln2_b'],
      P['fc1_w'], P['fc1_b'], P['fc2_w'], P['fc2_b'],
      P['norm_g'], P['norm_b'], P['e_key'], P['fc_w'], P['fc_b'])
    return tok, cos[:, 0], logits[:, 0]


# ------------------------------ plain-JAX glue --------------------------------

def im2col(x, patch):
    # NCHW -> (B, num_patches, 3*p*p); patch vector ordered (c, ph, pw) like Conv2d.
    B, C, H, W = x.shape
    gh, gw = H // patch, W // patch
    x = x.reshape(B, C, gh, patch, gw, patch)
    x = x.transpose(0, 2, 4, 1, 3, 5)
    return x.reshape(B, gh * gw, C * patch * patch)


def build_patch_tokens(img, cfg):
    patches = im2col(img, cfg['patch'])                     # (B, np, 3*p*p)
    B, np_, PK = patches.shape
    out = jnp.zeros((B, cfg['n_pad'], PK), jnp.float32)     # row 0 = cls slot, tail = pad
    return out.at[:, 1:1 + np_, :].set(patches)


def build_cls_pos(P, cfg):
    D = cfg['dim']
    nt = cfg['num_patches'] + 1
    cls_row = P['cls_token'].reshape(1, D) + P['pos_embed'][0, 0:1]
    patch_rows = P['pos_embed'][0, 1:nt] + P['patch_b']     # patch-embed bias folded in
    out = jnp.zeros((cfg['n_pad'], D), jnp.float32)
    out = out.at[0:1].set(cls_row)
    return out.at[1:nt].set(patch_rows)


def build_prefix(e_prompt_sel, P, cfg, B):
    # Per-layer prefix K / V tokens pre-placed at rows [n_real, n_real+L) of an
    # Npad-row slab, plus a per-layer prefix length (scalar-prefetched).
    D = cfg['dim']
    L = cfg['prefix_len']
    Npad = cfg['n_pad']
    n_real = cfg['num_patches'] + 1
    ks, vs, plen = [], [], []
    for idx in range(cfg['depth']):
        if idx in cfg['g_pos']:
            pr = P['g_prompt'][idx]                          # (2L, D); idx-indexing as in DP_Net
            k_rows = jnp.broadcast_to(pr[None, 0:L], (B, L, D))
            v_rows = jnp.broadcast_to(pr[None, L:2 * L], (B, L, D))
            plen.append(cfg['g_length'])
        elif idx in cfg['e_pos']:
            pr = e_prompt_sel[:, cfg['e_pos'].index(idx)]    # (B, 2L, D)
            k_rows = pr[:, 0:L]
            v_rows = pr[:, L:2 * L]
            plen.append(cfg['e_length'])
        else:
            k_rows = jnp.zeros((B, L, D), jnp.float32)
            v_rows = k_rows
            plen.append(0)
        kp = jnp.zeros((B, Npad, D), jnp.float32).at[:, n_real:n_real + L].set(k_rows)
        vp = jnp.zeros((B, Npad, D), jnp.float32).at[:, n_real:n_real + L].set(v_rows)
        ks.append(kp)
        vs.append(vp)
    pk = jnp.stack(ks, axis=1)                               # (B, depth, Npad, D)
    pv = jnp.stack(vs, axis=1)
    return pk, pv, jnp.asarray(plen, jnp.int32)


def dp_net_forward(img, P, cfg):
    # DP_Net.forward(img) with targets=None, task_id=None (eval mode).
    B = img.shape[0]
    depth, D, Npad = cfg['depth'], cfg['dim'], cfg['n_pad']

    patches_pad = build_patch_tokens(img, cfg)               # reused by both passes
    cls_pos = build_cls_pos(P, cfg)

    # pass 1: prompt-free backbone (extract_vector) -> cosine vs e_key -> selection
    zpref = jnp.zeros((B, depth, Npad, D), jnp.float32)
    zlen = jnp.zeros((depth,), jnp.int32)
    _, cos, _ = fused_backbone(zlen, patches_pad, cls_pos, zpref, zpref, P, cfg)
    sel = jnp.argmax(cos, axis=1)                            # torch.topk(k=1) (glue)
    e_sel = P['e_prompt'][sel]                               # (B, len(e_pos), 2L, D) gather (glue)

    # pass 2: prompted backbone (prefix_forward) + classifier head
    pk, pv, plen = build_prefix(e_sel, P, cfg, B)
    tok, _, logits = fused_backbone(plen, patches_pad, cls_pos, pk, pv, P, cfg)

    n_real = cfg['num_patches'] + 1
    return {'logits': logits,
            'features': tok[:, 0],
            'img_features': tok[:, 1:n_real]}


# ------------------------------ parameter setup --------------------------------

def init_params(key, cfg):
    D, patch, depth, Hm = cfg['dim'], cfg['patch'], cfg['depth'], cfg['mlp_hidden']
    nt = cfg['num_patches'] + 1
    ks = jax.random.split(key, 8 + 4 * depth)

    def nrm(k, shape, s=0.02):
        return (s * jax.random.normal(k, shape)).astype(jnp.float32)

    def uni(k, shape):
        return jax.random.uniform(k, shape, minval=-1.0, maxval=1.0).astype(jnp.float32)

    qkv_w = jnp.stack([nrm(ks[8 + 4 * d + 0], (3 * D, D)) for d in range(depth)])
    proj_w = jnp.stack([nrm(ks[8 + 4 * d + 1], (D, D)) for d in range(depth)])
    fc1_w = jnp.stack([nrm(ks[8 + 4 * d + 2], (Hm, D)) for d in range(depth)])
    fc2_w = jnp.stack([nrm(ks[8 + 4 * d + 3], (D, Hm)) for d in range(depth)])

    return {
        'patch_w': nrm(ks[0], (D, 3 * patch * patch)),
        'patch_b': jnp.zeros((1, D), jnp.float32),
        'cls_token': nrm(ks[1], (1, 1, D)),
        'pos_embed': nrm(ks[2], (1, nt, D)),
        # per-layer weights stacked on a leading depth axis (fused-kernel layout)
        'ln1_g': jnp.ones((depth, 1, D), jnp.float32),
        'ln1_b': jnp.zeros((depth, 1, D), jnp.float32),
        'qkv_w': qkv_w, 'qkv_b': jnp.zeros((depth, 1, 3 * D), jnp.float32),
        'proj_w': proj_w, 'proj_b': jnp.zeros((depth, 1, D), jnp.float32),
        'ln2_g': jnp.ones((depth, 1, D), jnp.float32),
        'ln2_b': jnp.zeros((depth, 1, D), jnp.float32),
        'fc1_w': fc1_w, 'fc1_b': jnp.zeros((depth, 1, Hm), jnp.float32),
        'fc2_w': fc2_w, 'fc2_b': jnp.zeros((depth, 1, D), jnp.float32),
        'norm_g': jnp.ones((1, D), jnp.float32),
        'norm_b': jnp.zeros((1, D), jnp.float32),
        'fc_w': nrm(ks[3], (cfg['num_classes'], D)),
        'fc_b': jnp.zeros((1, cfg['num_classes']), jnp.float32),
        # prompt parameters: uniform(-1, 1) as in DP_Net.__init__
        'g_prompt': uni(ks[4], (len(cfg['g_pos']), 2 * cfg['g_length'], D)),
        'e_prompt': uni(ks[5], (cfg['e_pool'], len(cfg['e_pos']), 2 * cfg['e_length'], D)),
        'e_key': uni(ks[6], (cfg['e_pool'], D)),
    }


# ----------------------------------- main --------------------------------------

if __name__ == "__main__":
    cfg = {
        'dim': 32, 'heads': 4, 'depth': 4, 'patch': 4, 'img': 16,
        'num_patches': (16 // 4) ** 2, 'n_pad': 24, 'mlp_hidden': 4 * 32,
        'g_pos': [0, 1], 'g_length': 2,
        'e_pos': [2], 'e_length': 2, 'e_pool': 3,
        'prefix_len': 2, 'num_classes': 10,
    }
    assert cfg['g_length'] == cfg['prefix_len'] == cfg['e_length']
    assert cfg['n_pad'] >= cfg['num_patches'] + 1 + cfg['prefix_len']

    key = jax.random.PRNGKey(0)
    k_img, k_par = jax.random.split(key)
    img = jax.random.normal(k_img, (2, 3, cfg['img'], cfg['img']), jnp.float32)
    params = init_params(k_par, cfg)

    fwd = jax.jit(lambda im, p: dp_net_forward(im, p, cfg))
    out = fwd(img, params)
    jax.block_until_ready(out['logits'])
    jax.block_until_ready(out['features'])
    jax.block_until_ready(out['img_features'])

    assert out['logits'].shape == (2, cfg['num_classes'])
    assert out['features'].shape == (2, cfg['dim'])
    assert out['img_features'].shape == (2, cfg['num_patches'], cfg['dim'])
    print("KERNEL_OK")
</pallas_src>

<mosaic_0001>
module attributes {stable_mosaic.version = 11 : i64} {
  func.func @fused_backbone_kernel(%arg0: i32, %arg1: i32, %arg2: memref<4xi32, #tpu.memory_space<smem>>, %arg3: memref<1x24x48xf32, #tpu.memory_space<vmem>>, %arg4: memref<24x32xf32, #tpu.memory_space<vmem>>, %arg5: memref<32x48xf32, #tpu.memory_space<vmem>>, %arg6: memref<1x1x24x32xf32, #tpu.memory_space<vmem>>, %arg7: memref<1x1x24x32xf32, #tpu.memory_space<vmem>>, %arg8: memref<1x1x32xf32, #tpu.memory_space<vmem>>, %arg9: memref<1x1x32xf32, #tpu.memory_space<vmem>>, %arg10: memref<1x96x32xf32, #tpu.memory_space<vmem>>, %arg11: memref<1x1x96xf32, #tpu.memory_space<vmem>>, %arg12: memref<1x32x32xf32, #tpu.memory_space<vmem>>, %arg13: memref<1x1x32xf32, #tpu.memory_space<vmem>>, %arg14: memref<1x1x32xf32, #tpu.memory_space<vmem>>, %arg15: memref<1x1x32xf32, #tpu.memory_space<vmem>>, %arg16: memref<1x128x32xf32, #tpu.memory_space<vmem>>, %arg17: memref<1x1x128xf32, #tpu.memory_space<vmem>>, %arg18: memref<1x32x128xf32, #tpu.memory_space<vmem>>, %arg19: memref<1x1x32xf32, #tpu.memory_space<vmem>>, %arg20: memref<1x32xf32, #tpu.memory_space<vmem>>, %arg21: memref<1x32xf32, #tpu.memory_space<vmem>>, %arg22: memref<3x32xf32, #tpu.memory_space<vmem>>, %arg23: memref<10x32xf32, #tpu.memory_space<vmem>>, %arg24: memref<1x10xf32, #tpu.memory_space<vmem>>, %arg25: memref<1x24x32xf32, #tpu.memory_space<vmem>>, %arg26: memref<1x1x3xf32, #tpu.memory_space<vmem>>, %arg27: memref<1x1x10xf32, #tpu.memory_space<vmem>>, %arg28: memref<24x32xf32, #tpu.memory_space<vmem>>) attributes {dimension_semantics = [#tpu.dimension_semantics<parallel>, #tpu.dimension_semantics<arbitrary>], iteration_bounds = array<i64: 2, 4>, scalar_prefetch = 1 : i64, scratch_operands = 1 : i64, tpu.core_type = #tpu.core_type<tc>, window_params = [{transform_indices = @transform_0, window_bounds = array<i64: 1, 24, 48>}, {pipeline_mode = #tpu.pipeline_mode<synchronous>, transform_indices = @transform_1, window_bounds = array<i64: 24, 32>}, {pipeline_mode = #tpu.pipeline_mode<synchronous>, transform_indices = @transform_2, window_bounds = array<i64: 32, 48>}, {transform_indices = @transform_3, window_bounds = array<i64: 1, 1, 24, 32>}, {transform_indices = @transform_4, window_bounds = array<i64: 1, 1, 24, 32>}, {transform_indices = @transform_5, window_bounds = array<i64: 1, 1, 32>}, {transform_indices = @transform_6, window_bounds = array<i64: 1, 1, 32>}, {transform_indices = @transform_7, window_bounds = array<i64: 1, 96, 32>}, {transform_indices = @transform_8, window_bounds = array<i64: 1, 1, 96>}, {transform_indices = @transform_9, window_bounds = array<i64: 1, 32, 32>}, {transform_indices = @transform_10, window_bounds = array<i64: 1, 1, 32>}, {transform_indices = @transform_11, window_bounds = array<i64: 1, 1, 32>}, {transform_indices = @transform_12, window_bounds = array<i64: 1, 1, 32>}, {transform_indices = @transform_13, window_bounds = array<i64: 1, 128, 32>}, {transform_indices = @transform_14, window_bounds = array<i64: 1, 1, 128>}, {transform_indices = @transform_15, window_bounds = array<i64: 1, 32, 128>}, {transform_indices = @transform_16, window_bounds = array<i64: 1, 1, 32>}, {pipeline_mode = #tpu.pipeline_mode<synchronous>, transform_indices = @transform_17, window_bounds = array<i64: 1, 32>}, {pipeline_mode = #tpu.pipeline_mode<synchronous>, transform_indices = @transform_18, window_bounds = array<i64: 1, 32>}, {pipeline_mode = #tpu.pipeline_mode<synchronous>, transform_indices = @transform_19, window_bounds = array<i64: 3, 32>}, {pipeline_mode = #tpu.pipeline_mode<synchronous>, transform_indices = @transform_20, window_bounds = array<i64: 10, 32>}, {pipeline_mode = #tpu.pipeline_mode<synchronous>, transform_indices = @transform_21, window_bounds = array<i64: 1, 10>}, {transform_indices = @transform_22, window_bounds = array<i64: 1, 24, 32>}, {transform_indices = @transform_23, window_bounds = array<i64: 1, 1, 3>}, {transform_indices = @transform_24, window_bounds = array<i64: 1, 1, 10>}]} {
    %c0_i32 = arith.constant 0 : i32
    %0 = arith.cmpi eq, %arg1, %c0_i32 : i32
    %1 = arith.extui %0 : i1 to i32
    %c0_i32_0 = arith.constant 0 : i32
    %2 = arith.cmpi ne, %1, %c0_i32_0 : i32
    scf.if %2 {
      %c0_107 = arith.constant 0 : index
      %c0_108 = arith.constant 0 : index
      %c0_109 = arith.constant 0 : index
      %249 = vector.load %arg3[%c0_107, %c0_108, %c0_109] : memref<1x24x48xf32, #tpu.memory_space<vmem>>, vector<1x24x48xf32>
      %250 = vector.shape_cast %249 : vector<1x24x48xf32> to vector<24x48xf32>
      %c0_110 = arith.constant 0 : index
      %c0_111 = arith.constant 0 : index
      %251 = vector.load %arg5[%c0_110, %c0_111] : memref<32x48xf32, #tpu.memory_space<vmem>>, vector<32x48xf32>
      %cst_112 = arith.constant dense<0.000000e+00> : vector<24x32xf32>
      %252 = tpu.matmul %250, %251, %cst_112 {dimension_numbers = #tpu.dot_dimension_numbers<[1], [1], [0], [0], [0, 0, 1, 0], [], []>} : vector<24x48xf32>, vector<32x48xf32>, vector<24x32xf32> -> vector<24x32xf32>
      %c0_113 = arith.constant 0 : index
      %c0_114 = arith.constant 0 : index
      %253 = vector.load %arg4[%c0_113, %c0_114] : memref<24x32xf32, #tpu.memory_space<vmem>>, vector<24x32xf32>
      %254 = arith.addf %252, %253 : vector<24x32xf32>
      %c0_115 = arith.constant 0 : index
      %c0_116 = arith.constant 0 : index
      %255 = vector.load %arg28[%c0_115, %c0_116] : memref<24x32xf32, #tpu.memory_space<vmem>>, vector<24x32xf32>
      tpu.vector_store %arg28[%c0_115, %c0_116], %254 {strides = array<i32>} : memref<24x32xf32, #tpu.memory_space<vmem>>, vector<24x32xf32>,
    } else {
    }
    %c0 = arith.constant 0 : index
    %c0_1 = arith.constant 0 : index
    %3 = vector.load %arg28[%c0, %c0_1] : memref<24x32xf32, #tpu.memory_space<vmem>>, vector<24x32xf32>
    %c0_2 = arith.constant 0 : index
    %c0_3 = arith.constant 0 : index
    %c0_4 = arith.constant 0 : index
    %4 = vector.load %arg8[%c0_2, %c0_3, %c0_4] : memref<1x1x32xf32, #tpu.memory_space<vmem>>, vector<1x1x32xf32>
    %5 = vector.shape_cast %4 : vector<1x1x32xf32> to vector<1x32xf32>
    %c0_5 = arith.constant 0 : index
    %c0_6 = arith.constant 0 : index
    %c0_7 = arith.constant 0 : index
    %6 = vector.load %arg9[%c0_5, %c0_6, %c0_7] : memref<1x1x32xf32, #tpu.memory_space<vmem>>, vector<1x1x32xf32>
    %7 = vector.shape_cast %6 : vector<1x1x32xf32> to vector<1x32xf32>
    %cst = arith.constant dense<0.000000e+00> : vector<24xf32>
    %8 = vector.multi_reduction <add>, %3, %cst [1] : vector<24x32xf32> to vector<24xf32>
    %9 = vector.shape_cast %8 : vector<24xf32> to vector<24x1xf32>
    %cst_8 = arith.constant 3.200000e+01 : f32
    %10 = vector.broadcast %cst_8 : f32 to vector<24x1xf32>
    %11 = arith.divf %9, %10 : vector<24x1xf32>
    %12 = vector.broadcast %11 : vector<24x1xf32> to vector<24x32xf32>
    %13 = arith.subf %3, %12 : vector<24x32xf32>
    %14 = vector.broadcast %11 : vector<24x1xf32> to vector<24x32xf32>
    %15 = arith.subf %3, %14 : vector<24x32xf32>
    %16 = arith.mulf %13, %15 : vector<24x32xf32>
    %cst_9 = arith.constant dense<0.000000e+00> : vector<24xf32>
    %17 = vector.multi_reduction <add>, %16, %cst_9 [1] : vector<24x32xf32> to vector<24xf32>
    %18 = vector.shape_cast %17 : vector<24xf32> to vector<24x1xf32>
    %cst_10 = arith.constant 3.200000e+01 : f32
    %19 = vector.broadcast %cst_10 : f32 to vector<24x1xf32>
    %20 = arith.divf %18, %19 : vector<24x1xf32>
    %21 = vector.broadcast %11 : vector<24x1xf32> to vector<24x32xf32>
    %22 = arith.subf %3, %21 : vector<24x32xf32>
    %cst_11 = arith.constant 9.99999997E-7 : f32
    %23 = vector.broadcast %cst_11 : f32 to vector<24x1xf32>
    %24 = arith.addf %20, %23 : vector<24x1xf32>
    %25 = math.rsqrt %24 : vector<24x1xf32>
    %26 = vector.broadcast %25 : vector<24x1xf32> to vector<24x32xf32>
    %27 = arith.mulf %22, %26 : vector<24x32xf32>
    %28 = vector.broadcast %5 : vector<1x32xf32> to vector<24x32xf32>
    %29 = arith.mulf %27, %28 : vector<24x32xf32>
    %30 = vector.broadcast %7 : vector<1x32xf32> to vector<24x32xf32>
    %31 = arith.addf %29, %30 : vector<24x32xf32>
    %c0_12 = arith.constant 0 : index
    %c0_13 = arith.constant 0 : index
    %c0_14 = arith.constant 0 : index
    %c0_15 = arith.constant 0 : index
    %32 = vector.load %arg6[%c0_12, %c0_13, %c0_14, %c0_15] : memref<1x1x24x32xf32, #tpu.memory_space<vmem>>, vector<1x1x24x32xf32>
    %33 = vector.shape_cast %32 : vector<1x1x24x32xf32> to vector<24x32xf32>
    %c0_16 = arith.constant 0 : index
    %c0_17 = arith.constant 0 : index
    %c0_18 = arith.constant 0 : index
    %c0_19 = arith.constant 0 : index
    %34 = vector.load %arg7[%c0_16, %c0_17, %c0_18, %c0_19] : memref<1x1x24x32xf32, #tpu.memory_space<vmem>>, vector<1x1x24x32xf32>
    %35 = vector.shape_cast %34 : vector<1x1x24x32xf32> to vector<24x32xf32>
    %36 = tpu.iota {dimensions = array<i32: 0>} : vector<24x32xi32>
    %c17_i32 = arith.constant 17 : i32
    %37 = vector.broadcast %c17_i32 : i32 to vector<24x32xi32>
    %38 = arith.cmpi sge, %36, %37 : vector<24x32xi32>
    %39 = arith.select %38, %33, %31 : vector<24x32xi1>, vector<24x32xf32>
    %40 = arith.select %38, %35, %31 : vector<24x32xi1>, vector<24x32xf32>
    %c0_20 = arith.constant 0 : index
    %c0_21 = arith.constant 0 : index
    %c0_22 = arith.constant 0 : index
    %41 = vector.load %arg10[%c0_20, %c0_21, %c0_22] : memref<1x96x32xf32, #tpu.memory_space<vmem>>, vector<1x96x32xf32>
    %42 = vector.shape_cast %41 : vector<1x96x32xf32> to vector<96x32xf32>
    %c0_23 = arith.constant 0 : index
    %c0_24 = arith.constant 0 : index
    %c0_25 = arith.constant 0 : index
    %43 = vector.load %arg11[%c0_23, %c0_24, %c0_25] : memref<1x1x96xf32, #tpu.memory_space<vmem>>, vector<1x1x96xf32>
    %44 = vector.shape_cast %43 : vector<1x1x96xf32> to vector<1x96xf32>
    %45 = vector.extract_strided_slice %42 {offsets = [0, 0], sizes = [32, 32], strides = [1, 1]} : vector<96x32xf32> to vector<32x32xf32>
    %46 = vector.extract_strided_slice %44 {offsets = [0, 0], sizes = [1, 32], strides = [1, 1]} : vector<1x96xf32> to vector<1x32xf32>
    %cst_26 = arith.constant dense<0.000000e+00> : vector<24x32xf32>
    %47 = tpu.matmul %31, %45, %cst_26 {dimension_numbers = #tpu.dot_dimension_numbers<[1], [1], [0], [0], [0, 0, 1, 0], [], []>} : vector<24x32xf32>, vector<32x32xf32>, vector<24x32xf32> -> vector<24x32xf32>
    %48 = vector.broadcast %46 : vector<1x32xf32> to vector<24x32xf32>
    %49 = arith.addf %47, %48 : vector<24x32xf32>
    %50 = vector.extract_strided_slice %42 {offsets = [32, 0], sizes = [32, 32], strides = [1, 1]} : vector<96x32xf32> to vector<32x32xf32>
    %51 = vector.extract_strided_slice %44 {offsets = [0, 32], sizes = [1, 32], strides = [1, 1]} : vector<1x96xf32> to vector<1x32xf32>
    %cst_27 = arith.constant dense<0.000000e+00> : vector<24x32xf32>
    %52 = tpu.matmul %39, %50, %cst_27 {dimension_numbers = #tpu.dot_dimension_numbers<[1], [1], [0], [0], [0, 0, 1, 0], [], []>} : vector<24x32xf32>, vector<32x32xf32>, vector<24x32xf32> -> vector<24x32xf32>
    %53 = vector.broadcast %51 : vector<1x32xf32> to vector<24x32xf32>
    %54 = arith.addf %52, %53 : vector<24x32xf32>
    %55 = vector.extract_strided_slice %42 {offsets = [64, 0], sizes = [32, 32], strides = [1, 1]} : vector<96x32xf32> to vector<32x32xf32>
    %56 = vector.extract_strided_slice %44 {offsets = [0, 64], sizes = [1, 32], strides = [1, 1]} : vector<1x96xf32> to vector<1x32xf32>
    %cst_28 = arith.constant dense<0.000000e+00> : vector<24x32xf32>
    %57 = tpu.matmul %40, %55, %cst_28 {dimension_numbers = #tpu.dot_dimension_numbers<[1], [1], [0], [0], [0, 0, 1, 0], [], []>} : vector<24x32xf32>, vector<32x32xf32>, vector<24x32xf32> -> vector<24x32xf32>
    %58 = vector.broadcast %56 : vector<1x32xf32> to vector<24x32xf32>
    %59 = arith.addf %57, %58 : vector<24x32xf32>
    %60 = arith.index_cast %arg1 : i32 to index
    %61 = memref.load %arg2[%60] : memref<4xi32, #tpu.memory_space<smem>>
    %c17_i32_29 = arith.constant 17 : i32
    %62 = arith.addi %c17_i32_29, %61 : i32
    %63 = tpu.iota {dimensions = array<i32: 1>} : vector<24x24xi32>
    %64 = vector.broadcast %62 : i32 to vector<24x24xi32>
    %65 = arith.cmpi slt, %63, %64 : vector<24x24xi32>
    %cst_30 = arith.constant 0.000000e+00 : f32
    %cst_31 = arith.constant -1.000000e+30 : f32
    %66 = vector.broadcast %cst_30 : f32 to vector<24x24xf32>
    %67 = vector.broadcast %cst_31 : f32 to vector<24x24xf32>
    %68 = arith.select %65, %66, %67 : vector<24x24xi1>, vector<24x24xf32>
    %c0_32 = arith.constant 0 : index
    %c0_33 = arith.constant 0 : index
    %c0_34 = arith.constant 0 : index
    %69 = vector.load %arg12[%c0_32, %c0_33, %c0_34] : memref<1x32x32xf32, #tpu.memory_space<vmem>>, vector<1x32x32xf32>
    %70 = vector.shape_cast %69 : vector<1x32x32xf32> to vector<32x32xf32>
    %cst_35 = arith.constant 0.000000e+00 : f32
    %71 = vector.broadcast %cst_35 : f32 to vector<24x32xf32>
    %72 = vector.extract_strided_slice %49 {offsets = [0, 0], sizes = [24, 8], strides = [1, 1]} : vector<24x32xf32> to vector<24x8xf32>
    %73 = vector.extract_strided_slice %54 {offsets = [0, 0], sizes = [24, 8], strides = [1, 1]} : vector<24x32xf32> to vector<24x8xf32>
    %cst_36 = arith.constant dense<0.000000e+00> : vector<24x24xf32>
    %74 = tpu.matmul %72, %73, %cst_36 {dimension_numbers = #tpu.dot_dimension_numbers<[1], [1], [0], [0], [0, 0, 1, 0], [], []>} : vector<24x8xf32>, vector<24x8xf32>, vector<24x24xf32> -> vector<24x24xf32>
    %cst_37 = arith.constant 0.353553385 : f32
    %75 = vector.broadcast %cst_37 : f32 to vector<24x24xf32>
    %76 = arith.mulf %74, %75 : vector<24x24xf32>
    %77 = arith.addf %76, %68 : vector<24x24xf32>
    %cst_38 = arith.constant dense<0xFF800000> : vector<24xf32>
    %78 = vector.multi_reduction <maximumf>, %77, %cst_38 [1] : vector<24x24xf32> to vector<24xf32>
    %79 = vector.shape_cast %78 : vector<24xf32> to vector<24x1xf32>
    %80 = vector.broadcast %79 : vector<24x1xf32> to vector<24x24xf32>
    %81 = arith.subf %77, %80 : vector<24x24xf32>
    %82 = math.exp %81 : vector<24x24xf32>
    %cst_39 = arith.constant dense<0.000000e+00> : vector<24xf32>
    %83 = vector.multi_reduction <add>, %82, %cst_39 [1] : vector<24x24xf32> to vector<24xf32>
    %84 = vector.shape_cast %83 : vector<24xf32> to vector<24x1xf32>
    %85 = tpu.reciprocal %84 {approx = true} : vector<24x1xf32> -> vector<24x1xf32>
    %86 = vector.broadcast %85 : vector<24x1xf32> to vector<24x24xf32>
    %87 = arith.mulf %82, %86 : vector<24x24xf32>
    %88 = vector.extract_strided_slice %59 {offsets = [0, 0], sizes = [24, 8], strides = [1, 1]} : vector<24x32xf32> to vector<24x8xf32>
    %cst_40 = arith.constant dense<0.000000e+00> : vector<24x8xf32>
    %89 = tpu.matmul %87, %88, %cst_40 {dimension_numbers = #tpu.dot_dimension_numbers<[1], [0], [0], [1], [0, 0, 1, 1], [], []>} : vector<24x24xf32>, vector<24x8xf32>, vector<24x8xf32> -> vector<24x8xf32>
    %90 = vector.extract_strided_slice %70 {offsets = [0, 0], sizes = [32, 8], strides = [1, 1]} : vector<32x32xf32> to vector<32x8xf32>
    %cst_41 = arith.constant dense<0.000000e+00> : vector<24x32xf32>
    %91 = tpu.matmul %89, %90, %cst_41 {dimension_numbers = #tpu.dot_dimension_numbers<[1], [1], [0], [0], [0, 0, 1, 0], [], []>} : vector<24x8xf32>, vector<32x8xf32>, vector<24x32xf32> -> vector<24x32xf32>
    %92 = arith.addf %71, %91 : vector<24x32xf32>
    %93 = vector.extract_strided_slice %49 {offsets = [0, 8], sizes = [24, 8], strides = [1, 1]} : vector<24x32xf32> to vector<24x8xf32>
    %94 = vector.extract_strided_slice %54 {offsets = [0, 8], sizes = [24, 8], strides = [1, 1]} : vector<24x32xf32> to vector<24x8xf32>
    %cst_42 = arith.constant dense<0.000000e+00> : vector<24x24xf32>
    %95 = tpu.matmul %93, %94, %cst_42 {dimension_numbers = #tpu.dot_dimension_numbers<[1], [1], [0], [0], [0, 0, 1, 0], [], []>} : vector<24x8xf32>, vector<24x8xf32>, vector<24x24xf32> -> vector<24x24xf32>
    %cst_43 = arith.constant 0.353553385 : f32
    %96 = vector.broadcast %cst_43 : f32 to vector<24x24xf32>
    %97 = arith.mulf %95, %96 : vector<24x24xf32>
    %98 = arith.addf %97, %68 : vector<24x24xf32>
    %cst_44 = arith.constant dense<0xFF800000> : vector<24xf32>
    %99 = vector.multi_reduction <maximumf>, %98, %cst_44 [1] : vector<24x24xf32> to vector<24xf32>
    %100 = vector.shape_cast %99 : vector<24xf32> to vector<24x1xf32>
    %101 = vector.broadcast %100 : vector<24x1xf32> to vector<24x24xf32>
    %102 = arith.subf %98, %101 : vector<24x24xf32>
    %103 = math.exp %102 : vector<24x24xf32>
    %cst_45 = arith.constant dense<0.000000e+00> : vector<24xf32>
    %104 = vector.multi_reduction <add>, %103, %cst_45 [1] : vector<24x24xf32> to vector<24xf32>
    %105 = vector.shape_cast %104 : vector<24xf32> to vector<24x1xf32>
    %106 = tpu.reciprocal %105 {approx = true} : vector<24x1xf32> -> vector<24x1xf32>
    %107 = vector.broadcast %106 : vector<24x1xf32> to vector<24x24xf32>
    %108 = arith.mulf %103, %107 : vector<24x24xf32>
    %109 = vector.extract_strided_slice %59 {offsets = [0, 8], sizes = [24, 8], strides = [1, 1]} : vector<24x32xf32> to vector<24x8xf32>
    %cst_46 = arith.constant dense<0.000000e+00> : vector<24x8xf32>
    %110 = tpu.matmul %108, %109, %cst_46 {dimension_numbers = #tpu.dot_dimension_numbers<[1], [0], [0], [1], [0, 0, 1, 1], [], []>} : vector<24x24xf32>, vector<24x8xf32>, vector<24x8xf32> -> vector<24x8xf32>
    %111 = vector.extract_strided_slice %70 {offsets = [0, 8], sizes = [32, 8], strides = [1, 1]} : vector<32x32xf32> to vector<32x8xf32>
    %cst_47 = arith.constant dense<0.000000e+00> : vector<24x32xf32>
    %112 = tpu.matmul %110, %111, %cst_47 {dimension_numbers = #tpu.dot_dimension_numbers<[1], [1], [0], [0], [0, 0, 1, 0], [], []>} : vector<24x8xf32>, vector<32x8xf32>, vector<24x32xf32> -> vector<24x32xf32>
    %113 = arith.addf %92, %112 : vector<24x32xf32>
    %114 = vector.extract_strided_slice %49 {offsets = [0, 16], sizes = [24, 8], strides = [1, 1]} : vector<24x32xf32> to vector<24x8xf32>
    %115 = vector.extract_strided_slice %54 {offsets = [0, 16], sizes = [24, 8], strides = [1, 1]} : vector<24x32xf32> to vector<24x8xf32>
    %cst_48 = arith.constant dense<0.000000e+00> : vector<24x24xf32>
    %116 = tpu.matmul %114, %115, %cst_48 {dimension_numbers = #tpu.dot_dimension_numbers<[1], [1], [0], [0], [0, 0, 1, 0], [], []>} : vector<24x8xf32>, vector<24x8xf32>, vector<24x24xf32> -> vector<24x24xf32>
    %cst_49 = arith.constant 0.353553385 : f32
    %117 = vector.broadcast %cst_49 : f32 to vector<24x24xf32>
    %118 = arith.mulf %116, %117 : vector<24x24xf32>
    %119 = arith.addf %118, %68 : vector<24x24xf32>
    %cst_50 = arith.constant dense<0xFF800000> : vector<24xf32>
    %120 = vector.multi_reduction <maximumf>, %119, %cst_50 [1] : vector<24x24xf32> to vector<24xf32>
    %121 = vector.shape_cast %120 : vector<24xf32> to vector<24x1xf32>
    %122 = vector.broadcast %121 : vector<24x1xf32> to vector<24x24xf32>
    %123 = arith.subf %119, %122 : vector<24x24xf32>
    %124 = math.exp %123 : vector<24x24xf32>
    %cst_51 = arith.constant dense<0.000000e+00> : vector<24xf32>
    %125 = vector.multi_reduction <add>, %124, %cst_51 [1] : vector<24x24xf32> to vector<24xf32>
    %126 = vector.shape_cast %125 : vector<24xf32> to vector<24x1xf32>
    %127 = tpu.reciprocal %126 {approx = true} : vector<24x1xf32> -> vector<24x1xf32>
    %128 = vector.broadcast %127 : vector<24x1xf32> to vector<24x24xf32>
    %129 = arith.mulf %124, %128 : vector<24x24xf32>
    %130 = vector.extract_strided_slice %59 {offsets = [0, 16], sizes = [24, 8], strides = [1, 1]} : vector<24x32xf32> to vector<24x8xf32>
    %cst_52 = arith.constant dense<0.000000e+00> : vector<24x8xf32>
    %131 = tpu.matmul %129, %130, %cst_52 {dimension_numbers = #tpu.dot_dimension_numbers<[1], [0], [0], [1], [0, 0, 1, 1], [], []>} : vector<24x24xf32>, vector<24x8xf32>, vector<24x8xf32> -> vector<24x8xf32>
    %132 = vector.extract_strided_slice %70 {offsets = [0, 16], sizes = [32, 8], strides = [1, 1]} : vector<32x32xf32> to vector<32x8xf32>
    %cst_53 = arith.constant dense<0.000000e+00> : vector<24x32xf32>
    %133 = tpu.matmul %131, %132, %cst_53 {dimension_numbers = #tpu.dot_dimension_numbers<[1], [1], [0], [0], [0, 0, 1, 0], [], []>} : vector<24x8xf32>, vector<32x8xf32>, vector<24x32xf32> -> vector<24x32xf32>
    %134 = arith.addf %113, %133 : vector<24x32xf32>
    %135 = vector.extract_strided_slice %49 {offsets = [0, 24], sizes = [24, 8], strides = [1, 1]} : vector<24x32xf32> to vector<24x8xf32>
    %136 = vector.extract_strided_slice %54 {offsets = [0, 24], sizes = [24, 8], strides = [1, 1]} : vector<24x32xf32> to vector<24x8xf32>
    %cst_54 = arith.constant dense<0.000000e+00> : vector<24x24xf32>
    %137 = tpu.matmul %135, %136, %cst_54 {dimension_numbers = #tpu.dot_dimension_numbers<[1], [1], [0], [0], [0, 0, 1, 0], [], []>} : vector<24x8xf32>, vector<24x8xf32>, vector<24x24xf32> -> vector<24x24xf32>
    %cst_55 = arith.constant 0.353553385 : f32
    %138 = vector.broadcast %cst_55 : f32 to vector<24x24xf32>
    %139 = arith.mulf %137, %138 : vector<24x24xf32>
    %140 = arith.addf %139, %68 : vector<24x24xf32>
    %cst_56 = arith.constant dense<0xFF800000> : vector<24xf32>
    %141 = vector.multi_reduction <maximumf>, %140, %cst_56 [1] : vector<24x24xf32> to vector<24xf32>
    %142 = vector.shape_cast %141 : vector<24xf32> to vector<24x1xf32>
    %143 = vector.broadcast %142 : vector<24x1xf32> to vector<24x24xf32>
    %144 = arith.subf %140, %143 : vector<24x24xf32>
    %145 = math.exp %144 : vector<24x24xf32>
    %cst_57 = arith.constant dense<0.000000e+00> : vector<24xf32>
    %146 = vector.multi_reduction <add>, %145, %cst_57 [1] : vector<24x24xf32> to vector<24xf32>
    %147 = vector.shape_cast %146 : vector<24xf32> to vector<24x1xf32>
    %148 = tpu.reciprocal %147 {approx = true} : vector<24x1xf32> -> vector<24x1xf32>
    %149 = vector.broadcast %148 : vector<24x1xf32> to vector<24x24xf32>
    %150 = arith.mulf %145, %149 : vector<24x24xf32>
    %151 = vector.extract_strided_slice %59 {offsets = [0, 24], sizes = [24, 8], strides = [1, 1]} : vector<24x32xf32> to vector<24x8xf32>
    %cst_58 = arith.constant dense<0.000000e+00> : vector<24x8xf32>
    %152 = tpu.matmul %150, %151, %cst_58 {dimension_numbers = #tpu.dot_dimension_numbers<[1], [0], [0], [1], [0, 0, 1, 1], [], []>} : vector<24x24xf32>, vector<24x8xf32>, vector<24x8xf32> -> vector<24x8xf32>
    %153 = vector.extract_strided_slice %70 {offsets = [0, 24], sizes = [32, 8], strides = [1, 1]} : vector<32x32xf32> to vector<32x8xf32>
    %cst_59 = arith.constant dense<0.000000e+00> : vector<24x32xf32>
    %154 = tpu.matmul %152, %153, %cst_59 {dimension_numbers = #tpu.dot_dimension_numbers<[1], [1], [0], [0], [0, 0, 1, 0], [], []>} : vector<24x8xf32>, vector<32x8xf32>, vector<24x32xf32> -> vector<24x32xf32>
    %155 = arith.addf %134, %154 : vector<24x32xf32>
    %c0_60 = arith.constant 0 : index
    %c0_61 = arith.constant 0 : index
    %c0_62 = arith.constant 0 : index
    %156 = vector.load %arg13[%c0_60, %c0_61, %c0_62] : memref<1x1x32xf32, #tpu.memory_space<vmem>>, vector<1x1x32xf32>
    %157 = vector.shape_cast %156 : vector<1x1x32xf32> to vector<1x32xf32>
    %158 = vector.broadcast %157 : vector<1x32xf32> to vector<24x32xf32>
    %159 = arith.addf %155, %158 : vector<24x32xf32>
    %160 = arith.addf %3, %159 : vector<24x32xf32>
    %c0_63 = arith.constant 0 : index
    %c0_64 = arith.constant 0 : index
    %c0_65 = arith.constant 0 : index
    %161 = vector.load %arg14[%c0_63, %c0_64, %c0_65] : memref<1x1x32xf32, #tpu.memory_space<vmem>>, vector<1x1x32xf32>
    %162 = vector.shape_cast %161 : vector<1x1x32xf32> to vector<1x32xf32>
    %c0_66 = arith.constant 0 : index
    %c0_67 = arith.constant 0 : index
    %c0_68 = arith.constant 0 : index
    %163 = vector.load %arg15[%c0_66, %c0_67, %c0_68] : memref<1x1x32xf32, #tpu.memory_space<vmem>>, vector<1x1x32xf32>
    %164 = vector.shape_cast %163 : vector<1x1x32xf32> to vector<1x32xf32>
    %cst_69 = arith.constant dense<0.000000e+00> : vector<24xf32>
    %165 = vector.multi_reduction <add>, %160, %cst_69 [1] : vector<24x32xf32> to vector<24xf32>
    %166 = vector.shape_cast %165 : vector<24xf32> to vector<24x1xf32>
    %cst_70 = arith.constant 3.200000e+01 : f32
    %167 = vector.broadcast %cst_70 : f32 to vector<24x1xf32>
    %168 = arith.divf %166, %167 : vector<24x1xf32>
    %169 = vector.broadcast %168 : vector<24x1xf32> to vector<24x32xf32>
    %170 = arith.subf %160, %169 : vector<24x32xf32>
    %171 = vector.broadcast %168 : vector<24x1xf32> to vector<24x32xf32>
    %172 = arith.subf %160, %171 : vector<24x32xf32>
    %173 = arith.mulf %170, %172 : vector<24x32xf32>
    %cst_71 = arith.constant dense<0.000000e+00> : vector<24xf32>
    %174 = vector.multi_reduction <add>, %173, %cst_71 [1] : vector<24x32xf32> to vector<24xf32>
    %175 = vector.shape_cast %174 : vector<24xf32> to vector<24x1xf32>
    %cst_72 = arith.constant 3.200000e+01 : f32
    %176 = vector.broadcast %cst_72 : f32 to vector<24x1xf32>
    %177 = arith.divf %175, %176 : vector<24x1xf32>
    %178 = vector.broadcast %168 : vector<24x1xf32> to vector<24x32xf32>
    %179 = arith.subf %160, %178 : vector<24x32xf32>
    %cst_73 = arith.constant 9.99999997E-7 : f32
    %180 = vector.broadcast %cst_73 : f32 to vector<24x1xf32>
    %181 = arith.addf %177, %180 : vector<24x1xf32>
    %182 = math.rsqrt %181 : vector<24x1xf32>
    %183 = vector.broadcast %182 : vector<24x1xf32> to vector<24x32xf32>
    %184 = arith.mulf %179, %183 : vector<24x32xf32>
    %185 = vector.broadcast %162 : vector<1x32xf32> to vector<24x32xf32>
    %186 = arith.mulf %184, %185 : vector<24x32xf32>
    %187 = vector.broadcast %164 : vector<1x32xf32> to vector<24x32xf32>
    %188 = arith.addf %186, %187 : vector<24x32xf32>
    %c0_74 = arith.constant 0 : index
    %c0_75 = arith.constant 0 : index
    %c0_76 = arith.constant 0 : index
    %189 = vector.load %arg16[%c0_74, %c0_75, %c0_76] : memref<1x128x32xf32, #tpu.memory_space<vmem>>, vector<1x128x32xf32>
    %190 = vector.shape_cast %189 : vector<1x128x32xf32> to vector<128x32xf32>
    %c0_77 = arith.constant 0 : index
    %c0_78 = arith.constant 0 : index
    %c0_79 = arith.constant 0 : index
    %191 = vector.load %arg17[%c0_77, %c0_78, %c0_79] : memref<1x1x128xf32, #tpu.memory_space<vmem>>, vector<1x1x128xf32>
    %192 = vector.shape_cast %191 : vector<1x1x128xf32> to vector<1x128xf32>
    %cst_80 = arith.constant dense<0.000000e+00> : vector<24x128xf32>
    %193 = tpu.matmul %188, %190, %cst_80 {dimension_numbers = #tpu.dot_dimension_numbers<[1], [1], [0], [0], [0, 0, 1, 0], [], []>} : vector<24x32xf32>, vector<128x32xf32>, vector<24x128xf32> -> vector<24x128xf32>
    %194 = vector.broadcast %192 : vector<1x128xf32> to vector<24x128xf32>
    %195 = arith.addf %193, %194 : vector<24x128xf32>
    %cst_81 = arith.constant 5.000000e-01 : f32
    %196 = vector.broadcast %cst_81 : f32 to vector<24x128xf32>
    %197 = arith.mulf %196, %195 : vector<24x128xf32>
    %cst_82 = arith.constant 0.707106769 : f32
    %198 = vector.broadcast %cst_82 : f32 to vector<24x128xf32>
    %199 = arith.mulf %195, %198 : vector<24x128xf32>
    %cst_83 = arith.constant 0.000000e+00 : f32
    %200 = vector.broadcast %cst_83 : f32 to vector<24x128xf32>
    %201 = arith.cmpf oge, %199, %200 : vector<24x128xf32>
    %cst_84 = arith.constant 1.000000e+00 : f32
    %cst_85 = arith.constant -1.000000e+00 : f32
    %202 = vector.broadcast %cst_84 : f32 to vector<24x128xf32>
    %203 = vector.broadcast %cst_85 : f32 to vector<24x128xf32>
    %204 = arith.select %201, %202, %203 : vector<24x128xi1>, vector<24x128xf32>
    %205 = math.absf %199 : vector<24x128xf32>
    %cst_86 = arith.constant 0.327591091 : f32
    %206 = vector.broadcast %cst_86 : f32 to vector<24x128xf32>
    %207 = arith.mulf %206, %205 : vector<24x128xf32>
    %cst_87 = arith.constant 1.000000e+00 : f32
    %208 = vector.broadcast %cst_87 : f32 to vector<24x128xf32>
    %209 = arith.addf %208, %207 : vector<24x128xf32>
    %cst_88 = arith.constant 1.000000e+00 : f32
    %210 = vector.broadcast %cst_88 : f32 to vector<24x128xf32>
    %211 = arith.divf %210, %209 : vector<24x128xf32>
    %cst_89 = arith.constant 1.06140542 : f32
    %212 = vector.broadcast %cst_89 : f32 to vector<24x128xf32>
    %213 = arith.mulf %212, %211 : vector<24x128xf32>
    %cst_90 = arith.constant -1.45315206 : f32
    %214 = vector.broadcast %cst_90 : f32 to vector<24x128xf32>
    %215 = arith.addf %213, %214 : vector<24x128xf32>
    %216 = arith.mulf %215, %211 : vector<24x128xf32>
    %cst_91 = arith.constant 1.42141378 : f32
    %217 = vector.broadcast %cst_91 : f32 to vector<24x128xf32>
    %218 = arith.addf %216, %217 : vector<24x128xf32>
    %219 = arith.mulf %218, %211 : vector<24x128xf32>
    %cst_92 = arith.constant -0.284496725 : f32
    %220 = vector.broadcast %cst_92 : f32 to vector<24x128xf32>
    %221 = arith.addf %219, %220 : vector<24x128xf32>
    %222 = arith.mulf %221, %211 : vector<24x128xf32>
    %cst_93 = arith.constant 0.254829586 : f32
    %223 = vector.broadcast %cst_93 : f32 to vector<24x128xf32>
    %224 = arith.addf %222, %223 : vector<24x128xf32>
    %225 = arith.mulf %224, %211 : vector<24x128xf32>
    %cst_94 = arith.constant 0.000000e+00 : f32
    %226 = vector.broadcast %cst_94 : f32 to vector<24x128xf32>
    %227 = arith.subf %226, %205 : vector<24x128xf32>
    %228 = arith.mulf %227, %205 : vector<24x128xf32>
    %229 = math.exp %228 : vector<24x128xf32>
    %230 = arith.mulf %225, %229 : vector<24x128xf32>
    %cst_95 = arith.constant 1.000000e+00 : f32
    %231 = vector.broadcast %cst_95 : f32 to vector<24x128xf32>
    %232 = arith.subf %231, %230 : vector<24x128xf32>
    %233 = arith.mulf %204, %232 : vector<24x128xf32>
    %cst_96 = arith.constant 1.000000e+00 : f32
    %234 = vector.broadcast %cst_96 : f32 to vector<24x128xf32>
    %235 = arith.addf %234, %233 : vector<24x128xf32>
    %236 = arith.mulf %197, %235 : vector<24x128xf32>
    %c0_97 = arith.constant 0 : index
    %c0_98 = arith.constant 0 : index
    %c0_99 = arith.constant 0 : index
    %237 = vector.load %arg18[%c0_97, %c0_98, %c0_99] : memref<1x32x128xf32, #tpu.memory_space<vmem>>, vector<1x32x128xf32>
    %238 = vector.shape_cast %237 : vector<1x32x128xf32> to vector<32x128xf32>
    %c0_100 = arith.constant 0 : index
    %c0_101 = arith.constant 0 : index
    %c0_102 = arith.constant 0 : index
    %239 = vector.load %arg19[%c0_100, %c0_101, %c0_102] : memref<1x1x32xf32, #tpu.memory_space<vmem>>, vector<1x1x32xf32>
    %240 = vector.shape_cast %239 : vector<1x1x32xf32> to vector<1x32xf32>
    %cst_103 = arith.constant dense<0.000000e+00> : vector<24x32xf32>
    %241 = tpu.matmul %236, %238, %cst_103 {dimension_numbers = #tpu.dot_dimension_numbers<[1], [1], [0], [0], [0, 0, 1, 0], [], []>} : vector<24x128xf32>, vector<32x128xf32>, vector<24x32xf32> -> vector<24x32xf32>
    %242 = vector.broadcast %240 : vector<1x32xf32> to vector<24x32xf32>
    %243 = arith.addf %241, %242 : vector<24x32xf32>
    %244 = arith.addf %160, %243 : vector<24x32xf32>
    %c0_104 = arith.constant 0 : index
    %c0_105 = arith.constant 0 : index
    %245 = vector.load %arg28[%c0_104, %c0_105] : memref<24x32xf32, #tpu.memory_space<vmem>>, vector<24x32xf32>
    tpu.vector_store %arg28[%c0_104, %c0_105], %244 {strides = array<i32>} : memref<24x32xf32, #tpu.memory_space<vmem>>, vector<24x32xf32>,
    %c3_i32 = arith.constant 3 : i32
    %246 = arith.cmpi eq, %arg1, %c3_i32 : i32
    %247 = arith.extui %246 : i1 to i32
    %c0_i32_106 = arith.constant 0 : i32
    %248 = arith.cmpi ne, %247, %c0_i32_106 : i32
    scf.if %248 {
      %c0_107 = arith.constant 0 : index
      %c0_108 = arith.constant 0 : index
      %249 = vector.load %arg28[%c0_107, %c0_108] : memref<24x32xf32, #tpu.memory_space<vmem>>, vector<24x32xf32>
      %c0_109 = arith.constant 0 : index
      %c0_110 = arith.constant 0 : index
      %250 = vector.load %arg20[%c0_109, %c0_110] : memref<1x32xf32, #tpu.memory_space<vmem>>, vector<1x32xf32>
      %c0_111 = arith.constant 0 : index
      %c0_112 = arith.constant 0 : index
      %251 = vector.load %arg21[%c0_111, %c0_112] : memref<1x32xf32, #tpu.memory_space<vmem>>, vector<1x32xf32>
      %cst_113 = arith.constant dense<0.000000e+00> : vector<24xf32>
      %252 = vector.multi_reduction <add>, %249, %cst_113 [1] : vector<24x32xf32> to vector<24xf32>
      %253 = vector.shape_cast %252 : vector<24xf32> to vector<24x1xf32>
      %cst_114 = arith.constant 3.200000e+01 : f32
      %254 = vector.broadcast %cst_114 : f32 to vector<24x1xf32>
      %255 = arith.divf %253, %254 : vector<24x1xf32>
      %256 = vector.broadcast %255 : vector<24x1xf32> to vector<24x32xf32>
      %257 = arith.subf %249, %256 : vector<24x32xf32>
      %258 = vector.broadcast %255 : vector<24x1xf32> to vector<24x32xf32>
      %259 = arith.subf %249, %258 : vector<24x32xf32>
      %260 = arith.mulf %257, %259 : vector<24x32xf32>
      %cst_115 = arith.constant dense<0.000000e+00> : vector<24xf32>
      %261 = vector.multi_reduction <add>, %260, %cst_115 [1] : vector<24x32xf32> to vector<24xf32>
      %262 = vector.shape_cast %261 : vector<24xf32> to vector<24x1xf32>
      %cst_116 = arith.constant 3.200000e+01 : f32
      %263 = vector.broadcast %cst_116 : f32 to vector<24x1xf32>
      %264 = arith.divf %262, %263 : vector<24x1xf32>
      %265 = vector.broadcast %255 : vector<24x1xf32> to vector<24x32xf32>
      %266 = arith.subf %249, %265 : vector<24x32xf32>
      %cst_117 = arith.constant 9.99999997E-7 : f32
      %267 = vector.broadcast %cst_117 : f32 to vector<24x1xf32>
      %268 = arith.addf %264, %267 : vector<24x1xf32>
      %269 = math.rsqrt %268 : vector<24x1xf32>
      %270 = vector.broadcast %269 : vector<24x1xf32> to vector<24x32xf32>
      %271 = arith.mulf %266, %270 : vector<24x32xf32>
      %272 = vector.broadcast %250 : vector<1x32xf32> to vector<24x32xf32>
      %273 = arith.mulf %271, %272 : vector<24x32xf32>
      %274 = vector.broadcast %251 : vector<1x32xf32> to vector<24x32xf32>
      %275 = arith.addf %273, %274 : vector<24x32xf32>
      %c0_118 = arith.constant 0 : index
      %c0_119 = arith.constant 0 : index
      %c0_120 = arith.constant 0 : index
      %276 = vector.load %arg25[%c0_118, %c0_119, %c0_120] : memref<1x24x32xf32, #tpu.memory_space<vmem>>, vector<1x24x32xf32>
      %277 = vector.shape_cast %276 : vector<1x24x32xf32> to vector<24x32xf32>
      %278 = vector.shape_cast %275 : vector<24x32xf32> to vector<1x24x32xf32>
      tpu.vector_store %arg25[%c0_118, %c0_119, %c0_120], %278 {strides = array<i32>} : memref<1x24x32xf32, #tpu.memory_space<vmem>>, vector<1x24x32xf32>,
      %279 = vector.extract_strided_slice %275 {offsets = [0, 0], sizes = [1, 32], strides = [1, 1]} : vector<24x32xf32> to vector<1x32xf32>
      %280 = arith.mulf %279, %279 : vector<1x32xf32>
      %cst_121 = arith.constant dense<0.000000e+00> : vector<1xf32>
      %281 = vector.multi_reduction <add>, %280, %cst_121 [1] : vector<1x32xf32> to vector<1xf32>
      %282 = vector.shape_cast %281 : vector<1xf32> to vector<1x1xf32>
      %283 = math.sqrt %282 : vector<1x1xf32>
      %cst_122 = arith.constant 9.99999996E-13 : f32
      %284 = vector.broadcast %cst_122 : f32 to vector<1x1xf32>
      %285 = arith.maximumf %283, %284 : vector<1x1xf32>
      %286 = vector.broadcast %285 : vector<1x1xf32> to vector<1x32xf32>
      %287 = arith.divf %279, %286 : vector<1x32xf32>
      %c0_123 = arith.constant 0 : index
      %c0_124 = arith.constant 0 : index
      %288 = vector.load %arg22[%c0_123, %c0_124] : memref<3x32xf32, #tpu.memory_space<vmem>>, vector<3x32xf32>
      %289 = arith.mulf %288, %288 : vector<3x32xf32>
      %cst_125 = arith.constant dense<0.000000e+00> : vector<3xf32>
      %290 = vector.multi_reduction <add>, %289, %cst_125 [1] : vector<3x32xf32> to vector<3xf32>
      %291 = vector.shape_cast %290 : vector<3xf32> to vector<3x1xf32>
      %292 = math.sqrt %291 : vector<3x1xf32>
      %cst_126 = arith.constant 9.99999996E-13 : f32
      %293 = vector.broadcast %cst_126 : f32 to vector<3x1xf32>
      %294 = arith.maximumf %292, %293 : vector<3x1xf32>
      %295 = vector.broadcast %294 : vector<3x1xf32> to vector<3x32xf32>
      %296 = arith.divf %288, %295 : vector<3x32xf32>
      %cst_127 = arith.constant dense<0.000000e+00> : vector<1x3xf32>
      %297 = tpu.matmul %287, %296, %cst_127 {dimension_numbers = #tpu.dot_dimension_numbers<[1], [1], [0], [0], [0, 0, 1, 0], [], []>} : vector<1x32xf32>, vector<3x32xf32>, vector<1x3xf32> -> vector<1x3xf32>
      %c0_128 = arith.constant 0 : index
      %c0_129 = arith.constant 0 : index
      %c0_130 = arith.constant 0 : index
      %298 = vector.load %arg26[%c0_128, %c0_129, %c0_130] : memref<1x1x3xf32, #tpu.memory_space<vmem>>, vector<1x1x3xf32>
      %299 = vector.shape_cast %298 : vector<1x1x3xf32> to vector<1x3xf32>
      %300 = vector.shape_cast %297 : vector<1x3xf32> to vector<1x1x3xf32>
      tpu.vector_store %arg26[%c0_128, %c0_129, %c0_130], %300 {strides = array<i32>} : memref<1x1x3xf32, #tpu.memory_space<vmem>>, vector<1x1x3xf32>,
      %c0_131 = arith.constant 0 : index
      %c0_132 = arith.constant 0 : index
      %301 = vector.load %arg23[%c0_131, %c0_132] : memref<10x32xf32, #tpu.memory_space<vmem>>, vector<10x32xf32>
      %c0_133 = arith.constant 0 : index
      %c0_134 = arith.constant 0 : index
      %302 = vector.load %arg24[%c0_133, %c0_134] : memref<1x10xf32, #tpu.memory_space<vmem>>, vector<1x10xf32>
      %cst_135 = arith.constant dense<0.000000e+00> : vector<1x10xf32>
      %303 = tpu.matmul %279, %301, %cst_135 {dimension_numbers = #tpu.dot_dimension_numbers<[1], [1], [0], [0], [0, 0, 1, 0], [], []>} : vector<1x32xf32>, vector<10x32xf32>, vector<1x10xf32> -> vector<1x10xf32>
      %304 = arith.addf %303, %302 : vector<1x10xf32>
      %c0_136 = arith.constant 0 : index
      %c0_137 = arith.constant 0 : index
      %c0_138 = arith.constant 0 : index
      %305 = vector.load %arg27[%c0_136, %c0_137, %c0_138] : memref<1x1x10xf32, #tpu.memory_space<vmem>>, vector<1x1x10xf32>
      %306 = vector.shape_cast %305 : vector<1x1x10xf32> to vector<1x10xf32>
      %307 = vector.shape_cast %304 : vector<1x10xf32> to vector<1x1x10xf32>
      tpu.vector_store %arg27[%c0_136, %c0_137, %c0_138], %307 {strides = array<i32>} : memref<1x1x10xf32, #tpu.memory_space<vmem>>, vector<1x1x10xf32>,
    } else {
    }
    return
  }
  func.func @transform_0(%arg0: i32, %arg1: i32, %arg2: memref<4xi32, #tpu.memory_space<smem>>) -> (i32, i32, i32) {
    %c0_i32 = arith.constant 0 : i32
    %c0_i32_0 = arith.constant 0 : i32
    %c0_i32_1 = arith.constant 0 : i32
    return %arg0, %c0_i32, %c0_i32_0 : i32, i32, i32
  }
  func.func @transform_1(%arg0: i32, %arg1: i32, %arg2: memref<4xi32, #tpu.memory_space<smem>>) -> (i32, i32) {
    %c0_i32 = arith.constant 0 : i32
    %c0_i32_0 = arith.constant 0 : i32
    %c0_i32_1 = arith.constant 0 : i32
    return %c0_i32, %c0_i32_0 : i32, i32
  }
  func.func @transform_2(%arg0: i32, %arg1: i32, %arg2: memref<4xi32, #tpu.memory_space<smem>>) -> (i32, i32) {
    %c0_i32 = arith.constant 0 : i32
    %c0_i32_0 = arith.constant 0 : i32
    %c0_i32_1 = arith.constant 0 : i32
    return %c0_i32, %c0_i32_0 : i32, i32
  }
  func.func @transform_3(%arg0: i32, %arg1: i32, %arg2: memref<4xi32, #tpu.memory_space<smem>>) -> (i32, i32, i32, i32) {
    %c0_i32 = arith.constant 0 : i32
    %c0_i32_0 = arith.constant 0 : i32
    %c0_i32_1 = arith.constant 0 : i32
    return %arg0, %arg1, %c0_i32, %c0_i32_0 : i32, i32, i32, i32
  }
  func.func @transform_4(%arg0: i32, %arg1: i32, %arg2: memref<4xi32, #tpu.memory_space<smem>>) -> (i32, i32, i32, i32) {
    %c0_i32 = arith.constant 0 : i32
    %c0_i32_0 = arith.constant 0 : i32
    %c0_i32_1 = arith.constant 0 : i32
    return %arg0, %arg1, %c0_i32, %c0_i32_0 : i32, i32, i32, i32
  }
  func.func @transform_5(%arg0: i32, %arg1: i32, %arg2: memref<4xi32, #tpu.memory_space<smem>>) -> (i32, i32, i32) {
    %c0_i32 = arith.constant 0 : i32
    %c0_i32_0 = arith.constant 0 : i32
    %c0_i32_1 = arith.constant 0 : i32
    return %arg1, %c0_i32, %c0_i32_0 : i32, i32, i32
  }
  func.func @transform_6(%arg0: i32, %arg1: i32, %arg2: memref<4xi32, #tpu.memory_space<smem>>) -> (i32, i32, i32) {
    %c0_i32 = arith.constant 0 : i32
    %c0_i32_0 = arith.constant 0 : i32
    %c0_i32_1 = arith.constant 0 : i32
    return %arg1, %c0_i32, %c0_i32_0 : i32, i32, i32
  }
  func.func @transform_7(%arg0: i32, %arg1: i32, %arg2: memref<4xi32, #tpu.memory_space<smem>>) -> (i32, i32, i32) {
    %c0_i32 = arith.constant 0 : i32
    %c0_i32_0 = arith.constant 0 : i32
    %c0_i32_1 = arith.constant 0 : i32
    return %arg1, %c0_i32, %c0_i32_0 : i32, i32, i32
  }
  func.func @transform_8(%arg0: i32, %arg1: i32, %arg2: memref<4xi32, #tpu.memory_space<smem>>) -> (i32, i32, i32) {
    %c0_i32 = arith.constant 0 : i32
    %c0_i32_0 = arith.constant 0 : i32
    %c0_i32_1 = arith.constant 0 : i32
    return %arg1, %c0_i32, %c0_i32_0 : i32, i32, i32
  }
  func.func @transform_9(%arg0: i32, %arg1: i32, %arg2: memref<4xi32, #tpu.memory_space<smem>>) -> (i32, i32, i32) {
    %c0_i32 = arith.constant 0 : i32
    %c0_i32_0 = arith.constant 0 : i32
    %c0_i32_1 = arith.constant 0 : i32
    return %arg1, %c0_i32, %c0_i32_0 : i32, i32, i32
  }
  func.func @transform_10(%arg0: i32, %arg1: i32, %arg2: memref<4xi32, #tpu.memory_space<smem>>) -> (i32, i32, i32) {
    %c0_i32 = arith.constant 0 : i32
    %c0_i32_0 = arith.constant 0 : i32
    %c0_i32_1 = arith.constant 0 : i32
    return %arg1, %c0_i32, %c0_i32_0 : i32, i32, i32
  }
  func.func @transform_11(%arg0: i32, %arg1: i32, %arg2: memref<4xi32, #tpu.memory_space<smem>>) -> (i32, i32, i32) {
    %c0_i32 = arith.constant 0 : i32
    %c0_i32_0 = arith.constant 0 : i32
    %c0_i32_1 = arith.constant 0 : i32
    return %arg1, %c0_i32, %c0_i32_0 : i32, i32, i32
  }
  func.func @transform_12(%arg0: i32, %arg1: i32, %arg2: memref<4xi32, #tpu.memory_space<smem>>) -> (i32, i32, i32) {
    %c0_i32 = arith.constant 0 : i32
    %c0_i32_0 = arith.constant 0 : i32
    %c0_i32_1 = arith.constant 0 : i32
    return %arg1, %c0_i32, %c0_i32_0 : i32, i32, i32
  }
  func.func @transform_13(%arg0: i32, %arg1: i32, %arg2: memref<4xi32, #tpu.memory_space<smem>>) -> (i32, i32, i32) {
    %c0_i32 = arith.constant 0 : i32
    %c0_i32_0 = arith.constant 0 : i32
    %c0_i32_1 = arith.constant 0 : i32
    return %arg1, %c0_i32, %c0_i32_0 : i32, i32, i32
  }
  func.func @transform_14(%arg0: i32, %arg1: i32, %arg2: memref<4xi32, #tpu.memory_space<smem>>) -> (i32, i32, i32) {
    %c0_i32 = arith.constant 0 : i32
    %c0_i32_0 = arith.constant 0 : i32
    %c0_i32_1 = arith.constant 0 : i32
    return %arg1, %c0_i32, %c0_i32_0 : i32, i32, i32
  }
  func.func @transform_15(%arg0: i32, %arg1: i32, %arg2: memref<4xi32, #tpu.memory_space<smem>>) -> (i32, i32, i32) {
    %c0_i32 = arith.constant 0 : i32
    %c0_i32_0 = arith.constant 0 : i32
    %c0_i32_1 = arith.constant 0 : i32
    return %arg1, %c0_i32, %c0_i32_0 : i32, i32, i32
  }
  func.func @transform_16(%arg0: i32, %arg1: i32, %arg2: memref<4xi32, #tpu.memory_space<smem>>) -> (i32, i32, i32) {
    %c0_i32 = arith.constant 0 : i32
    %c0_i32_0 = arith.constant 0 : i32
    %c0_i32_1 = arith.constant 0 : i32
    return %arg1, %c0_i32, %c0_i32_0 : i32, i32, i32
  }
  func.func @transform_17(%arg0: i32, %arg1: i32, %arg2: memref<4xi32, #tpu.memory_space<smem>>) -> (i32, i32) {
    %c0_i32 = arith.constant 0 : i32
    %c0_i32_0 = arith.constant 0 : i32
    %c0_i32_1 = arith.constant 0 : i32
    return %c0_i32, %c0_i32_0 : i32, i32
  }
  func.func @transform_18(%arg0: i32, %arg1: i32, %arg2: memref<4xi32, #tpu.memory_space<smem>>) -> (i32, i32) {
    %c0_i32 = arith.constant 0 : i32
    %c0_i32_0 = arith.constant 0 : i32
    %c0_i32_1 = arith.constant 0 : i32
    return %c0_i32, %c0_i32_0 : i32, i32
  }
  func.func @transform_19(%arg0: i32, %arg1: i32, %arg2: memref<4xi32, #tpu.memory_space<smem>>) -> (i32, i32) {
    %c0_i32 = arith.constant 0 : i32
    %c0_i32_0 = arith.constant 0 : i32
    %c0_i32_1 = arith.constant 0 : i32
    return %c0_i32, %c0_i32_0 : i32, i32
  }
  func.func @transform_20(%arg0: i32, %arg1: i32, %arg2: memref<4xi32, #tpu.memory_space<smem>>) -> (i32, i32) {
    %c0_i32 = arith.constant 0 : i32
    %c0_i32_0 = arith.constant 0 : i32
    %c0_i32_1 = arith.constant 0 : i32
    return %c0_i32, %c0_i32_0 : i32, i32
  }
  func.func @transform_21(%arg0: i32, %arg1: i32, %arg2: memref<4xi32, #tpu.memory_space<smem>>) -> (i32, i32) {
    %c0_i32 = arith.constant 0 : i32
    %c0_i32_0 = arith.constant 0 : i32
    %c0_i32_1 = arith.constant 0 : i32
    return %c0_i32, %c0_i32_0 : i32, i32
  }
  func.func @transform_22(%arg0: i32, %arg1: i32, %arg2: memref<4xi32, #tpu.memory_space<smem>>) -> (i32, i32, i32) {
    %c0_i32 = arith.constant 0 : i32
    %c0_i32_0 = arith.constant 0 : i32
    %c0_i32_1 = arith.constant 0 : i32
    return %arg0, %c0_i32, %c0_i32_0 : i32, i32, i32
  }
  func.func @transform_23(%arg0: i32, %arg1: i32, %arg2: memref<4xi32, #tpu.memory_space<smem>>) -> (i32, i32, i32) {
    %c0_i32 = arith.constant 0 : i32
    %c0_i32_0 = arith.constant 0 : i32
    %c0_i32_1 = arith.constant 0 : i32
    return %arg0, %c0_i32, %c0_i32_0 : i32, i32, i32
  }
  func.func @transform_24(%arg0: i32, %arg1: i32, %arg2: memref<4xi32, #tpu.memory_space<smem>>) -> (i32, i32, i32) {
    %c0_i32 = arith.constant 0 : i32
    %c0_i32_0 = arith.constant 0 : i32
    %c0_i32_1 = arith.constant 0 : i32
    return %arg0, %c0_i32, %c0_i32_0 : i32, i32, i32
  }
}

module attributes {stable_mosaic.version = 11 : i64} {
  func.func @fused_backbone_kernel(%arg0: i32, %arg1: i32, %arg2: memref<4xi32, #tpu.memory_space<smem>>, %arg3: memref<1x24x48xf32, #tpu.memory_space<vmem>>, %arg4: memref<24x32xf32, #tpu.memory_space<vmem>>, %arg5: memref<32x48xf32, #tpu.memory_space<vmem>>, %arg6: memref<1x1x24x32xf32, #tpu.memory_space<vmem>>, %arg7: memref<1x1x24x32xf32, #tpu.memory_space<vmem>>, %arg8: memref<1x1x32xf32, #tpu.memory_space<vmem>>, %arg9: memref<1x1x32xf32, #tpu.memory_space<vmem>>, %arg10: memref<1x96x32xf32, #tpu.memory_space<vmem>>, %arg11: memref<1x1x96xf32, #tpu.memory_space<vmem>>, %arg12: memref<1x32x32xf32, #tpu.memory_space<vmem>>, %arg13: memref<1x1x32xf32, #tpu.memory_space<vmem>>, %arg14: memref<1x1x32xf32, #tpu.memory_space<vmem>>, %arg15: memref<1x1x32xf32, #tpu.memory_space<vmem>>, %arg16: memref<1x128x32xf32, #tpu.memory_space<vmem>>, %arg17: memref<1x1x128xf32, #tpu.memory_space<vmem>>, %arg18: memref<1x32x128xf32, #tpu.memory_space<vmem>>, %arg19: memref<1x1x32xf32, #tpu.memory_space<vmem>>, %arg20: memref<1x32xf32, #tpu.memory_space<vmem>>, %arg21: memref<1x32xf32, #tpu.memory_space<vmem>>, %arg22: memref<3x32xf32, #tpu.memory_space<vmem>>, %arg23: memref<10x32xf32, #tpu.memory_space<vmem>>, %arg24: memref<1x10xf32, #tpu.memory_space<vmem>>, %arg25: memref<1x24x32xf32, #tpu.memory_space<vmem>>, %arg26: memref<1x1x3xf32, #tpu.memory_space<vmem>>, %arg27: memref<1x1x10xf32, #tpu.memory_space<vmem>>, %arg28: memref<24x32xf32, #tpu.memory_space<vmem>>) attributes {dimension_semantics = [#tpu.dimension_semantics<parallel>, #tpu.dimension_semantics<arbitrary>], iteration_bounds = array<i64: 2, 4>, scalar_prefetch = 1 : i64, scratch_operands = 1 : i64, tpu.core_type = #tpu.core_type<tc>, window_params = [{transform_indices = @transform_0, window_bounds = array<i64: 1, 24, 48>}, {pipeline_mode = #tpu.pipeline_mode<synchronous>, transform_indices = @transform_1, window_bounds = array<i64: 24, 32>}, {pipeline_mode = #tpu.pipeline_mode<synchronous>, transform_indices = @transform_2, window_bounds = array<i64: 32, 48>}, {transform_indices = @transform_3, window_bounds = array<i64: 1, 1, 24, 32>}, {transform_indices = @transform_4, window_bounds = array<i64: 1, 1, 24, 32>}, {transform_indices = @transform_5, window_bounds = array<i64: 1, 1, 32>}, {transform_indices = @transform_6, window_bounds = array<i64: 1, 1, 32>}, {transform_indices = @transform_7, window_bounds = array<i64: 1, 96, 32>}, {transform_indices = @transform_8, window_bounds = array<i64: 1, 1, 96>}, {transform_indices = @transform_9, window_bounds = array<i64: 1, 32, 32>}, {transform_indices = @transform_10, window_bounds = array<i64: 1, 1, 32>}, {transform_indices = @transform_11, window_bounds = array<i64: 1, 1, 32>}, {transform_indices = @transform_12, window_bounds = array<i64: 1, 1, 32>}, {transform_indices = @transform_13, window_bounds = array<i64: 1, 128, 32>}, {transform_indices = @transform_14, window_bounds = array<i64: 1, 1, 128>}, {transform_indices = @transform_15, window_bounds = array<i64: 1, 32, 128>}, {transform_indices = @transform_16, window_bounds = array<i64: 1, 1, 32>}, {pipeline_mode = #tpu.pipeline_mode<synchronous>, transform_indices = @transform_17, window_bounds = array<i64: 1, 32>}, {pipeline_mode = #tpu.pipeline_mode<synchronous>, transform_indices = @transform_18, window_bounds = array<i64: 1, 32>}, {pipeline_mode = #tpu.pipeline_mode<synchronous>, transform_indices = @transform_19, window_bounds = array<i64: 3, 32>}, {pipeline_mode = #tpu.pipeline_mode<synchronous>, transform_indices = @transform_20, window_bounds = array<i64: 10, 32>}, {pipeline_mode = #tpu.pipeline_mode<synchronous>, transform_indices = @transform_21, window_bounds = array<i64: 1, 10>}, {transform_indices = @transform_22, window_bounds = array<i64: 1, 24, 32>}, {transform_indices = @transform_23, window_bounds = array<i64: 1, 1, 3>}, {transform_indices = @transform_24, window_bounds = array<i64: 1, 1, 10>}]} {
    %c0_i32 = arith.constant 0 : i32
    %0 = arith.cmpi eq, %arg1, %c0_i32 : i32
    %1 = arith.extui %0 : i1 to i32
    %c0_i32_0 = arith.constant 0 : i32
    %2 = arith.cmpi ne, %1, %c0_i32_0 : i32
    scf.if %2 {
      %c0_107 = arith.constant 0 : index
      %c0_108 = arith.constant 0 : index
      %c0_109 = arith.constant 0 : index
      %249 = vector.load %arg3[%c0_107, %c0_108, %c0_109] : memref<1x24x48xf32, #tpu.memory_space<vmem>>, vector<1x24x48xf32>
      %250 = vector.shape_cast %249 : vector<1x24x48xf32> to vector<24x48xf32>
      %c0_110 = arith.constant 0 : index
      %c0_111 = arith.constant 0 : index
      %251 = vector.load %arg5[%c0_110, %c0_111] : memref<32x48xf32, #tpu.memory_space<vmem>>, vector<32x48xf32>
      %cst_112 = arith.constant dense<0.000000e+00> : vector<24x32xf32>
      %252 = tpu.matmul %250, %251, %cst_112 {dimension_numbers = #tpu.dot_dimension_numbers<[1], [1], [0], [0], [0, 0, 1, 0], [], []>} : vector<24x48xf32>, vector<32x48xf32>, vector<24x32xf32> -> vector<24x32xf32>
      %c0_113 = arith.constant 0 : index
      %c0_114 = arith.constant 0 : index
      %253 = vector.load %arg4[%c0_113, %c0_114] : memref<24x32xf32, #tpu.memory_space<vmem>>, vector<24x32xf32>
      %254 = arith.addf %252, %253 : vector<24x32xf32>
      %c0_115 = arith.constant 0 : index
      %c0_116 = arith.constant 0 : index
      %255 = vector.load %arg28[%c0_115, %c0_116] : memref<24x32xf32, #tpu.memory_space<vmem>>, vector<24x32xf32>
      tpu.vector_store %arg28[%c0_115, %c0_116], %254 {strides = array<i32>} : memref<24x32xf32, #tpu.memory_space<vmem>>, vector<24x32xf32>,
    } else {
    }
    %c0 = arith.constant 0 : index
    %c0_1 = arith.constant 0 : index
    %3 = vector.load %arg28[%c0, %c0_1] : memref<24x32xf32, #tpu.memory_space<vmem>>, vector<24x32xf32>
    %c0_2 = arith.constant 0 : index
    %c0_3 = arith.constant 0 : index
    %c0_4 = arith.constant 0 : index
    %4 = vector.load %arg8[%c0_2, %c0_3, %c0_4] : memref<1x1x32xf32, #tpu.memory_space<vmem>>, vector<1x1x32xf32>
    %5 = vector.shape_cast %4 : vector<1x1x32xf32> to vector<1x32xf32>
    %c0_5 = arith.constant 0 : index
    %c0_6 = arith.constant 0 : index
    %c0_7 = arith.constant 0 : index
    %6 = vector.load %arg9[%c0_5, %c0_6, %c0_7] : memref<1x1x32xf32, #tpu.memory_space<vmem>>, vector<1x1x32xf32>
    %7 = vector.shape_cast %6 : vector<1x1x32xf32> to vector<1x32xf32>
    %cst = arith.constant dense<0.000000e+00> : vector<24xf32>
    %8 = vector.multi_reduction <add>, %3, %cst [1] : vector<24x32xf32> to vector<24xf32>
    %9 = vector.shape_cast %8 : vector<24xf32> to vector<24x1xf32>
    %cst_8 = arith.constant 3.200000e+01 : f32
    %10 = vector.broadcast %cst_8 : f32 to vector<24x1xf32>
    %11 = arith.divf %9, %10 : vector<24x1xf32>
    %12 = vector.broadcast %11 : vector<24x1xf32> to vector<24x32xf32>
    %13 = arith.subf %3, %12 : vector<24x32xf32>
    %14 = vector.broadcast %11 : vector<24x1xf32> to vector<24x32xf32>
    %15 = arith.subf %3, %14 : vector<24x32xf32>
    %16 = arith.mulf %13, %15 : vector<24x32xf32>
    %cst_9 = arith.constant dense<0.000000e+00> : vector<24xf32>
    %17 = vector.multi_reduction <add>, %16, %cst_9 [1] : vector<24x32xf32> to vector<24xf32>
    %18 = vector.shape_cast %17 : vector<24xf32> to vector<24x1xf32>
    %cst_10 = arith.constant 3.200000e+01 : f32
    %19 = vector.broadcast %cst_10 : f32 to vector<24x1xf32>
    %20 = arith.divf %18, %19 : vector<24x1xf32>
    %21 = vector.broadcast %11 : vector<24x1xf32> to vector<24x32xf32>
    %22 = arith.subf %3, %21 : vector<24x32xf32>
    %cst_11 = arith.constant 9.99999997E-7 : f32
    %23 = vector.broadcast %cst_11 : f32 to vector<24x1xf32>
    %24 = arith.addf %20, %23 : vector<24x1xf32>
    %25 = math.rsqrt %24 : vector<24x1xf32>
    %26 = vector.broadcast %25 : vector<24x1xf32> to vector<24x32xf32>
    %27 = arith.mulf %22, %26 : vector<24x32xf32>
    %28 = vector.broadcast %5 : vector<1x32xf32> to vector<24x32xf32>
    %29 = arith.mulf %27, %28 : vector<24x32xf32>
    %30 = vector.broadcast %7 : vector<1x32xf32> to vector<24x32xf32>
    %31 = arith.addf %29, %30 : vector<24x32xf32>
    %c0_12 = arith.constant 0 : index
    %c0_13 = arith.constant 0 : index
    %c0_14 = arith.constant 0 : index
    %c0_15 = arith.constant 0 : index
    %32 = vector.load %arg6[%c0_12, %c0_13, %c0_14, %c0_15] : memref<1x1x24x32xf32, #tpu.memory_space<vmem>>, vector<1x1x24x32xf32>
    %33 = vector.shape_cast %32 : vector<1x1x24x32xf32> to vector<24x32xf32>
    %c0_16 = arith.constant 0 : index
    %c0_17 = arith.constant 0 : index
    %c0_18 = arith.constant 0 : index
    %c0_19 = arith.constant 0 : index
    %34 = vector.load %arg7[%c0_16, %c0_17, %c0_18, %c0_19] : memref<1x1x24x32xf32, #tpu.memory_space<vmem>>, vector<1x1x24x32xf32>
    %35 = vector.shape_cast %34 : vector<1x1x24x32xf32> to vector<24x32xf32>
    %36 = tpu.iota {dimensions = array<i32: 0>} : vector<24x32xi32>
    %c17_i32 = arith.constant 17 : i32
    %37 = vector.broadcast %c17_i32 : i32 to vector<24x32xi32>
    %38 = arith.cmpi sge, %36, %37 : vector<24x32xi32>
    %39 = arith.select %38, %33, %31 : vector<24x32xi1>, vector<24x32xf32>
    %40 = arith.select %38, %35, %31 : vector<24x32xi1>, vector<24x32xf32>
    %c0_20 = arith.constant 0 : index
    %c0_21 = arith.constant 0 : index
    %c0_22 = arith.constant 0 : index
    %41 = vector.load %arg10[%c0_20, %c0_21, %c0_22] : memref<1x96x32xf32, #tpu.memory_space<vmem>>, vector<1x96x32xf32>
    %42 = vector.shape_cast %41 : vector<1x96x32xf32> to vector<96x32xf32>
    %c0_23 = arith.constant 0 : index
    %c0_24 = arith.constant 0 : index
    %c0_25 = arith.constant 0 : index
    %43 = vector.load %arg11[%c0_23, %c0_24, %c0_25] : memref<1x1x96xf32, #tpu.memory_space<vmem>>, vector<1x1x96xf32>
    %44 = vector.shape_cast %43 : vector<1x1x96xf32> to vector<1x96xf32>
    %45 = vector.extract_strided_slice %42 {offsets = [0, 0], sizes = [32, 32], strides = [1, 1]} : vector<96x32xf32> to vector<32x32xf32>
    %46 = vector.extract_strided_slice %44 {offsets = [0, 0], sizes = [1, 32], strides = [1, 1]} : vector<1x96xf32> to vector<1x32xf32>
    %cst_26 = arith.constant dense<0.000000e+00> : vector<24x32xf32>
    %47 = tpu.matmul %31, %45, %cst_26 {dimension_numbers = #tpu.dot_dimension_numbers<[1], [1], [0], [0], [0, 0, 1, 0], [], []>} : vector<24x32xf32>, vector<32x32xf32>, vector<24x32xf32> -> vector<24x32xf32>
    %48 = vector.broadcast %46 : vector<1x32xf32> to vector<24x32xf32>
    %49 = arith.addf %47, %48 : vector<24x32xf32>
    %50 = vector.extract_strided_slice %42 {offsets = [32, 0], sizes = [32, 32], strides = [1, 1]} : vector<96x32xf32> to vector<32x32xf32>
    %51 = vector.extract_strided_slice %44 {offsets = [0, 32], sizes = [1, 32], strides = [1, 1]} : vector<1x96xf32> to vector<1x32xf32>
    %cst_27 = arith.constant dense<0.000000e+00> : vector<24x32xf32>
    %52 = tpu.matmul %39, %50, %cst_27 {dimension_numbers = #tpu.dot_dimension_numbers<[1], [1], [0], [0], [0, 0, 1, 0], [], []>} : vector<24x32xf32>, vector<32x32xf32>, vector<24x32xf32> -> vector<24x32xf32>
    %53 = vector.broadcast %51 : vector<1x32xf32> to vector<24x32xf32>
    %54 = arith.addf %52, %53 : vector<24x32xf32>
    %55 = vector.extract_strided_slice %42 {offsets = [64, 0], sizes = [32, 32], strides = [1, 1]} : vector<96x32xf32> to vector<32x32xf32>
    %56 = vector.extract_strided_slice %44 {offsets = [0, 64], sizes = [1, 32], strides = [1, 1]} : vector<1x96xf32> to vector<1x32xf32>
    %cst_28 = arith.constant dense<0.000000e+00> : vector<24x32xf32>
    %57 = tpu.matmul %40, %55, %cst_28 {dimension_numbers = #tpu.dot_dimension_numbers<[1], [1], [0], [0], [0, 0, 1, 0], [], []>} : vector<24x32xf32>, vector<32x32xf32>, vector<24x32xf32> -> vector<24x32xf32>
    %58 = vector.broadcast %56 : vector<1x32xf32> to vector<24x32xf32>
    %59 = arith.addf %57, %58 : vector<24x32xf32>
    %60 = arith.index_cast %arg1 : i32 to index
    %61 = memref.load %arg2[%60] : memref<4xi32, #tpu.memory_space<smem>>
    %c17_i32_29 = arith.constant 17 : i32
    %62 = arith.addi %c17_i32_29, %61 : i32
    %63 = tpu.iota {dimensions = array<i32: 1>} : vector<24x24xi32>
    %64 = vector.broadcast %62 : i32 to vector<24x24xi32>
    %65 = arith.cmpi slt, %63, %64 : vector<24x24xi32>
    %cst_30 = arith.constant 0.000000e+00 : f32
    %cst_31 = arith.constant -1.000000e+30 : f32
    %66 = vector.broadcast %cst_30 : f32 to vector<24x24xf32>
    %67 = vector.broadcast %cst_31 : f32 to vector<24x24xf32>
    %68 = arith.select %65, %66, %67 : vector<24x24xi1>, vector<24x24xf32>
    %c0_32 = arith.constant 0 : index
    %c0_33 = arith.constant 0 : index
    %c0_34 = arith.constant 0 : index
    %69 = vector.load %arg12[%c0_32, %c0_33, %c0_34] : memref<1x32x32xf32, #tpu.memory_space<vmem>>, vector<1x32x32xf32>
    %70 = vector.shape_cast %69 : vector<1x32x32xf32> to vector<32x32xf32>
    %cst_35 = arith.constant 0.000000e+00 : f32
    %71 = vector.broadcast %cst_35 : f32 to vector<24x32xf32>
    %72 = vector.extract_strided_slice %49 {offsets = [0, 0], sizes = [24, 8], strides = [1, 1]} : vector<24x32xf32> to vector<24x8xf32>
    %73 = vector.extract_strided_slice %54 {offsets = [0, 0], sizes = [24, 8], strides = [1, 1]} : vector<24x32xf32> to vector<24x8xf32>
    %cst_36 = arith.constant dense<0.000000e+00> : vector<24x24xf32>
    %74 = tpu.matmul %72, %73, %cst_36 {dimension_numbers = #tpu.dot_dimension_numbers<[1], [1], [0], [0], [0, 0, 1, 0], [], []>} : vector<24x8xf32>, vector<24x8xf32>, vector<24x24xf32> -> vector<24x24xf32>
    %cst_37 = arith.constant 0.353553385 : f32
    %75 = vector.broadcast %cst_37 : f32 to vector<24x24xf32>
    %76 = arith.mulf %74, %75 : vector<24x24xf32>
    %77 = arith.addf %76, %68 : vector<24x24xf32>
    %cst_38 = arith.constant dense<0xFF800000> : vector<24xf32>
    %78 = vector.multi_reduction <maximumf>, %77, %cst_38 [1] : vector<24x24xf32> to vector<24xf32>
    %79 = vector.shape_cast %78 : vector<24xf32> to vector<24x1xf32>
    %80 = vector.broadcast %79 : vector<24x1xf32> to vector<24x24xf32>
    %81 = arith.subf %77, %80 : vector<24x24xf32>
    %82 = math.exp %81 : vector<24x24xf32>
    %cst_39 = arith.constant dense<0.000000e+00> : vector<24xf32>
    %83 = vector.multi_reduction <add>, %82, %cst_39 [1] : vector<24x24xf32> to vector<24xf32>
    %84 = vector.shape_cast %83 : vector<24xf32> to vector<24x1xf32>
    %85 = tpu.reciprocal %84 {approx = true} : vector<24x1xf32> -> vector<24x1xf32>
    %86 = vector.broadcast %85 : vector<24x1xf32> to vector<24x24xf32>
    %87 = arith.mulf %82, %86 : vector<24x24xf32>
    %88 = vector.extract_strided_slice %59 {offsets = [0, 0], sizes = [24, 8], strides = [1, 1]} : vector<24x32xf32> to vector<24x8xf32>
    %cst_40 = arith.constant dense<0.000000e+00> : vector<24x8xf32>
    %89 = tpu.matmul %87, %88, %cst_40 {dimension_numbers = #tpu.dot_dimension_numbers<[1], [0], [0], [1], [0, 0, 1, 1], [], []>} : vector<24x24xf32>, vector<24x8xf32>, vector<24x8xf32> -> vector<24x8xf32>
    %90 = vector.extract_strided_slice %70 {offsets = [0, 0], sizes = [32, 8], strides = [1, 1]} : vector<32x32xf32> to vector<32x8xf32>
    %cst_41 = arith.constant dense<0.000000e+00> : vector<24x32xf32>
    %91 = tpu.matmul %89, %90, %cst_41 {dimension_numbers = #tpu.dot_dimension_numbers<[1], [1], [0], [0], [0, 0, 1, 0], [], []>} : vector<24x8xf32>, vector<32x8xf32>, vector<24x32xf32> -> vector<24x32xf32>
    %92 = arith.addf %71, %91 : vector<24x32xf32>
    %93 = vector.extract_strided_slice %49 {offsets = [0, 8], sizes = [24, 8], strides = [1, 1]} : vector<24x32xf32> to vector<24x8xf32>
    %94 = vector.extract_strided_slice %54 {offsets = [0, 8], sizes = [24, 8], strides = [1, 1]} : vector<24x32xf32> to vector<24x8xf32>
    %cst_42 = arith.constant dense<0.000000e+00> : vector<24x24xf32>
    %95 = tpu.matmul %93, %94, %cst_42 {dimension_numbers = #tpu.dot_dimension_numbers<[1], [1], [0], [0], [0, 0, 1, 0], [], []>} : vector<24x8xf32>, vector<24x8xf32>, vector<24x24xf32> -> vector<24x24xf32>
    %cst_43 = arith.constant 0.353553385 : f32
    %96 = vector.broadcast %cst_43 : f32 to vector<24x24xf32>
    %97 = arith.mulf %95, %96 : vector<24x24xf32>
    %98 = arith.addf %97, %68 : vector<24x24xf32>
    %cst_44 = arith.constant dense<0xFF800000> : vector<24xf32>
    %99 = vector.multi_reduction <maximumf>, %98, %cst_44 [1] : vector<24x24xf32> to vector<24xf32>
    %100 = vector.shape_cast %99 : vector<24xf32> to vector<24x1xf32>
    %101 = vector.broadcast %100 : vector<24x1xf32> to vector<24x24xf32>
    %102 = arith.subf %98, %101 : vector<24x24xf32>
    %103 = math.exp %102 : vector<24x24xf32>
    %cst_45 = arith.constant dense<0.000000e+00> : vector<24xf32>
    %104 = vector.multi_reduction <add>, %103, %cst_45 [1] : vector<24x24xf32> to vector<24xf32>
    %105 = vector.shape_cast %104 : vector<24xf32> to vector<24x1xf32>
    %106 = tpu.reciprocal %105 {approx = true} : vector<24x1xf32> -> vector<24x1xf32>
    %107 = vector.broadcast %106 : vector<24x1xf32> to vector<24x24xf32>
    %108 = arith.mulf %103, %107 : vector<24x24xf32>
    %109 = vector.extract_strided_slice %59 {offsets = [0, 8], sizes = [24, 8], strides = [1, 1]} : vector<24x32xf32> to vector<24x8xf32>
    %cst_46 = arith.constant dense<0.000000e+00> : vector<24x8xf32>
    %110 = tpu.matmul %108, %109, %cst_46 {dimension_numbers = #tpu.dot_dimension_numbers<[1], [0], [0], [1], [0, 0, 1, 1], [], []>} : vector<24x24xf32>, vector<24x8xf32>, vector<24x8xf32> -> vector<24x8xf32>
    %111 = vector.extract_strided_slice %70 {offsets = [0, 8], sizes = [32, 8], strides = [1, 1]} : vector<32x32xf32> to vector<32x8xf32>
    %cst_47 = arith.constant dense<0.000000e+00> : vector<24x32xf32>
    %112 = tpu.matmul %110, %111, %cst_47 {dimension_numbers = #tpu.dot_dimension_numbers<[1], [1], [0], [0], [0, 0, 1, 0], [], []>} : vector<24x8xf32>, vector<32x8xf32>, vector<24x32xf32> -> vector<24x32xf32>
    %113 = arith.addf %92, %112 : vector<24x32xf32>
    %114 = vector.extract_strided_slice %49 {offsets = [0, 16], sizes = [24, 8], strides = [1, 1]} : vector<24x32xf32> to vector<24x8xf32>
    %115 = vector.extract_strided_slice %54 {offsets = [0, 16], sizes = [24, 8], strides = [1, 1]} : vector<24x32xf32> to vector<24x8xf32>
    %cst_48 = arith.constant dense<0.000000e+00> : vector<24x24xf32>
    %116 = tpu.matmul %114, %115, %cst_48 {dimension_numbers = #tpu.dot_dimension_numbers<[1], [1], [0], [0], [0, 0, 1, 0], [], []>} : vector<24x8xf32>, vector<24x8xf32>, vector<24x24xf32> -> vector<24x24xf32>
    %cst_49 = arith.constant 0.353553385 : f32
    %117 = vector.broadcast %cst_49 : f32 to vector<24x24xf32>
    %118 = arith.mulf %116, %117 : vector<24x24xf32>
    %119 = arith.addf %118, %68 : vector<24x24xf32>
    %cst_50 = arith.constant dense<0xFF800000> : vector<24xf32>
    %120 = vector.multi_reduction <maximumf>, %119, %cst_50 [1] : vector<24x24xf32> to vector<24xf32>
    %121 = vector.shape_cast %120 : vector<24xf32> to vector<24x1xf32>
    %122 = vector.broadcast %121 : vector<24x1xf32> to vector<24x24xf32>
    %123 = arith.subf %119, %122 : vector<24x24xf32>
    %124 = math.exp %123 : vector<24x24xf32>
    %cst_51 = arith.constant dense<0.000000e+00> : vector<24xf32>
    %125 = vector.multi_reduction <add>, %124, %cst_51 [1] : vector<24x24xf32> to vector<24xf32>
    %126 = vector.shape_cast %125 : vector<24xf32> to vector<24x1xf32>
    %127 = tpu.reciprocal %126 {approx = true} : vector<24x1xf32> -> vector<24x1xf32>
    %128 = vector.broadcast %127 : vector<24x1xf32> to vector<24x24xf32>
    %129 = arith.mulf %124, %128 : vector<24x24xf32>
    %130 = vector.extract_strided_slice %59 {offsets = [0, 16], sizes = [24, 8], strides = [1, 1]} : vector<24x32xf32> to vector<24x8xf32>
    %cst_52 = arith.constant dense<0.000000e+00> : vector<24x8xf32>
    %131 = tpu.matmul %129, %130, %cst_52 {dimension_numbers = #tpu.dot_dimension_numbers<[1], [0], [0], [1], [0, 0, 1, 1], [], []>} : vector<24x24xf32>, vector<24x8xf32>, vector<24x8xf32> -> vector<24x8xf32>
    %132 = vector.extract_strided_slice %70 {offsets = [0, 16], sizes = [32, 8], strides = [1, 1]} : vector<32x32xf32> to vector<32x8xf32>
    %cst_53 = arith.constant dense<0.000000e+00> : vector<24x32xf32>
    %133 = tpu.matmul %131, %132, %cst_53 {dimension_numbers = #tpu.dot_dimension_numbers<[1], [1], [0], [0], [0, 0, 1, 0], [], []>} : vector<24x8xf32>, vector<32x8xf32>, vector<24x32xf32> -> vector<24x32xf32>
    %134 = arith.addf %113, %133 : vector<24x32xf32>
    %135 = vector.extract_strided_slice %49 {offsets = [0, 24], sizes = [24, 8], strides = [1, 1]} : vector<24x32xf32> to vector<24x8xf32>
    %136 = vector.extract_strided_slice %54 {offsets = [0, 24], sizes = [24, 8], strides = [1, 1]} : vector<24x32xf32> to vector<24x8xf32>
    %cst_54 = arith.constant dense<0.000000e+00> : vector<24x24xf32>
    %137 = tpu.matmul %135, %136, %cst_54 {dimension_numbers = #tpu.dot_dimension_numbers<[1], [1], [0], [0], [0, 0, 1, 0], [], []>} : vector<24x8xf32>, vector<24x8xf32>, vector<24x24xf32> -> vector<24x24xf32>
    %cst_55 = arith.constant 0.353553385 : f32
    %138 = vector.broadcast %cst_55 : f32 to vector<24x24xf32>
    %139 = arith.mulf %137, %138 : vector<24x24xf32>
    %140 = arith.addf %139, %68 : vector<24x24xf32>
    %cst_56 = arith.constant dense<0xFF800000> : vector<24xf32>
    %141 = vector.multi_reduction <maximumf>, %140, %cst_56 [1] : vector<24x24xf32> to vector<24xf32>
    %142 = vector.shape_cast %141 : vector<24xf32> to vector<24x1xf32>
    %143 = vector.broadcast %142 : vector<24x1xf32> to vector<24x24xf32>
    %144 = arith.subf %140, %143 : vector<24x24xf32>
    %145 = math.exp %144 : vector<24x24xf32>
    %cst_57 = arith.constant dense<0.000000e+00> : vector<24xf32>
    %146 = vector.multi_reduction <add>, %145, %cst_57 [1] : vector<24x24xf32> to vector<24xf32>
    %147 = vector.shape_cast %146 : vector<24xf32> to vector<24x1xf32>
    %148 = tpu.reciprocal %147 {approx = true} : vector<24x1xf32> -> vector<24x1xf32>
    %149 = vector.broadcast %148 : vector<24x1xf32> to vector<24x24xf32>
    %150 = arith.mulf %145, %149 : vector<24x24xf32>
    %151 = vector.extract_strided_slice %59 {offsets = [0, 24], sizes = [24, 8], strides = [1, 1]} : vector<24x32xf32> to vector<24x8xf32>
    %cst_58 = arith.constant dense<0.000000e+00> : vector<24x8xf32>
    %152 = tpu.matmul %150, %151, %cst_58 {dimension_numbers = #tpu.dot_dimension_numbers<[1], [0], [0], [1], [0, 0, 1, 1], [], []>} : vector<24x24xf32>, vector<24x8xf32>, vector<24x8xf32> -> vector<24x8xf32>
    %153 = vector.extract_strided_slice %70 {offsets = [0, 24], sizes = [32, 8], strides = [1, 1]} : vector<32x32xf32> to vector<32x8xf32>
    %cst_59 = arith.constant dense<0.000000e+00> : vector<24x32xf32>
    %154 = tpu.matmul %152, %153, %cst_59 {dimension_numbers = #tpu.dot_dimension_numbers<[1], [1], [0], [0], [0, 0, 1, 0], [], []>} : vector<24x8xf32>, vector<32x8xf32>, vector<24x32xf32> -> vector<24x32xf32>
    %155 = arith.addf %134, %154 : vector<24x32xf32>
    %c0_60 = arith.constant 0 : index
    %c0_61 = arith.constant 0 : index
    %c0_62 = arith.constant 0 : index
    %156 = vector.load %arg13[%c0_60, %c0_61, %c0_62] : memref<1x1x32xf32, #tpu.memory_space<vmem>>, vector<1x1x32xf32>
    %157 = vector.shape_cast %156 : vector<1x1x32xf32> to vector<1x32xf32>
    %158 = vector.broadcast %157 : vector<1x32xf32> to vector<24x32xf32>
    %159 = arith.addf %155, %158 : vector<24x32xf32>
    %160 = arith.addf %3, %159 : vector<24x32xf32>
    %c0_63 = arith.constant 0 : index
    %c0_64 = arith.constant 0 : index
    %c0_65 = arith.constant 0 : index
    %161 = vector.load %arg14[%c0_63, %c0_64, %c0_65] : memref<1x1x32xf32, #tpu.memory_space<vmem>>, vector<1x1x32xf32>
    %162 = vector.shape_cast %161 : vector<1x1x32xf32> to vector<1x32xf32>
    %c0_66 = arith.constant 0 : index
    %c0_67 = arith.constant 0 : index
    %c0_68 = arith.constant 0 : index
    %163 = vector.load %arg15[%c0_66, %c0_67, %c0_68] : memref<1x1x32xf32, #tpu.memory_space<vmem>>, vector<1x1x32xf32>
    %164 = vector.shape_cast %163 : vector<1x1x32xf32> to vector<1x32xf32>
    %cst_69 = arith.constant dense<0.000000e+00> : vector<24xf32>
    %165 = vector.multi_reduction <add>, %160, %cst_69 [1] : vector<24x32xf32> to vector<24xf32>
    %166 = vector.shape_cast %165 : vector<24xf32> to vector<24x1xf32>
    %cst_70 = arith.constant 3.200000e+01 : f32
    %167 = vector.broadcast %cst_70 : f32 to vector<24x1xf32>
    %168 = arith.divf %166, %167 : vector<24x1xf32>
    %169 = vector.broadcast %168 : vector<24x1xf32> to vector<24x32xf32>
    %170 = arith.subf %160, %169 : vector<24x32xf32>
    %171 = vector.broadcast %168 : vector<24x1xf32> to vector<24x32xf32>
    %172 = arith.subf %160, %171 : vector<24x32xf32>
    %173 = arith.mulf %170, %172 : vector<24x32xf32>
    %cst_71 = arith.constant dense<0.000000e+00> : vector<24xf32>
    %174 = vector.multi_reduction <add>, %173, %cst_71 [1] : vector<24x32xf32> to vector<24xf32>
    %175 = vector.shape_cast %174 : vector<24xf32> to vector<24x1xf32>
    %cst_72 = arith.constant 3.200000e+01 : f32
    %176 = vector.broadcast %cst_72 : f32 to vector<24x1xf32>
    %177 = arith.divf %175, %176 : vector<24x1xf32>
    %178 = vector.broadcast %168 : vector<24x1xf32> to vector<24x32xf32>
    %179 = arith.subf %160, %178 : vector<24x32xf32>
    %cst_73 = arith.constant 9.99999997E-7 : f32
    %180 = vector.broadcast %cst_73 : f32 to vector<24x1xf32>
    %181 = arith.addf %177, %180 : vector<24x1xf32>
    %182 = math.rsqrt %181 : vector<24x1xf32>
    %183 = vector.broadcast %182 : vector<24x1xf32> to vector<24x32xf32>
    %184 = arith.mulf %179, %183 : vector<24x32xf32>
    %185 = vector.broadcast %162 : vector<1x32xf32> to vector<24x32xf32>
    %186 = arith.mulf %184, %185 : vector<24x32xf32>
    %187 = vector.broadcast %164 : vector<1x32xf32> to vector<24x32xf32>
    %188 = arith.addf %186, %187 : vector<24x32xf32>
    %c0_74 = arith.constant 0 : index
    %c0_75 = arith.constant 0 : index
    %c0_76 = arith.constant 0 : index
    %189 = vector.load %arg16[%c0_74, %c0_75, %c0_76] : memref<1x128x32xf32, #tpu.memory_space<vmem>>, vector<1x128x32xf32>
    %190 = vector.shape_cast %189 : vector<1x128x32xf32> to vector<128x32xf32>
    %c0_77 = arith.constant 0 : index
    %c0_78 = arith.constant 0 : index
    %c0_79 = arith.constant 0 : index
    %191 = vector.load %arg17[%c0_77, %c0_78, %c0_79] : memref<1x1x128xf32, #tpu.memory_space<vmem>>, vector<1x1x128xf32>
    %192 = vector.shape_cast %191 : vector<1x1x128xf32> to vector<1x128xf32>
    %cst_80 = arith.constant dense<0.000000e+00> : vector<24x128xf32>
    %193 = tpu.matmul %188, %190, %cst_80 {dimension_numbers = #tpu.dot_dimension_numbers<[1], [1], [0], [0], [0, 0, 1, 0], [], []>} : vector<24x32xf32>, vector<128x32xf32>, vector<24x128xf32> -> vector<24x128xf32>
    %194 = vector.broadcast %192 : vector<1x128xf32> to vector<24x128xf32>
    %195 = arith.addf %193, %194 : vector<24x128xf32>
    %cst_81 = arith.constant 5.000000e-01 : f32
    %196 = vector.broadcast %cst_81 : f32 to vector<24x128xf32>
    %197 = arith.mulf %196, %195 : vector<24x128xf32>
    %cst_82 = arith.constant 0.707106769 : f32
    %198 = vector.broadcast %cst_82 : f32 to vector<24x128xf32>
    %199 = arith.mulf %195, %198 : vector<24x128xf32>
    %cst_83 = arith.constant 0.000000e+00 : f32
    %200 = vector.broadcast %cst_83 : f32 to vector<24x128xf32>
    %201 = arith.cmpf oge, %199, %200 : vector<24x128xf32>
    %cst_84 = arith.constant 1.000000e+00 : f32
    %cst_85 = arith.constant -1.000000e+00 : f32
    %202 = vector.broadcast %cst_84 : f32 to vector<24x128xf32>
    %203 = vector.broadcast %cst_85 : f32 to vector<24x128xf32>
    %204 = arith.select %201, %202, %203 : vector<24x128xi1>, vector<24x128xf32>
    %205 = math.absf %199 : vector<24x128xf32>
    %cst_86 = arith.constant 0.327591091 : f32
    %206 = vector.broadcast %cst_86 : f32 to vector<24x128xf32>
    %207 = arith.mulf %206, %205 : vector<24x128xf32>
    %cst_87 = arith.constant 1.000000e+00 : f32
    %208 = vector.broadcast %cst_87 : f32 to vector<24x128xf32>
    %209 = arith.addf %208, %207 : vector<24x128xf32>
    %cst_88 = arith.constant 1.000000e+00 : f32
    %210 = vector.broadcast %cst_88 : f32 to vector<24x128xf32>
    %211 = arith.divf %210, %209 : vector<24x128xf32>
    %cst_89 = arith.constant 1.06140542 : f32
    %212 = vector.broadcast %cst_89 : f32 to vector<24x128xf32>
    %213 = arith.mulf %212, %211 : vector<24x128xf32>
    %cst_90 = arith.constant -1.45315206 : f32
    %214 = vector.broadcast %cst_90 : f32 to vector<24x128xf32>
    %215 = arith.addf %213, %214 : vector<24x128xf32>
    %216 = arith.mulf %215, %211 : vector<24x128xf32>
    %cst_91 = arith.constant 1.42141378 : f32
    %217 = vector.broadcast %cst_91 : f32 to vector<24x128xf32>
    %218 = arith.addf %216, %217 : vector<24x128xf32>
    %219 = arith.mulf %218, %211 : vector<24x128xf32>
    %cst_92 = arith.constant -0.284496725 : f32
    %220 = vector.broadcast %cst_92 : f32 to vector<24x128xf32>
    %221 = arith.addf %219, %220 : vector<24x128xf32>
    %222 = arith.mulf %221, %211 : vector<24x128xf32>
    %cst_93 = arith.constant 0.254829586 : f32
    %223 = vector.broadcast %cst_93 : f32 to vector<24x128xf32>
    %224 = arith.addf %222, %223 : vector<24x128xf32>
    %225 = arith.mulf %224, %211 : vector<24x128xf32>
    %cst_94 = arith.constant 0.000000e+00 : f32
    %226 = vector.broadcast %cst_94 : f32 to vector<24x128xf32>
    %227 = arith.subf %226, %205 : vector<24x128xf32>
    %228 = arith.mulf %227, %205 : vector<24x128xf32>
    %229 = math.exp %228 : vector<24x128xf32>
    %230 = arith.mulf %225, %229 : vector<24x128xf32>
    %cst_95 = arith.constant 1.000000e+00 : f32
    %231 = vector.broadcast %cst_95 : f32 to vector<24x128xf32>
    %232 = arith.subf %231, %230 : vector<24x128xf32>
    %233 = arith.mulf %204, %232 : vector<24x128xf32>
    %cst_96 = arith.constant 1.000000e+00 : f32
    %234 = vector.broadcast %cst_96 : f32 to vector<24x128xf32>
    %235 = arith.addf %234, %233 : vector<24x128xf32>
    %236 = arith.mulf %197, %235 : vector<24x128xf32>
    %c0_97 = arith.constant 0 : index
    %c0_98 = arith.constant 0 : index
    %c0_99 = arith.constant 0 : index
    %237 = vector.load %arg18[%c0_97, %c0_98, %c0_99] : memref<1x32x128xf32, #tpu.memory_space<vmem>>, vector<1x32x128xf32>
    %238 = vector.shape_cast %237 : vector<1x32x128xf32> to vector<32x128xf32>
    %c0_100 = arith.constant 0 : index
    %c0_101 = arith.constant 0 : index
    %c0_102 = arith.constant 0 : index
    %239 = vector.load %arg19[%c0_100, %c0_101, %c0_102] : memref<1x1x32xf32, #tpu.memory_space<vmem>>, vector<1x1x32xf32>
    %240 = vector.shape_cast %239 : vector<1x1x32xf32> to vector<1x32xf32>
    %cst_103 = arith.constant dense<0.000000e+00> : vector<24x32xf32>
    %241 = tpu.matmul %236, %238, %cst_103 {dimension_numbers = #tpu.dot_dimension_numbers<[1], [1], [0], [0], [0, 0, 1, 0], [], []>} : vector<24x128xf32>, vector<32x128xf32>, vector<24x32xf32> -> vector<24x32xf32>
    %242 = vector.broadcast %240 : vector<1x32xf32> to vector<24x32xf32>
    %243 = arith.addf %241, %242 : vector<24x32xf32>
    %244 = arith.addf %160, %243 : vector<24x32xf32>
    %c0_104 = arith.constant 0 : index
    %c0_105 = arith.constant 0 : index
    %245 = vector.load %arg28[%c0_104, %c0_105] : memref<24x32xf32, #tpu.memory_space<vmem>>, vector<24x32xf32>
    tpu.vector_store %arg28[%c0_104, %c0_105], %244 {strides = array<i32>} : memref<24x32xf32, #tpu.memory_space<vmem>>, vector<24x32xf32>,
    %c3_i32 = arith.constant 3 : i32
    %246 = arith.cmpi eq, %arg1, %c3_i32 : i32
    %247 = arith.extui %246 : i1 to i32
    %c0_i32_106 = arith.constant 0 : i32
    %248 = arith.cmpi ne, %247, %c0_i32_106 : i32
    scf.if %248 {
      %c0_107 = arith.constant 0 : index
      %c0_108 = arith.constant 0 : index
      %249 = vector.load %arg28[%c0_107, %c0_108] : memref<24x32xf32, #tpu.memory_space<vmem>>, vector<24x32xf32>
      %c0_109 = arith.constant 0 : index
      %c0_110 = arith.constant 0 : index
      %250 = vector.load %arg20[%c0_109, %c0_110] : memref<1x32xf32, #tpu.memory_space<vmem>>, vector<1x32xf32>
      %c0_111 = arith.constant 0 : index
      %c0_112 = arith.constant 0 : index
      %251 = vector.load %arg21[%c0_111, %c0_112] : memref<1x32xf32, #tpu.memory_space<vmem>>, vector<1x32xf32>
      %cst_113 = arith.constant dense<0.000000e+00> : vector<24xf32>
      %252 = vector.multi_reduction <add>, %249, %cst_113 [1] : vector<24x32xf32> to vector<24xf32>
      %253 = vector.shape_cast %252 : vector<24xf32> to vector<24x1xf32>
      %cst_114 = arith.constant 3.200000e+01 : f32
      %254 = vector.broadcast %cst_114 : f32 to vector<24x1xf32>
      %255 = arith.divf %253, %254 : vector<24x1xf32>
      %256 = vector.broadcast %255 : vector<24x1xf32> to vector<24x32xf32>
      %257 = arith.subf %249, %256 : vector<24x32xf32>
      %258 = vector.broadcast %255 : vector<24x1xf32> to vector<24x32xf32>
      %259 = arith.subf %249, %258 : vector<24x32xf32>
      %260 = arith.mulf %257, %259 : vector<24x32xf32>
      %cst_115 = arith.constant dense<0.000000e+00> : vector<24xf32>
      %261 = vector.multi_reduction <add>, %260, %cst_115 [1] : vector<24x32xf32> to vector<24xf32>
      %262 = vector.shape_cast %261 : vector<24xf32> to vector<24x1xf32>
      %cst_116 = arith.constant 3.200000e+01 : f32
      %263 = vector.broadcast %cst_116 : f32 to vector<24x1xf32>
      %264 = arith.divf %262, %263 : vector<24x1xf32>
      %265 = vector.broadcast %255 : vector<24x1xf32> to vector<24x32xf32>
      %266 = arith.subf %249, %265 : vector<24x32xf32>
      %cst_117 = arith.constant 9.99999997E-7 : f32
      %267 = vector.broadcast %cst_117 : f32 to vector<24x1xf32>
      %268 = arith.addf %264, %267 : vector<24x1xf32>
      %269 = math.rsqrt %268 : vector<24x1xf32>
      %270 = vector.broadcast %269 : vector<24x1xf32> to vector<24x32xf32>
      %271 = arith.mulf %266, %270 : vector<24x32xf32>
      %272 = vector.broadcast %250 : vector<1x32xf32> to vector<24x32xf32>
      %273 = arith.mulf %271, %272 : vector<24x32xf32>
      %274 = vector.broadcast %251 : vector<1x32xf32> to vector<24x32xf32>
      %275 = arith.addf %273, %274 : vector<24x32xf32>
      %c0_118 = arith.constant 0 : index
      %c0_119 = arith.constant 0 : index
      %c0_120 = arith.constant 0 : index
      %276 = vector.load %arg25[%c0_118, %c0_119, %c0_120] : memref<1x24x32xf32, #tpu.memory_space<vmem>>, vector<1x24x32xf32>
      %277 = vector.shape_cast %276 : vector<1x24x32xf32> to vector<24x32xf32>
      %278 = vector.shape_cast %275 : vector<24x32xf32> to vector<1x24x32xf32>
      tpu.vector_store %arg25[%c0_118, %c0_119, %c0_120], %278 {strides = array<i32>} : memref<1x24x32xf32, #tpu.memory_space<vmem>>, vector<1x24x32xf32>,
      %279 = vector.extract_strided_slice %275 {offsets = [0, 0], sizes = [1, 32], strides = [1, 1]} : vector<24x32xf32> to vector<1x32xf32>
      %280 = arith.mulf %279, %279 : vector<1x32xf32>
      %cst_121 = arith.constant dense<0.000000e+00> : vector<1xf32>
      %281 = vector.multi_reduction <add>, %280, %cst_121 [1] : vector<1x32xf32> to vector<1xf32>
      %282 = vector.shape_cast %281 : vector<1xf32> to vector<1x1xf32>
      %283 = math.sqrt %282 : vector<1x1xf32>
      %cst_122 = arith.constant 9.99999996E-13 : f32
      %284 = vector.broadcast %cst_122 : f32 to vector<1x1xf32>
      %285 = arith.maximumf %283, %284 : vector<1x1xf32>
      %286 = vector.broadcast %285 : vector<1x1xf32> to vector<1x32xf32>
      %287 = arith.divf %279, %286 : vector<1x32xf32>
      %c0_123 = arith.constant 0 : index
      %c0_124 = arith.constant 0 : index
      %288 = vector.load %arg22[%c0_123, %c0_124] : memref<3x32xf32, #tpu.memory_space<vmem>>, vector<3x32xf32>
      %289 = arith.mulf %288, %288 : vector<3x32xf32>
      %cst_125 = arith.constant dense<0.000000e+00> : vector<3xf32>
      %290 = vector.multi_reduction <add>, %289, %cst_125 [1] : vector<3x32xf32> to vector<3xf32>
      %291 = vector.shape_cast %290 : vector<3xf32> to vector<3x1xf32>
      %292 = math.sqrt %291 : vector<3x1xf32>
      %cst_126 = arith.constant 9.99999996E-13 : f32
      %293 = vector.broadcast %cst_126 : f32 to vector<3x1xf32>
      %294 = arith.maximumf %292, %293 : vector<3x1xf32>
      %295 = vector.broadcast %294 : vector<3x1xf32> to vector<3x32xf32>
      %296 = arith.divf %288, %295 : vector<3x32xf32>
      %cst_127 = arith.constant dense<0.000000e+00> : vector<1x3xf32>
      %297 = tpu.matmul %287, %296, %cst_127 {dimension_numbers = #tpu.dot_dimension_numbers<[1], [1], [0], [0], [0, 0, 1, 0], [], []>} : vector<1x32xf32>, vector<3x32xf32>, vector<1x3xf32> -> vector<1x3xf32>
      %c0_128 = arith.constant 0 : index
      %c0_129 = arith.constant 0 : index
      %c0_130 = arith.constant 0 : index
      %298 = vector.load %arg26[%c0_128, %c0_129, %c0_130] : memref<1x1x3xf32, #tpu.memory_space<vmem>>, vector<1x1x3xf32>
      %299 = vector.shape_cast %298 : vector<1x1x3xf32> to vector<1x3xf32>
      %300 = vector.shape_cast %297 : vector<1x3xf32> to vector<1x1x3xf32>
      tpu.vector_store %arg26[%c0_128, %c0_129, %c0_130], %300 {strides = array<i32>} : memref<1x1x3xf32, #tpu.memory_space<vmem>>, vector<1x1x3xf32>,
      %c0_131 = arith.constant 0 : index
      %c0_132 = arith.constant 0 : index
      %301 = vector.load %arg23[%c0_131, %c0_132] : memref<10x32xf32, #tpu.memory_space<vmem>>, vector<10x32xf32>
      %c0_133 = arith.constant 0 : index
      %c0_134 = arith.constant 0 : index
      %302 = vector.load %arg24[%c0_133, %c0_134] : memref<1x10xf32, #tpu.memory_space<vmem>>, vector<1x10xf32>
      %cst_135 = arith.constant dense<0.000000e+00> : vector<1x10xf32>
      %303 = tpu.matmul %279, %301, %cst_135 {dimension_numbers = #tpu.dot_dimension_numbers<[1], [1], [0], [0], [0, 0, 1, 0], [], []>} : vector<1x32xf32>, vector<10x32xf32>, vector<1x10xf32> -> vector<1x10xf32>
      %304 = arith.addf %303, %302 : vector<1x10xf32>
      %c0_136 = arith.constant 0 : index
      %c0_137 = arith.constant 0 : index
      %c0_138 = arith.constant 0 : index
      %305 = vector.load %arg27[%c0_136, %c0_137, %c0_138] : memref<1x1x10xf32, #tpu.memory_space<vmem>>, vector<1x1x10xf32>
      %306 = vector.shape_cast %305 : vector<1x1x10xf32> to vector<1x10xf32>
      %307 = vector.shape_cast %304 : vector<1x10xf32> to vector<1x1x10xf32>
      tpu.vector_store %arg27[%c0_136, %c0_137, %c0_138], %307 {strides = array<i32>} : memref<1x1x10xf32, #tpu.memory_space<vmem>>, vector<1x1x10xf32>,
    } else {
    }
    return
  }
  func.func @transform_0(%arg0: i32, %arg1: i32, %arg2: memref<4xi32, #tpu.memory_space<smem>>) -> (i32, i32, i32) {
    %c0_i32 = arith.constant 0 : i32
    %c0_i32_0 = arith.constant 0 : i32
    %c0_i32_1 = arith.constant 0 : i32
    return %arg0, %c0_i32, %c0_i32_0 : i32, i32, i32
  }
  func.func @transform_1(%arg0: i32, %arg1: i32, %arg2: memref<4xi32, #tpu.memory_space<smem>>) -> (i32, i32) {
    %c0_i32 = arith.constant 0 : i32
    %c0_i32_0 = arith.constant 0 : i32
    %c0_i32_1 = arith.constant 0 : i32
    return %c0_i32, %c0_i32_0 : i32, i32
  }
  func.func @transform_2(%arg0: i32, %arg1: i32, %arg2: memref<4xi32, #tpu.memory_space<smem>>) -> (i32, i32) {
    %c0_i32 = arith.constant 0 : i32
    %c0_i32_0 = arith.constant 0 : i32
    %c0_i32_1 = arith.constant 0 : i32
    return %c0_i32, %c0_i32_0 : i32, i32
  }
  func.func @transform_3(%arg0: i32, %arg1: i32, %arg2: memref<4xi32, #tpu.memory_space<smem>>) -> (i32, i32, i32, i32) {
    %c0_i32 = arith.constant 0 : i32
    %c0_i32_0 = arith.constant 0 : i32
    %c0_i32_1 = arith.constant 0 : i32
    return %arg0, %arg1, %c0_i32, %c0_i32_0 : i32, i32, i32, i32
  }
  func.func @transform_4(%arg0: i32, %arg1: i32, %arg2: memref<4xi32, #tpu.memory_space<smem>>) -> (i32, i32, i32, i32) {
    %c0_i32 = arith.constant 0 : i32
    %c0_i32_0 = arith.constant 0 : i32
    %c0_i32_1 = arith.constant 0 : i32
    return %arg0, %arg1, %c0_i32, %c0_i32_0 : i32, i32, i32, i32
  }
  func.func @transform_5(%arg0: i32, %arg1: i32, %arg2: memref<4xi32, #tpu.memory_space<smem>>) -> (i32, i32, i32) {
    %c0_i32 = arith.constant 0 : i32
    %c0_i32_0 = arith.constant 0 : i32
    %c0_i32_1 = arith.constant 0 : i32
    return %arg1, %c0_i32, %c0_i32_0 : i32, i32, i32
  }
  func.func @transform_6(%arg0: i32, %arg1: i32, %arg2: memref<4xi32, #tpu.memory_space<smem>>) -> (i32, i32, i32) {
    %c0_i32 = arith.constant 0 : i32
    %c0_i32_0 = arith.constant 0 : i32
    %c0_i32_1 = arith.constant 0 : i32
    return %arg1, %c0_i32, %c0_i32_0 : i32, i32, i32
  }
  func.func @transform_7(%arg0: i32, %arg1: i32, %arg2: memref<4xi32, #tpu.memory_space<smem>>) -> (i32, i32, i32) {
    %c0_i32 = arith.constant 0 : i32
    %c0_i32_0 = arith.constant 0 : i32
    %c0_i32_1 = arith.constant 0 : i32
    return %arg1, %c0_i32, %c0_i32_0 : i32, i32, i32
  }
  func.func @transform_8(%arg0: i32, %arg1: i32, %arg2: memref<4xi32, #tpu.memory_space<smem>>) -> (i32, i32, i32) {
    %c0_i32 = arith.constant 0 : i32
    %c0_i32_0 = arith.constant 0 : i32
    %c0_i32_1 = arith.constant 0 : i32
    return %arg1, %c0_i32, %c0_i32_0 : i32, i32, i32
  }
  func.func @transform_9(%arg0: i32, %arg1: i32, %arg2: memref<4xi32, #tpu.memory_space<smem>>) -> (i32, i32, i32) {
    %c0_i32 = arith.constant 0 : i32
    %c0_i32_0 = arith.constant 0 : i32
    %c0_i32_1 = arith.constant 0 : i32
    return %arg1, %c0_i32, %c0_i32_0 : i32, i32, i32
  }
  func.func @transform_10(%arg0: i32, %arg1: i32, %arg2: memref<4xi32, #tpu.memory_space<smem>>) -> (i32, i32, i32) {
    %c0_i32 = arith.constant 0 : i32
    %c0_i32_0 = arith.constant 0 : i32
    %c0_i32_1 = arith.constant 0 : i32
    return %arg1, %c0_i32, %c0_i32_0 : i32, i32, i32
  }
  func.func @transform_11(%arg0: i32, %arg1: i32, %arg2: memref<4xi32, #tpu.memory_space<smem>>) -> (i32, i32, i32) {
    %c0_i32 = arith.constant 0 : i32
    %c0_i32_0 = arith.constant 0 : i32
    %c0_i32_1 = arith.constant 0 : i32
    return %arg1, %c0_i32, %c0_i32_0 : i32, i32, i32
  }
  func.func @transform_12(%arg0: i32, %arg1: i32, %arg2: memref<4xi32, #tpu.memory_space<smem>>) -> (i32, i32, i32) {
    %c0_i32 = arith.constant 0 : i32
    %c0_i32_0 = arith.constant 0 : i32
    %c0_i32_1 = arith.constant 0 : i32
    return %arg1, %c0_i32, %c0_i32_0 : i32, i32, i32
  }
  func.func @transform_13(%arg0: i32, %arg1: i32, %arg2: memref<4xi32, #tpu.memory_space<smem>>) -> (i32, i32, i32) {
    %c0_i32 = arith.constant 0 : i32
    %c0_i32_0 = arith.constant 0 : i32
    %c0_i32_1 = arith.constant 0 : i32
    return %arg1, %c0_i32, %c0_i32_0 : i32, i32, i32
  }
  func.func @transform_14(%arg0: i32, %arg1: i32, %arg2: memref<4xi32, #tpu.memory_space<smem>>) -> (i32, i32, i32) {
    %c0_i32 = arith.constant 0 : i32
    %c0_i32_0 = arith.constant 0 : i32
    %c0_i32_1 = arith.constant 0 : i32
    return %arg1, %c0_i32, %c0_i32_0 : i32, i32, i32
  }
  func.func @transform_15(%arg0: i32, %arg1: i32, %arg2: memref<4xi32, #tpu.memory_space<smem>>) -> (i32, i32, i32) {
    %c0_i32 = arith.constant 0 : i32
    %c0_i32_0 = arith.constant 0 : i32
    %c0_i32_1 = arith.constant 0 : i32
    return %arg1, %c0_i32, %c0_i32_0 : i32, i32, i32
  }
  func.func @transform_16(%arg0: i32, %arg1: i32, %arg2: memref<4xi32, #tpu.memory_space<smem>>) -> (i32, i32, i32) {
    %c0_i32 = arith.constant 0 : i32
    %c0_i32_0 = arith.constant 0 : i32
    %c0_i32_1 = arith.constant 0 : i32
    return %arg1, %c0_i32, %c0_i32_0 : i32, i32, i32
  }
  func.func @transform_17(%arg0: i32, %arg1: i32, %arg2: memref<4xi32, #tpu.memory_space<smem>>) -> (i32, i32) {
    %c0_i32 = arith.constant 0 : i32
    %c0_i32_0 = arith.constant 0 : i32
    %c0_i32_1 = arith.constant 0 : i32
    return %c0_i32, %c0_i32_0 : i32, i32
  }
  func.func @transform_18(%arg0: i32, %arg1: i32, %arg2: memref<4xi32, #tpu.memory_space<smem>>) -> (i32, i32) {
    %c0_i32 = arith.constant 0 : i32
    %c0_i32_0 = arith.constant 0 : i32
    %c0_i32_1 = arith.constant 0 : i32
    return %c0_i32, %c0_i32_0 : i32, i32
  }
  func.func @transform_19(%arg0: i32, %arg1: i32, %arg2: memref<4xi32, #tpu.memory_space<smem>>) -> (i32, i32) {
    %c0_i32 = arith.constant 0 : i32
    %c0_i32_0 = arith.constant 0 : i32
    %c0_i32_1 = arith.constant 0 : i32
    return %c0_i32, %c0_i32_0 : i32, i32
  }
  func.func @transform_20(%arg0: i32, %arg1: i32, %arg2: memref<4xi32, #tpu.memory_space<smem>>) -> (i32, i32) {
    %c0_i32 = arith.constant 0 : i32
    %c0_i32_0 = arith.constant 0 : i32
    %c0_i32_1 = arith.constant 0 : i32
    return %c0_i32, %c0_i32_0 : i32, i32
  }
  func.func @transform_21(%arg0: i32, %arg1: i32, %arg2: memref<4xi32, #tpu.memory_space<smem>>) -> (i32, i32) {
    %c0_i32 = arith.constant 0 : i32
    %c0_i32_0 = arith.constant 0 : i32
    %c0_i32_1 = arith.constant 0 : i32
    return %c0_i32, %c0_i32_0 : i32, i32
  }
  func.func @transform_22(%arg0: i32, %arg1: i32, %arg2: memref<4xi32, #tpu.memory_space<smem>>) -> (i32, i32, i32) {
    %c0_i32 = arith.constant 0 : i32
    %c0_i32_0 = arith.constant 0 : i32
    %c0_i32_1 = arith.constant 0 : i32
    return %arg0, %c0_i32, %c0_i32_0 : i32, i32, i32
  }
  func.func @transform_23(%arg0: i32, %arg1: i32, %arg2: memref<4xi32, #tpu.memory_space<smem>>) -> (i32, i32, i32) {
    %c0_i32 = arith.constant 0 : i32
    %c0_i32_0 = arith.constant 0 : i32
    %c0_i32_1 = arith.constant 0 : i32
    return %arg0, %c0_i32, %c0_i32_0 : i32, i32, i32
  }
  func.func @transform_24(%arg0: i32, %arg1: i32, %arg2: memref<4xi32, #tpu.memory_space<smem>>) -> (i32, i32, i32) {
    %c0_i32 = arith.constant 0 : i32
    %c0_i32_0 = arith.constant 0 : i32
    %c0_i32_1 = arith.constant 0 : i32
    return %arg0, %c0_i32, %c0_i32_0 : i32, i32, i32
  }
}

</mosaic_0001>

<bundles_post_ra>
// kernel: _lambda_.3
= control target key start
LH: loop header
LB: loop body
LE: loop exit
PB: predicated region body
PF: predicated region fallthrough
CT: control target
= control target key end

     0   :  { %s3505_s30 = smov [#allocation4]   ;;  %s4471_s0 = inlined_call_operand.vmem [shape: s32[4], index: 0, kind: input, shape index: {}]   ;;  %s4472_s1 = inlined_call_operand.vmem [shape: f32[2,24,48], index: 1, kind: input, shape index: {}]   ;;  %s4473_s2 = inlined_call_operand.vmem [shape: f32[24,32], index: 2, kind: input, shape index: {}]   ;;  %s4474_s3 = inlined_call_operand.vmem [shape: f32[32,48], index: 3, kind: input, shape index: {}]   ;;  %s4475_s4 = inlined_call_operand.vmem [shape: f32[2,4,24,32], index: 4, kind: input, shape index: {}]   ;;  %s4476_s5 = inlined_call_operand.vmem [shape: f32[2,4,24,32], index: 5, kind: input, shape index: {}]   ;;  %s4477_s6 = inlined_call_operand.vmem [shape: f32[4,1,32], index: 6, kind: input, shape index: {}]   ;;  %s4478_s7 = inlined_call_operand.vmem [shape: f32[4,1,32], index: 7, kind: input, shape index: {}]   ;;  %s4479_s8 = inlined_call_operand.vmem [shape: f32[4,96,32], index: 8, kind: input, shape index: {}]   ;;  %s4480_s9 = inlined_call_operand.vmem [shape: f32[4,1,96], index: 9, kind: input, shape index: {}]   ;;  %s4481_s10 = inlined_call_operand.vmem [shape: f32[4,32,32], index: 10, kind: input, shape index: {}]   ;;  %s4482_s11 = inlined_call_operand.vmem [shape: f32[4,1,32], index: 11, kind: input, shape index: {}]   ;;  %s4483_s12 = inlined_call_operand.vmem [shape: f32[4,1,32], index: 12, kind: input, shape index: {}]   ;;  %s4484_s13 = inlined_call_operand.vmem [shape: f32[4,1,32], index: 13, kind: input, shape index: {}]   ;;  %s4485_s14 = inlined_call_operand.vmem [shape: f32[4,128,32], index: 14, kind: input, shape index: {}]   ;;  %s4486_s15 = inlined_call_operand.vmem [shape: f32[4,1,128], index: 15, kind: input, shape index: {}]   ;;  %s4487_s16 = inlined_call_operand.vmem [shape: f32[4,32,128], index: 16, kind: input, shape index: {}]   ;;  %s4488_s17 = inlined_call_operand.vmem [shape: f32[4,1,32], index: 17, kind: input, shape index: {}]   ;;  %s4489_s18 = inlined_call_operand.vmem [shape: f32[1,32], index: 18, kind: input, shape index: {}]   ;;  %s4490_s19 = inlined_call_operand.vmem [shape: f32[1,32], index: 19, kind: input, shape index: {}]   ;;  %s4491_s20 = inlined_call_operand.vmem [shape: f32[3,32], index: 20, kind: input, shape index: {}]   ;;  %s4492_s21 = inlined_call_operand.vmem [shape: f32[10,32], index: 21, kind: input, shape index: {}]   ;;  %s4493_s22 = inlined_call_operand.vmem [shape: f32[1,10], index: 22, kind: input, shape index: {}]   ;;  %s4494_s23 = inlined_call_operand.vmem [shape: f32[2,24,32], index: 23, kind: output, shape index: {0}]   ;;  %s4495_s24 = inlined_call_operand.hbm [shape: f32[2,1,3], index: 24, kind: output, shape index: {1}]   ;;  %s4496_s25 = inlined_call_operand.hbm [shape: f32[2,1,10], index: 25, kind: output, shape index: {2}]  }
   0x1   :  { %4518 = sst [smem:[#allocation26_spill]] %s4471_s0 }
   0x2   :  { %4519 = sst [smem:[#allocation27_spill]] %s4472_s1 }
   0x3   :  { %4520 = sst [smem:[#allocation28_spill]] %s4473_s2 }
   0x4   :  { %4521 = sst [smem:[#allocation29_spill]] %s4474_s3 }
   0x5   :  { %4522 = sst [smem:[#allocation30_spill]] %s4475_s4 }
   0x6   :  { %4523 = sst [smem:[#allocation31_spill]] %s4476_s5 }
   0x7   :  { %4524 = sst [smem:[#allocation32_spill]] %s4477_s6 }
   0x8   :  { %4525 = sst [smem:[#allocation33_spill]] %s4478_s7 }
   0x9   :  { %4526 = sst [smem:[#allocation34_spill]] %s4479_s8 }
   0xa   :  { %4527 = sst [smem:[#allocation35_spill]] %s4480_s9 }
   0xb   :  { %4528 = sst [smem:[#allocation36_spill]] %s4481_s10 }
   0xc   :  { %4529 = sst [smem:[#allocation37_spill]] %s4484_s13 }
   0xd   :  { %4530 = sst [smem:[#allocation38_spill]] %s4489_s18 }
   0xe   :  { %4531 = sst [smem:[#allocation39_spill]] %s4490_s19 }
   0xf   :  { %4532 = sst [smem:[#allocation40_spill]] %s4491_s20 }
  0x10   :  { %4533 = sst [smem:[#allocation41_spill]] %s4492_s21 }
  0x11   :  { %4534 = sst [smem:[#allocation42_spill]] %s4493_s22 }
  0x12   :  { %4535 = sst [smem:[#allocation43_spill]] %s4494_s23 }
  0x13   :  { %4536 = sst [smem:[#allocation44_spill]] %s4495_s24 }
  0x14   :  { %4537 = sst [smem:[#allocation45_spill]] %s4496_s25 }
  0x15   :  { %s4538_s6 = sld [smem:[#allocation26_spill]] }
  0x1b   :  { %s32_s19 = sshll.u32 %s4538_s6, 4  ;;  %s33_s19 = int_to_ptr.vmem [resolvable:$true] %s32_s19 }
  0x1c   :  { %35 = dma.vmem_to_smem %s33_s19, 16, %s3505_s30, [#allocation3] }
  0x1d   :  { %3463 = dma.done.wait [#allocation3], 16 }
  0x1e   :  { %3464 = vsyncadd [#allocation3], 4294967280 }
  0x1f   :  { %38 = sfence }
  0x20   :  { %39 = vsyncpa [#allocation6], 0 }
  0x21   :  { %41 = vsyncpa [#allocation6 + $0x1], 0 }
  0x22   :  { %42 = vsyncpa [#allocation8], 0 }
  0x23   :  { %44 = vsyncpa [#allocation8 + $0x1], 0  ;;  %s3647_s7 = smov 0   ;;  %s3649_s3 = smov 0  }
  0x24   :  { %s3651_s26 = smov 0   ;;  %s3653_s1 = smov 0  }
  0x25   :  { %s3655_s8 = smov 0   ;;  %s3657_s27 = smov 0  }
  0x26   :  { %s3659_s19 = smov 0   ;;  %s3661_s4 = smov 0  }
  0x27 LB: > { %4539 = sst [smem:[#allocation12_spill]] %s3475_s7  ;;  %s3007_s28 = sadd.s32 4294967295, %s3503_s4   ;;  %s3503_s4 = sphi %s3661_s4, %s50_s4   ;;  %s3499_s19 = sphi %s3659_s19, %s4600_s19   ;;  %s3495_s27 = sphi %s3657_s27, %s4599_s27   ;;  %s3491_s8 = sphi %s3655_s8, %s4598_s8   ;;  %s3487_s1 = sphi %s3653_s1, %s4597_s1   ;;  %s3483_s26 = sphi %s3651_s26, %s4596_s26   ;;  %s3479_s3 = sphi %s3649_s3, %s4595_s3   ;;  %s3475_s7 = sphi %s3647_s7, %s4594_s7  }
  0x28   : > { %4540 = sst [smem:[#allocation13_spill]] %s3479_s3  ;;  %s3008_s9 = sadd.s32 4294967294, %s3503_s4  }
  0x29   : > { %4541 = sst [smem:[#allocation14_spill]] %s3483_s26  ;;  %s59_s5 = sadd.s32 1, %s3495_s27 }
  0x2a   : > { %4542 = sst [smem:[#allocation15_spill]] %s3487_s1  ;;  %p60_p0 = scmp.ge.s32.totalorder %s59_s5, 4 }
  0x2b   : > { %4543 = sst [smem:[#allocation16_spill]] %s3491_s8  ;;  %s62_s0 = sadd.s32 1, %s3499_s19 }
  0x2c   : > { %4544 = sst [smem:[#allocation17_spill]] %s3495_s27  ;;  %p646_p1 = scmp.ne.s32.totalorder %s3483_s26, %s3479_s3 }
  0x2d   : > { %4545 = sst [smem:[#allocation18_spill]] %s3499_s19  ;;  %p647_p2 = scmp.eq.s32.totalorder %s3007_s28, 7 }
  0x2e   : > { %4546 = sst [smem:[#allocation19_spill]] %s3503_s4  ;;  %s4602_s5 = smov (%p60_p0, %s59_s5), 0 }
  0x2f   : > { %4547 = sst [smem:[#allocation20_spill]] %s4602_s5  ;;  %s4604_s0 = smov (!%p60_p0, %s62_s0), %s3499_s19 }
  0x30   : > { %p3696_p3 = por %p647_p2, %p646_p1  ;;  %p652_p4 = scmp.ne.s32.totalorder %s3479_s3, %s3475_s7 }
  0x31   : > { %p64_p5 = scmp.ge.s32.totalorder %s4604_s0, 2  ;;  %p653_p6 = scmp.eq.s32.totalorder %s3008_s9, 7 }
  0x32   : > { %s4548_s29 = scalar_select %p3696_p3, 1, 0 }
  0x33   : > { %p3011_p7 = scmp.ge.s32.totalorder %s3503_s4, 1  ;;  %p830_p8 = scmp.lt.s32.totalorder %s3503_s4, 9 }
  0x34   : > { %4549 = sst [smem:[#allocation21_spill]] %s4548_s29  ;;  %s4606_s0 = smov (%p64_p5, %s4604_s0), 0 }
  0x35   : > { %4550 = sst [smem:[#allocation22_spill]] %s4606_s0  ;;  %p3706_p9 = por %p653_p6, %p652_p4 }
  0x36   : > { %p831_p10 = pnand %p3011_p7, %p830_p8  ;;  %s633_s6 = ssub.s32 %s3499_s19, %s4606_s0 }
  0x37   : > { %s4551_s2 = scalar_select %p3706_p9, 1, 0 }
  0x38   : > { %s636_s30 = sadd.s32 1, %s3483_s26  ;;  %p634_p11 = scmp.eq.s32.totalorder %s633_s6, 0 }
  0x39   : > { %4552 = sst [smem:[#allocation23_spill]] %s4551_s2  ;;  %834 = sbr.rel (%p831_p10) target bundleno = 3099 (0xc1b), region = 108 }
  0x3a   : > { %s3714_s28 = scalar_select %p634_p11, %s3483_s26, %s636_s30  }
  0x3c   : > { %4553 = sst [smem:[#allocation24_spill]] %s3714_s28 }
  0x3e   : > { %s3717_s9 = sand.u32 1, %s3479_s3   ;;  %p966_p12 = scmp.lt.s32.totalorder %s3491_s8, 1 }
  0x3f   : > { %p973_p13 = scmp.lt.s32.totalorder %s3487_s1, 3  ;;  %s4554_s19 = sld [smem:[#allocation27_spill]] }
  0x40   : > { %s967_s5 = scalar_select %p966_p12, %s3491_s8, 1 }
  0x41   : > { %s3723_s7 = scalar_select %p973_p13, %s3487_s1, 3 }
  0x42   : > { %s3158_s27 = smul.u32 24, %s967_s5  ;;  %s4559_s23 = sld [smem:[#allocation34_spill]] }
  0x43   : > { %s3160_s30 = smul.u32 12, %s967_s5  ;;  %s4560_s29 = sld [smem:[#allocation30_spill]] }
  0x44   : > { %s3159_s28 = smul.u32 3, %s3723_s7  ;;  %s3143_s18 = sshll.u32 %s3723_s7, 5 }
  0x45   : > { %s3728_s6 = scalar_lea.vmem %s4554_s19, %s3158_s27  ;;  %s3161_s8 = smul.u32 96, %s3723_s7 }
  0x46   : > { %4555 = sst [smem:[#allocation25_spill]] %s3728_s6  ;;  %s977_s22 = sadd.s32 %s3160_s30, %s3159_s28 }
  0x47   : > { %s3013_s5 = sshll.u32 %s977_s22, 3  ;;  %s4561_s28 = sld [smem:[#allocation31_spill]] }
  0x48   : > { %s3747_s3 = scalar_lea.vmem %s4559_s23, %s3161_s8  ;;  %s4562_s10 = sld [smem:[#allocation36_spill]] }
  0x49   : > { %s3752_s0 = scalar_lea.vmem %s4560_s29, %s3013_s5  ;;  %s1032_s4 = scalar_lea.vmem %s4488_s17, %s3723_s7 }
  0x4a   : > { %s4564_s26 = sld [smem:[#allocation43_spill]]  ;;  %s965_s2 = scalar_lea.vmem [#allocation7], %s3717_s9 }
  0x4d   : > { %s3757_s30 = scalar_lea.vmem %s4561_s28, %s3013_s5  ;;  %s3144_s5 = sshll.u32 %s3723_s7, 7 }
  0x4e   : > { %s3767_s23 = scalar_lea.vmem %s4562_s10, %s3143_s18  ;;  %s3781_s20 = scalar_lea.vmem %s4485_s14, %s3144_s5 }
  0x4f   : > { %s3790_s10 = scalar_lea.vmem %s4487_s16, %s3143_s18  ;;  %s959_s5 = scalar_lea.vmem [#allocation5], %s3717_s9 }
  0x50   : > { %s3799_s13 = scalar_lea.vmem %s4564_s26, %s3158_s27  ;;  %s4565_s28 = sld [smem:[#allocation15_spill]] }
  0x56   : > { %p3023_p0 = scmp.ne.s32.totalorder %s4565_s28, 0 }
  0x57   : > { %s4566_s25 = sld [smem:[#allocation29_spill]] (!%p3023_p0) }
  0x58   : > { %1041 = sbr.rel (%p3023_p0) target bundleno = 244 (0xf4), region = 112  ;;  %s4567_s22 = sld [smem:[#allocation25_spill]] (!%p3023_p0) }
  0x59   : > { %s4568_s28 = sld [smem:[#allocation28_spill]] (!%p3023_p0) }
  0x5d   : > { %v1048_v0 = vld [vmem:[%s4566_s25 + $0x18] sm:$0xff]  ;;  %vm1052_vm0 = vcmask 392192   ;;  %v1047_v1 = vld [vmem:[%s4566_s25 + $0x10] sm:$0xff]  ;;  %v1046_v2 = vld [vmem:[%s4566_s25 + $0x8] sm:$0xff]  ;;  %vm1100_vm1 = vcmask 261120  }
  0x5e   : > { %3147 = vmatpush.xpose.msk.msra.mxu2 %vm1052_vm0, %v1048_v0  ;;  %3024 = vmatpush.xpose.msk.msra.mxu0 %vm1052_vm0, %v1048_v0  ;;  %v1045_v3 = vld [vmem:[%s4566_s25] sm:$0xff]  ;;  %v1044_v4 = vld [vmem:[%s4567_s22 + $0x10] sm:$0xff]  ;;  %v1043_v6 = vld [vmem:[%s4567_s22 + $0x8] sm:$0xff] }
  0x5f   : > { %3146 = vmatpush.xpose.msk.msra.mxu1 %vm1052_vm0, %v1048_v0  ;;  %v1042_v5 = vld [vmem:[%s4567_s22] sm:$0xff]  ;;  %v1050_v8 = vld [vmem:[%s4568_s28 + $0x8] sm:$0xff]  ;;  %v1051_v13 = vld [vmem:[%s4568_s28 + $0x10] sm:$0xff] }
  0x60   : > { %v1049_v7 = vld [vmem:[%s4568_s28] sm:$0xff] }
  0x62   : > { %3149 = vmatpush.xpose.msk.msra.mxu2 %vm1052_vm0, %v1047_v1  ;;  %3025 = vmatpush.xpose.msk.msra.mxu0 %vm1052_vm0, %v1047_v1 }
  0x63   : > { %3148 = vmatpush.xpose.msk.msra.mxu1 %vm1052_vm0, %v1047_v1 }
  0x66   : > { %3151 = vmatpush.xpose.msk.msra.mxu2 %vm1052_vm0, %v1046_v2  ;;  %3026 = vmatpush.xpose.msk.msra.mxu0 %vm1052_vm0, %v1046_v2 }
  0x67   : > { %3150 = vmatpush.xpose.msk.msra.mxu1 %vm1052_vm0, %v1046_v2 }
  0x6a   : > { %3153 = vmatpush.xpose.msk.msra.mxu2 %vm1052_vm0, %v1045_v3  ;;  %3027 = vmatpush.xpose.msk.msra.mxu0 %vm1052_vm0, %v1045_v3 }
  0x6b   : > { %3152 = vmatpush.xpose.msk.msra.mxu1 %vm1052_vm0, %v1045_v3 }
  0x6d   : > { %3030 = vmatmul.msk.f32.vlgmr.msra.gmra.mxu2 %vm1052_vm0, %v1044_v4  ;;  %3028 = vmatmul.msk.f32.vlgmr.msra.gmra.mxu0 %vm1052_vm0, %v1042_v5 }
  0x6e   : > { %3029 = vmatmul.msk.f32.vlgmr.msra.gmra.mxu1 %vm1052_vm0, %v1043_v6 }
  0xea   : > { %v1091_v9 = vpop.f32.mrf.mxu0 }
  0xeb   : > { %v1092_v10 = vadd.f32 %v1091_v9, %v1049_v7  ;;  %v1094_v11 = vpop.f32.mrf.mxu1 }
  0xec   : > { %v1095_v12 = vadd.f32 %v1094_v11, %v1050_v8 }
  0xed   : > { %1101 = vst.msk [vmem:[#allocation2] sm:$0xff] %vm1100_vm1, %v1092_v10 }
  0xee   : > { %1102 = vst.msk [vmem:[#allocation2 + $0x8] sm:$0xff] %vm1100_vm1, %v1095_v12 }
  0xf0   : > { %v1097_v14 = vpop.f32.mrf.mxu2 }
  0xf1   : > { %v1098_v15 = vadd.f32 %v1097_v14, %v1051_v13 }
  0xf3   : > { %1103 = vst.msk [vmem:[#allocation2 + $0x10] sm:$0xff] %vm1100_vm1, %v1098_v15 }
  0xf4 PF: > { %vm1109_vm2 = vcmask 261120   ;;  %v1104_v20 = vld [vmem:[#allocation2] sm:$0xff]  ;;  %v3506_v22 = vmov 32.0   ;;  %v1217_v44 = vld [vmem:[%s3747_s3 + $0x18] sm:$0xff]  ;;  %v1216_v45 = vld [vmem:[%s3747_s3 + $0x10] sm:$0xff]  ;;  %s4569_s26 = sld [smem:[#allocation35_spill]]  ;;  %s4577_s19 = scalar_lea.vmem %s4483_s12, %s3723_s7 }
  0xf5   : > { %v1105_v17 = vld [vmem:[#allocation2 + $0x8] sm:$0xff]  ;;  %v1110_v21 = vsel %vm1109_vm2, %v1104_v20, 0.0  ;;  %3270 = vrcp.f32 %v3506_v22  ;;  %3154 = vmatpush.xpose.msk.msra.mxu1 %vm1109_vm2, %v1217_v44  ;;  %3031 = vmatpush.xpose.msk.msra.mxu0 %vm1109_vm2, %v1217_v44  ;;  %v1214_v47 = vld [vmem:[%s3747_s3] sm:$0xff]  ;;  %v1221_v48 = vld [vmem:[%s3747_s3 + $0x38] sm:$0xff]  ;;  %s3507_s8 = smov 96   ;;  %s4571_s21 = sld [smem:[#allocation32_spill]] }
  0xf6   : > { %v1113_v19 = vsel %vm1109_vm2, %v1105_v17, 0.0  ;;  %v1215_v46 = vld [vmem:[%s3747_s3 + $0x8] sm:$0xff]  ;;  %v1220_v49 = vld [vmem:[%s3747_s3 + $0x30] sm:$0xff]  ;;  %v1218_v53 = vld [vmem:[%s3747_s3 + $0x20] sm:$0xff]  ;;  %s4573_s18 = sld [smem:[#allocation33_spill]]  ;;  %vm1388_vm14 = vcmask 64512  }
  0xf7   : > { %1114 = vadd.xlane.f32.xlu1 %v1113_v19  ;;  %v1219_v50 = vld [vmem:[%s3747_s3 + $0x28] sm:$0xff]  ;;  %v1225_v55 = vld [vmem:[%s3747_s3 + $0x58] sm:$0xff]  ;;  %v1224_v56 = vld [vmem:[%s3747_s3 + $0x50] sm:$0xff]  ;;  %s4575_s27 = sld [smem:[#allocation15_spill]]  ;;  %vm1439_vm0 = vcmask 195584   ;;  %s3512_s6 = smov 104  }
  0xf8   : > { %v1223_v62 = vld [vmem:[%s3747_s3 + $0x48] sm:$0xff]  ;;  %v1222_v1 = vld [vmem:[%s3747_s3 + $0x40] sm:$0xff] }
  0xf9   : > { %3155 = vmatpush.xpose.msk.msra.mxu1 %vm1109_vm2, %v1216_v45  ;;  %3032 = vmatpush.xpose.msk.msra.mxu0 %vm1109_vm2, %v1216_v45 }
  0xfa   : > { %v1106_v16 = vld [vmem:[#allocation2 + $0x10] sm:$0xff]  ;;  %s4570_s1 = scalar_lea.vmem %s4569_s26, %s3723_s7  ;;  %s3509_s26 = smov 64  }
  0xfb   : > { %v1116_v18 = vsel %vm1109_vm2, %v1106_v16, 0.0  ;;  %v3271_v23 = vpop.eup %3270  ;;  %v3898_v63 = vld [vmem:[%s4570_s1] ss:$0 sm:$0xff]  ;;  %s4572_s3 = scalar_lea.vmem %s4571_s21, %s3723_s7  ;;  %s3510_s1 = smov 120  }
  0xfc   : > { %1117 = vadd.xlane.f32.xlu0 %v1116_v18  ;;  %v1120_v24 = vmul.f32 32.0, %v3271_v23  ;;  %vm1124_vm3 = vweird.f32 %v3271_v23  ;;  %v3262_v10 = vld [vmem:[%s4572_s3] ss:$0 sm:$0xff]  ;;  %s4574_s24 = scalar_lea.vmem %s4573_s18, %s3723_s7  ;;  %s4576_s21 = scalar_lea.vmem %s4482_s11, %s3723_s7 }
  0xfd   : > { %3156 = vmatpush.xpose.msk.msra.mxu1 %vm1109_vm2, %v1215_v46  ;;  %3033 = vmatpush.xpose.msk.msra.mxu0 %vm1109_vm2, %v1215_v46  ;;  %v3263_v14 = vld [vmem:[%s4574_s24] ss:$0 sm:$0xff]  ;;  %s4578_s24 = sld [smem:[#allocation37_spill]]  ;;  %p3135_p1 = scmp.ne.s32.totalorder %s4575_s27, 3 }
  0xfe   : > { %v1121_v25 = vsub.f32 1.0, %v1120_v24  ;;  %s4582_s29 = sld [smem:[#allocation41_spill]] (!%p3135_p1) }
  0xff   : > { %s4583_s22 = sld [smem:[#allocation38_spill]] (!%p3135_p1) }
 0x100   : > { %v1122_v26 = vmul.f32 %v3271_v23, %v1121_v25 }
 0x101   : > { %3157 = vmatpush.xpose.msk.msra.mxu1 %vm1109_vm2, %v1214_v47  ;;  %3034 = vmatpush.xpose.msk.msra.mxu0 %vm1109_vm2, %v1214_v47 }
 0x102   : > { %v1123_v27 = vadd.f32 %v3271_v23, %v1122_v26 }
 0x104   : > { %1111 = vadd.xlane.f32.xlu0 %v1110_v21  ;;  %v3846_v28 = vsel %vm1124_vm3, %v3271_v23, %v1123_v27 }
 0x105   : > { %3038 = vmatpush.xpose.msk.msrb.mxu1 %vm1109_vm2, %v1221_v48  ;;  %3045 = vmatpush.xpose.msk.msrb.mxu0 %vm1109_vm2, %v1225_v55 }
 0x109   : > { %3039 = vmatpush.xpose.msk.msrb.mxu1 %vm1109_vm2, %v1220_v49  ;;  %3046 = vmatpush.xpose.msk.msrb.mxu0 %vm1109_vm2, %v1224_v56 }
 0x10d   : > { %3040 = vmatpush.xpose.msk.msrb.mxu1 %vm1109_vm2, %v1219_v50  ;;  %3047 = vmatpush.xpose.msk.msrb.mxu0 %vm1109_vm2, %v1223_v62 }
 0x111   : > { %3041 = vmatpush.xpose.msk.msrb.mxu1 %vm1109_vm2, %v1218_v53  ;;  %3048 = vmatpush.xpose.msk.msrb.mxu0 %vm1109_vm2, %v1222_v1 }
 0x118   : > { %1277 = vrot.lane.b32.xlu0 %v3898_v63, %s3507_s8  ;;  %s3511_s8 = smov 112  }
 0x16a   : > { %v1115_v33 = vpop.xlane.xlu1 %1114 }
 0x16b   : > { %v1127_v37 = vmul.f32 %v3846_v28, %v1115_v33 }
 0x16d   : > { %v3858_v39 = vsub.f32 %v1105_v17, %v1127_v37 }
 0x16f   : > { %v1118_v29 = vpop.xlane.xlu0 %1117  ;;  %v1133_v42 = vmul.f32 %v3858_v39, %v3858_v39 }
 0x170   : > { %v1128_v30 = vmul.f32 %v3846_v28, %v1118_v29 }
 0x171   : > { %v1138_v43 = vsel %vm1109_vm2, %v1133_v42, 0.0 }
 0x172   : > { %v3849_v31 = vsub.f32 %v1106_v16, %v1128_v30 }
 0x174   : > { %v1134_v32 = vmul.f32 %v3849_v31, %v3849_v31 }
 0x176   : > { %v1141_v34 = vsel %vm1109_vm2, %v1134_v32, 0.0 }
 0x177   : > { %1142 = vadd.xlane.f32.xlu1 %v1141_v34  ;;  %v1112_v35 = vpop.xlane.xlu0 %1111 }
 0x178   : > { %v1126_v36 = vmul.f32 %v3846_v28, %v1112_v35 }
 0x17a   : > { %v3856_v38 = vsub.f32 %v1104_v20, %v1126_v36 }
 0x17c   : > { %v1132_v40 = vmul.f32 %v3856_v38, %v3856_v38 }
 0x17e   : > { %v1135_v41 = vsel %vm1109_vm2, %v1132_v40, 0.0 }
 0x17f   : > { %1136 = vadd.xlane.f32.xlu2 %v1135_v41  ;;  %v1200_v41 = vld [vmem:[%s3757_s30 + $0x10] sm:$0xff] }
 0x187   : > { %1139 = vadd.xlane.f32.xlu2 %v1138_v43 }
 0x18a   : > { %v1278_v45 = vpop.permute.xlu0 %1277 }
 0x1ea   : > { %v1143_v51 = vpop.xlane.xlu1 %1142 }
 0x1eb   : > { %v1146_v52 = vmul.f32 %v1143_v51, %v3846_v28 }
 0x1ed   : > { %v1149_v54 = vadd.f32 1e-06, %v1146_v52 }
 0x1ef   : > { %3272 = vrsqrt.f32 %v1149_v54  ;;  %vm1176_vm5 = vweird.f32 %v1149_v54 }
 0x1f2   : > { %v1137_v57 = vpop.xlane.xlu2 %1136 }
 0x1f3   : > { %v1144_v58 = vmul.f32 %v1137_v57, %v3846_v28  ;;  %v3508_v57 = vmov -1e+30  }
 0x1f5   : > { %v3273_v59 = vpop.eup %3272  ;;  %v1147_v60 = vadd.f32 1e-06, %v1144_v58 }
 0x1f6   : > { %v1171_v61 = vmul.f32 %v3273_v59, %v1149_v54  ;;  %vm1177_vm4 = vweird.f32 %v3273_v59 }
 0x1f7   : > { %3274 = vrsqrt.f32 %v1147_v60  ;;  %vm1178_vm6 = vmor %vm1176_vm5, %vm1177_vm4  ;;  %vm1156_vm8 = vweird.f32 %v1147_v60 }
 0x1f8   : > { %v1172_v0 = vmul.f32 %v3273_v59, %v1171_v61 }
 0x1fa   : > { %v1173_v2 = vmul.f32 0.5, %v1172_v0  ;;  %v1140_v3 = vpop.xlane.xlu2 %1139 }
 0x1fb   : > { %v1145_v4 = vmul.f32 %v1140_v3, %v3846_v28 }
 0x1fc   : > { %v1174_v5 = vsub.f32 1.5, %v1173_v2 }
 0x1fd   : > { %v3275_v6 = vpop.eup %3274  ;;  %v1148_v7 = vadd.f32 1e-06, %v1145_v4 }
 0x1fe   : > { %v1175_v8 = vmul.f32 %v3273_v59, %v1174_v5  ;;  %v1151_v9 = vmul.f32 %v3275_v6, %v1147_v60  ;;  %vm1157_vm7 = vweird.f32 %v3275_v6 }
 0x1ff   : > { %3276 = vrsqrt.f32 %v1148_v7  ;;  %vm1158_vm9 = vmor %vm1156_vm8, %vm1157_vm7  ;;  %vm1166_vm11 = vweird.f32 %v1148_v7 }
 0x200   : > { %v1179_v11 = vsel %vm1178_vm6, %v3273_v59, %v1175_v8  ;;  %v1152_v12 = vmul.f32 %v3275_v6, %v1151_v9 }
 0x201   : > { %v1182_v13 = vmul.f32 %v1179_v11, %v3849_v31  ;;  %v1201_v31 = vlaneseq }
 0x202   : > { %v1153_v15 = vmul.f32 0.5, %v1152_v12 }
 0x203   : > { %v1188_v16 = vmul.f32 %v3262_v10, %v1182_v13  ;;  %v1202_v35 = vshrl.u32 %v1201_v31, 7  ;;  %v1380_v55 = vand.u32 127, %v1201_v31  ;;  %v4011_v31 = vld [vmem:[%s3767_s23 + $0x18] sm:$0xff] }
 0x204   : > { %v1154_v17 = vsub.f32 1.5, %v1153_v15 }
 0x205   : > { %v3277_v18 = vpop.eup %3276  ;;  %v1194_v19 = vadd.f32 %v3263_v14, %v1188_v16  ;;  %v1204_v37 = vadd.s32 16, %v1202_v35 }
 0x206   : > { %v1155_v20 = vmul.f32 %v3275_v6, %v1154_v17  ;;  %v1161_v21 = vmul.f32 %v3277_v18, %v1148_v7  ;;  %vm1167_vm10 = vweird.f32 %v3277_v18 }
 0x207   : > { %3037 = vmatmul.msk.f32.vlgmr.msra.gmra.mxu1 %vm1109_vm2, %v1194_v19  ;;  %vm1168_vm12 = vmor %vm1166_vm11, %vm1167_vm10  ;;  %vm1207_vm13 = vcmp.ge.s32.totalorder %v1204_v37, 17 }
 0x208   : > { %v1159_v22 = vsel %vm1158_vm9, %v3275_v6, %v1155_v20  ;;  %v1162_v23 = vmul.f32 %v3277_v18, %v1161_v21  ;;  %v1213_v42 = vsel %vm1207_vm13, %v1200_v41, %v1194_v19 }
 0x209   : > { %v1180_v24 = vmul.f32 %v1159_v22, %v3856_v38  ;;  %v1197_v38 = vld [vmem:[%s3752_s0 + $0x10] sm:$0xff]  ;;  %s1377_s0 = sld [smem:[#allocation4 + %s4575_s27]] }
 0x20a   : > { %v1163_v25 = vmul.f32 0.5, %v1162_v23  ;;  %v1210_v40 = vsel %vm1207_vm13, %v1197_v38, %v1194_v19 }
 0x20b   : > { %v1186_v26 = vmul.f32 %v3262_v10, %v1180_v24 }
 0x20c   : > { %v1164_v27 = vsub.f32 1.5, %v1163_v25 }
 0x20d   : > { %v1192_v29 = vadd.f32 %v3263_v14, %v1186_v26 }
 0x20e   : > { %v1165_v30 = vmul.f32 %v3277_v18, %v1164_v27 }
 0x20f   : > { %3035 = vmatmul.msk.f32.vlgmr.msra.gmra.mxu0 %vm1109_vm2, %v1192_v29  ;;  %3042 = vmatmul.msk.f32.vlgmr.msrb.gmra.mxu1 %vm1109_vm2, %v1192_v29  ;;  %s1378_s30 = sadd.s32 17, %s1377_s0  ;;  %s4579_s0 = scalar_lea.vmem %s4578_s24, %s3723_s7 }
 0x210   : > { %v1169_v32 = vsel %vm1168_vm12, %v3277_v18, %v1165_v30  ;;  %v1381_v56 = vstv %s1378_s30 }
 0x211   : > { %v1181_v33 = vmul.f32 %v1169_v32, %v3858_v39  ;;  %vm1382_vm15 = vcmp.lt.s32.totalorder %v1380_v55, %v1381_v56 }
 0x212   : > { %v3957_v58 = vsel %vm1382_vm15, 0.0, %v3508_v57 }
 0x213   : > { %v1187_v34 = vmul.f32 %v3262_v10, %v1181_v33  ;;  %v4016_v33 = vld [vmem:[%s3767_s23 + $0x10] sm:$0xff] }
 0x215   : > { %v1193_v36 = vadd.f32 %v3263_v14, %v1187_v34  ;;  %v4021_v34 = vld [vmem:[%s3767_s23 + $0x8] sm:$0xff] }
 0x217   : > { %3036 = vmatmul.msk.f32.gmra.mxu0 %vm1109_vm2, %v1193_v36  ;;  %3043 = vmatmul.msk.f32.gmra.mxu1 %vm1109_vm2, %v1193_v36 }
 0x21f   : > { %3044 = vmatmul.msk.f32.gmra.mxu1 %vm1109_vm2, %v1210_v40  ;;  %3049 = vmatmul.msk.f32.vlgmr.msrb.gmra.mxu0 %vm1109_vm2, %v1192_v29 }
 0x227   : > { %3050 = vmatmul.msk.f32.gmra.mxu0 %vm1109_vm2, %v1193_v36  ;;  %v4026_v36 = vld [vmem:[%s3767_s23] sm:$0xff] }
 0x22f   : > { %3051 = vmatmul.msk.f32.gmra.mxu0 %vm1109_vm2, %v1213_v42 }
 0x284   : > { %v1274_v39 = vpop.f32.mrf.mxu1 }
 0x285   : > { %v3952_v54 = vadd.f32 %v3898_v63, %v1274_v39 }
 0x28c   : > { %v1318_v43 = vpop.f32.mrf.mxu1  ;;  %v1268_v49 = vpop.f32.mrf.mxu0 }
 0x28d   : > { %v3937_v50 = vadd.f32 %v1318_v43, %v1278_v45  ;;  %v3942_v51 = vadd.f32 %v3898_v63, %v1268_v49 }
 0x294   : > { %v1321_v44 = vpop.f32.mrf.mxu1  ;;  %v1271_v52 = vpop.f32.mrf.mxu0 }
 0x295   : > { %v3933_v48 = vadd.f32 %v1321_v44, %v1278_v45  ;;  %v3947_v53 = vadd.f32 %v3898_v63, %v1271_v52 }
 0x29c   : > { %v1324_v46 = vpop.f32.mrf.mxu1  ;;  %v1368_v19 = vpop.f32.mrf.mxu0 }
 0x29d   : > { %v3929_v47 = vadd.f32 %v1324_v46, %v1278_v45 }
 0x29f   : > { %3052 = vmatpush.xpose.msk.msra.mxu3 %vm1388_vm14, %v3929_v47 }
 0x2a3   : > { %3053 = vmatpush.xpose.msk.msra.mxu3 %vm1388_vm14, %v3933_v48 }
 0x2a4   : > { %v1371_v23 = vpop.f32.mrf.mxu0 }
 0x2a7   : > { %3054 = vmatpush.xpose.msk.msra.mxu3 %vm1388_vm14, %v3937_v50 }
 0x2aa   : > { %3055 = vmatmul.msk.f32.vlgmr.msra.gmra.mxu3 %vm1388_vm14, %v3942_v51 }
 0x2ac   : > { %v1374_v24 = vpop.f32.mrf.mxu0 }
 0x2b2   : > { %3056 = vmatmul.msk.f32.gmra.mxu3 %vm1388_vm14, %v3947_v53 }
 0x2ba   : > { %3057 = vmatmul.msk.f32.gmra.mxu3 %vm1388_vm14, %v3952_v54 }
 0x32d   : > { %v1424_v59 = vpop.f32.mrf.mxu3 }
 0x32e   : > { %v1433_v60 = vmul.f32 0.35355338, %v1424_v59 }
 0x330   : > { %v1436_v61 = vadd.f32 %v1433_v60, %v3957_v58 }
 0x332   : > { %v1440_v62 = vsel %vm1439_vm0, %v1436_v61, -inf }
 0x333   : > { %1441 = vmax.xlane.f32.xlu1 %v1440_v62 }
 0x335   : > { %v1427_v0 = vpop.f32.mrf.mxu3 }
 0x336   : > { %v1434_v1 = vmul.f32 0.35355338, %v1427_v0 }
 0x338   : > { %v1437_v2 = vadd.f32 %v1434_v1, %v3957_v58 }
 0x33a   : > { %v1443_v3 = vsel %vm1439_vm0, %v1437_v2, -inf }
 0x33b   : > { %1444 = vmax.xlane.f32.xlu2 %v1443_v3 }
 0x33d   : > { %v1430_v4 = vpop.f32.mrf.mxu3 }
 0x33e   : > { %v1435_v5 = vmul.f32 0.35355338, %v1430_v4 }
 0x340   : > { %v1438_v6 = vadd.f32 %v1435_v5, %v3957_v58 }
 0x342   : > { %v1446_v7 = vsel %vm1439_vm0, %v1438_v6, -inf }
 0x343   : > { %1447 = vmax.xlane.f32.xlu1 %v1446_v7 }
 0x35c   : > { %1327 = vrot.lane.b32.xlu1 %v3898_v63, %s3509_s26 }
 0x364   : > { %1516 = vrot.lane.b32.xlu1 %v3933_v48, %s3510_s1 }
 0x36c   : > { %1508 = vrot.lane.b32.xlu1 %v3942_v51, %s3510_s1 }
 0x374   : > { %1752 = vrot.lane.b32.xlu1 %v3929_v47, %s3511_s8 }
 0x37c   : > { %1750 = vrot.lane.b32.xlu1 %v3933_v48, %s3511_s8 }
 0x384   : > { %1748 = vrot.lane.b32.xlu1 %v3937_v50, %s3511_s8 }
 0x38c   : > { %1742 = vrot.lane.b32.xlu1 %v3942_v51, %s3511_s8 }
 0x394   : > { %1931 = vrot.lane.b32.xlu1 %v3947_v53, %s3512_s6 }
 0x3a6   : > { %v1442_v63 = vpop.xlane.xlu1 %1441 }
 0x3a7   : > { %v1449_v8 = vsub.f32 %v1436_v61, %v1442_v63 }
 0x3a9   : > { %v1452_v9 = vmul.f32 1.442695, %v1449_v8 }
 0x3ab   : > { %3278 = vpow2.f32 %v1452_v9 }
 0x3ae   : > { %v1445_v10 = vpop.xlane.xlu2 %1444 }
 0x3af   : > { %v1450_v11 = vsub.f32 %v1437_v2, %v1445_v10 }
 0x3b1   : > { %v3279_v12 = vpop.eup %3278  ;;  %v1454_v13 = vmul.f32 1.442695, %v1450_v11 }
 0x3b2   : > { %v1458_v14 = vsel %vm1439_vm0, %v3279_v12, 0.0 }
 0x3b3   : > { %3280 = vpow2.f32 %v1454_v13  ;;  %1459 = vadd.xlane.f32.xlu2 %v1458_v14 }
 0x3b6   : > { %v1448_v15 = vpop.xlane.xlu1 %1447 }
 0x3b7   : > { %v1451_v16 = vsub.f32 %v1438_v6, %v1448_v15 }
 0x3b9   : > { %v3281_v17 = vpop.eup %3280  ;;  %v1456_v18 = vmul.f32 1.442695, %v1451_v16 }
 0x3ba   : > { %v1461_v20 = vsel %vm1439_vm0, %v3281_v17, 0.0 }
 0x3bb   : > { %3282 = vpow2.f32 %v1456_v18  ;;  %1462 = vadd.xlane.f32.xlu2 %v1461_v20 }
 0x3c1   : > { %v3283_v21 = vpop.eup %3282 }
 0x3c2   : > { %v1464_v22 = vsel %vm1439_vm0, %v3283_v21, 0.0 }
 0x3c3   : > { %1465 = vadd.xlane.f32.xlu0 %v1464_v22 }
 0x3ce   : > { %v1328_v25 = vpop.permute.xlu1 %1327 }
 0x3cf   : > { %v1372_v26 = vadd.f32 %v1371_v23, %v1328_v25  ;;  %v1375_v27 = vadd.f32 %v1374_v24, %v1328_v25  ;;  %v3985_v30 = vadd.f32 %v1368_v19, %v1328_v25 }
 0x3d1   : > { %1495 = vmatpush.msrb.mxu3 %v1375_v27  ;;  %v3983_v29 = vpack.i.bf16 %v1372_v26, %v1375_v27 }
 0x3d3   : > { %1518 = vrot.lane.b32.xlu2 %v3929_v47, %s3510_s1  ;;  %1496 = vmatpush.msrb.mxu3 %v1372_v26 }
 0x3d5   : > { %1497 = vmatpush.msrb.mxu3 %v3985_v30 }
 0x3d6   : > { %v1517_v32 = vpop.permute.xlu1 %1516 }
 0x3d7   : > { %1939 = vrot.lane.b32.xlu0 %v3929_v47, %s3512_s6  ;;  %3077 = vmatpush.xpose.msk.msra.mxu3 %vm1388_vm14, %v4011_v31 }
 0x3db   : > { %1514 = vrot.lane.b32.xlu2 %v3937_v50, %s3510_s1  ;;  %3078 = vmatpush.xpose.msk.msra.mxu3 %vm1388_vm14, %v4016_v33 }
 0x3de   : > { %v1509_v37 = vpop.permute.xlu1 %1508 }
 0x3df   : > { %1929 = vrot.lane.b32.xlu0 %v3942_v51, %s3512_s6  ;;  %3079 = vmatpush.xpose.msk.msra.mxu3 %vm1388_vm14, %v4021_v34 }
 0x3e3   : > { %1510 = vrot.lane.b32.xlu2 %v3947_v53, %s3510_s1  ;;  %3080 = vmatpush.xpose.msk.msra.mxu3 %vm1388_vm14, %v4026_v36 }
 0x3e6   : > { %v1753_v42 = vpop.permute.xlu1 %1752 }
 0x3e7   : > { %1746 = vrot.lane.b32.xlu0 %v3952_v54, %s3511_s8 }
 0x3eb   : > { %1512 = vrot.lane.b32.xlu2 %v3952_v54, %s3510_s1 }
 0x3ee   : > { %v1751_v47 = vpop.permute.xlu1 %1750 }
 0x3f3   : > { %1937 = vrot.lane.b32.xlu2 %v3933_v48, %s3512_s6 }
 0x3f6   : > { %v1749_v51 = vpop.permute.xlu1 %1748 }
 0x3fb   : > { %1935 = vrot.lane.b32.xlu2 %v3937_v50, %s3512_s6 }
 0x3fe   : > { %v1743_v55 = vpop.permute.xlu1 %1742 }
 0x403   : > { %1744 = vrot.lane.b32.xlu2 %v3947_v53, %s3511_s8 }
 0x406   : > { %v1932_v11 = vpop.permute.xlu1 %1931 }
 0x40b   : > { %1933 = vrot.lane.b32.xlu2 %v3952_v54, %s3512_s6 }
 0x426   : > { %v1460_v35 = vpop.xlane.xlu2 %1459 }
 0x427   : > { %3284 = vrcp.f32 %v1460_v35 }
 0x42d   : > { %v3285_v38 = vpop.eup %3284 }
 0x42e   : > { %v1463_v40 = vpop.xlane.xlu2 %1462  ;;  %v1470_v41 = vmul.f32 %v3285_v38, %v3279_v12 }
 0x42f   : > { %3286 = vrcp.f32 %v1463_v40 }
 0x430   : > { %3058 = vmatmul.msk.f32.vlgmr.msrb.gmra.mxu3 %vm1439_vm0, %v1470_v41 }
 0x435   : > { %v3287_v39 = vpop.eup %3286 }
 0x436   : > { %v1519_v43 = vpop.permute.xlu2 %1518  ;;  %v1466_v44 = vpop.xlane.xlu0 %1465  ;;  %v1471_v45 = vmul.f32 %v3287_v39, %v3281_v17 }
 0x437   : > { %3288 = vrcp.f32 %v1466_v44  ;;  %3061 = vmatpush.xpose.msk.msra.mxu0 %vm1388_vm14, %v1519_v43 }
 0x438   : > { %3059 = vmatmul.msk.f32.gmra.mxu3 %vm1439_vm0, %v1471_v45 }
 0x43b   : > { %3062 = vmatpush.xpose.msk.msra.mxu0 %vm1388_vm14, %v1517_v32 }
 0x43d   : > { %v3289_v46 = vpop.eup %3288 }
 0x43e   : > { %v1515_v48 = vpop.permute.xlu2 %1514  ;;  %v1472_v49 = vmul.f32 %v3289_v46, %v3283_v21 }
 0x43f   : > { %3063 = vmatpush.xpose.msk.msra.mxu0 %vm1388_vm14, %v1515_v48 }
 0x440   : > { %3060 = vmatmul.msk.f32.gmra.mxu3 %vm1439_vm0, %v1472_v49 }
 0x442   : > { %3064 = vmatmul.msk.f32.vlgmr.msra.gmra.mxu0 %vm1388_vm14, %v1509_v37 }
 0x443   : > { %3084 = vmatpush.xpose.msk.msrb.mxu0 %vm1388_vm14, %v1753_v42 }
 0x446   : > { %v1511_v50 = vpop.permute.xlu2 %1510 }
 0x447   : > { %3085 = vmatpush.xpose.msk.msrb.mxu0 %vm1388_vm14, %v1751_v47 }
 0x449   : > { %v1940_v52 = vpop.permute.xlu0 %1939 }
 0x44a   : > { %3065 = vmatmul.msk.f32.gmra.mxu0 %vm1388_vm14, %v1511_v50  ;;  %3100 = vmatpush.xpose.msk.msrb.mxu3 %vm1388_vm14, %v1940_v52 }
 0x44b   : > { %3086 = vmatpush.xpose.msk.msrb.mxu0 %vm1388_vm14, %v1749_v51 }
 0x44e   : > { %v1513_v53 = vpop.permute.xlu2 %1512 }
 0x451   : > { %v1930_v57 = vpop.permute.xlu0 %1929 }
 0x452   : > { %3066 = vmatmul.msk.f32.gmra.mxu0 %vm1388_vm14, %v1513_v53 }
 0x456   : > { %v1938_v54 = vpop.permute.xlu2 %1937 }
 0x457   : > { %3101 = vmatpush.xpose.msk.msrb.mxu3 %vm1388_vm14, %v1938_v54 }
 0x459   : > { %v1747_v60 = vpop.permute.xlu0 %1746 }
 0x45a   : > { %3087 = vmatmul.msk.f32.vlgmr.msrb.gmra.mxu0 %vm1388_vm14, %v1743_v55 }
 0x45e   : > { %v1936_v56 = vpop.permute.xlu2 %1935 }
 0x45f   : > { %3102 = vmatpush.xpose.msk.msrb.mxu3 %vm1388_vm14, %v1936_v56 }
 0x466   : > { %v1745_v59 = vpop.permute.xlu2 %1744 }
 0x467   : > { %3088 = vmatmul.msk.f32.gmra.mxu0 %vm1388_vm14, %v1745_v59 }
 0x46e   : > { %v1934_v16 = vpop.permute.xlu2 %1933 }
 0x46f   : > { %3089 = vmatmul.msk.f32.gmra.mxu0 %vm1388_vm14, %v1747_v60 }
 0x4b3   : > { %v1499_v61 = vpop.f32.mrf.mxu3 }
 0x4b4   : > { %3081 = vmatmul.msk.f32.vlgmr.msra.gmra.mxu3 %vm1388_vm14, %v1499_v61 }
 0x4bb   : > { %v1502_v62 = vpop.f32.mrf.mxu3 }
 0x4bc   : > { %3082 = vmatmul.msk.f32.gmra.mxu3 %vm1388_vm14, %v1502_v62 }
 0x4bf   : > { %v1549_v0 = vpop.f32.mrf.mxu0 }
 0x4c0   : > { %v1558_v1 = vmul.f32 0.35355338, %v1549_v0 }
 0x4c2   : > { %v1561_v2 = vadd.f32 %v1558_v1, %v3957_v58 }
 0x4c3   : > { %v1505_v3 = vpop.f32.mrf.mxu3 }
 0x4c4   : > { %3083 = vmatmul.msk.f32.gmra.mxu3 %vm1388_vm14, %v1505_v3  ;;  %v1564_v4 = vsel %vm1439_vm0, %v1561_v2, -inf }
 0x4c5   : > { %1565 = vmax.xlane.f32.xlu1 %v1564_v4 }
 0x4c7   : > { %v1552_v5 = vpop.f32.mrf.mxu0 }
 0x4c8   : > { %v1559_v6 = vmul.f32 0.35355338, %v1552_v5 }
 0x4ca   : > { %v1562_v7 = vadd.f32 %v1559_v6, %v3957_v58 }
 0x4cc   : > { %3103 = vmatmul.msk.f32.vlgmr.msrb.gmra.mxu3 %vm1388_vm14, %v1930_v57  ;;  %v1567_v63 = vsel %vm1439_vm0, %v1562_v7, -inf }
 0x4cd   : > { %1568 = vmax.xlane.f32.xlu0 %v1567_v63 }
 0x4cf   : > { %v1555_v8 = vpop.f32.mrf.mxu0 }
 0x4d0   : > { %v1560_v9 = vmul.f32 0.35355338, %v1555_v8 }
 0x4d2   : > { %v1563_v10 = vadd.f32 %v1560_v9, %v3957_v58 }
 0x4d4   : > { %3104 = vmatmul.msk.f32.gmra.mxu3 %vm1388_vm14, %v1932_v11  ;;  %v1570_v12 = vsel %vm1439_vm0, %v1563_v10, -inf }
 0x4d5   : > { %1571 = vmax.xlane.f32.xlu2 %v1570_v12 }
 0x4d7   : > { %v1783_v13 = vpop.f32.mrf.mxu0 }
 0x4d8   : > { %v1792_v14 = vmul.f32 0.35355338, %v1783_v13 }
 0x4da   : > { %v1795_v15 = vadd.f32 %v1792_v14, %v3957_v58 }
 0x4dc   : > { %3105 = vmatmul.msk.f32.gmra.mxu3 %vm1388_vm14, %v1934_v16  ;;  %v1798_v17 = vsel %vm1439_vm0, %v1795_v15, -inf }
 0x4dd   : > { %1799 = vmax.xlane.f32.xlu1 %v1798_v17 }
 0x4e4   : > { %v1786_v18 = vpop.f32.mrf.mxu0 }
 0x4e5   : > { %v1793_v19 = vmul.f32 0.35355338, %v1786_v18 }
 0x4e7   : > { %v1796_v20 = vadd.f32 %v1793_v19, %v3957_v58 }
 0x4e9   : > { %v1801_v21 = vsel %vm1439_vm0, %v1796_v20, -inf }
 0x4ea   : > { %1802 = vmax.xlane.f32.xlu0 %v1801_v21 }
 0x4ec   : > { %v1789_v22 = vpop.f32.mrf.mxu0 }
 0x4ed   : > { %3253 = vrot.lane.b32.xlu2 %v3983_v29, %s3511_s8  ;;  %v1794_v23 = vmul.f32 0.35355338, %v1789_v22 }
 0x4ef   : > { %v4071_v24 = vadd.f32 %v1794_v23, %v3957_v58 }
 0x4f1   : > { %v1804_v25 = vsel %vm1439_vm0, %v4071_v24, -inf }
 0x4f6   : > { %1600 = vrot.lane.b32.xlu1 %v3985_v30, %s3510_s1 }
 0x4fe   : > { %3248 = vrot.lane.b32.xlu0 %v3983_v29, %s3510_s1 }
 0x520   : > { %1805 = vmax.xlane.f32.xlu1 %v1804_v25 }
 0x537   : > { %v4075_v26 = vpop.f32.mrf.mxu3 }
 0x538   : > { %v1566_v27 = vpop.xlane.xlu1 %1565 }
 0x539   : > { %v1573_v32 = vsub.f32 %v1561_v2, %v1566_v27 }
 0x53b   : > { %v1576_v35 = vmul.f32 1.442695, %v1573_v32 }
 0x53d   : > { %3290 = vpow2.f32 %v1576_v35 }
 0x53f   : > { %v4077_v37 = vpop.f32.mrf.mxu3 }
 0x540   : > { %v1569_v38 = vpop.xlane.xlu0 %1568 }
 0x541   : > { %v1574_v40 = vsub.f32 %v1562_v7, %v1569_v38 }
 0x543   : > { %v4079_v41 = vpop.eup %3290  ;;  %v1578_v42 = vmul.f32 1.442695, %v1574_v40 }
 0x544   : > { %v1582_v39 = vsel %vm1439_vm0, %v4079_v41, 0.0 }
 0x545   : > { %3292 = vpow2.f32 %v1578_v42  ;;  %1583 = vadd.xlane.f32.xlu1 %v1582_v39 }
 0x547   : > { %v4083_v43 = vpop.f32.mrf.mxu3 }
 0x548   : > { %v1572_v44 = vpop.xlane.xlu2 %1571 }
 0x549   : > { %v1575_v45 = vsub.f32 %v1563_v10, %v1572_v44 }
 0x54b   : > { %v4085_v46 = vpop.eup %3292  ;;  %v1580_v47 = vmul.f32 1.442695, %v1575_v45 }
 0x54c   : > { %v1585_v48 = vsel %vm1439_vm0, %v4085_v46, 0.0 }
 0x54d   : > { %3294 = vpow2.f32 %v1580_v47  ;;  %1586 = vadd.xlane.f32.xlu2 %v1585_v48 }
 0x54f   : > { %v1970_v49 = vpop.f32.mrf.mxu3 }
 0x550   : > { %v1800_v50 = vpop.xlane.xlu1 %1799  ;;  %v1979_v54 = vmul.f32 0.35355338, %v1970_v49  ;;  %v3254_v12 = vpop.permute.xlu2 %3253 }
 0x551   : > { %v1807_v51 = vsub.f32 %v1795_v15, %v1800_v50  ;;  %v3255_v14 = vunpack.i.l.bf16 %v3254_v12  ;;  %v3256_v15 = vunpack.i.h.bf16 %v3254_v12 }
 0x552   : > { %v4094_v57 = vadd.f32 %v1979_v54, %v3957_v58 }
 0x553   : > { %v4089_v52 = vpop.eup %3294  ;;  %v1810_v53 = vmul.f32 1.442695, %v1807_v51 }
 0x554   : > { %v1588_v55 = vsel %vm1439_vm0, %v4089_v52, 0.0  ;;  %v1985_v61 = vsel %vm1439_vm0, %v4094_v57, -inf }
 0x555   : > { %3296 = vpow2.f32 %v1810_v53  ;;  %1589 = vadd.xlane.f32.xlu2 %v1588_v55 }
 0x557   : > { %v1973_v56 = vpop.f32.mrf.mxu3 }
 0x558   : > { %v1980_v60 = vmul.f32 0.35355338, %v1973_v56 }
 0x55a   : > { %v1983_v5 = vadd.f32 %v1980_v60, %v3957_v58 }
 0x55b   : > { %v4096_v59 = vpop.eup %3296 }
 0x55c   : > { %v1816_v62 = vsel %vm1439_vm0, %v4096_v59, 0.0  ;;  %v1988_v63 = vsel %vm1439_vm0, %v1983_v5, -inf }
 0x55d   : > { %1986 = vmax.xlane.f32.xlu2 %v1985_v61  ;;  %v1803_v0 = vpop.xlane.xlu0 %1802  ;;  %1817 = vadd.xlane.f32.xlu0 %v1816_v62 }
 0x55e   : > { %v1808_v1 = vsub.f32 %v1796_v20, %v1803_v0 }
 0x55f   : > { %v1976_v2 = vpop.f32.mrf.mxu3 }
 0x560   : > { %v1812_v3 = vmul.f32 1.442695, %v1808_v1  ;;  %v1981_v4 = vmul.f32 0.35355338, %v1976_v2 }
 0x562   : > { %3298 = vpow2.f32 %v1812_v3  ;;  %v1984_v6 = vadd.f32 %v1981_v4, %v3957_v58 }
 0x564   : > { %v1991_v7 = vsel %vm1439_vm0, %v1984_v6, -inf }
 0x565   : > { %1992 = vmax.xlane.f32.xlu2 %v1991_v7  ;;  %1989 = vmax.xlane.f32.xlu0 %v1988_v63 }
 0x568   : > { %v4106_v8 = vpop.eup %3298  ;;  %v1601_v58 = vpop.permute.xlu1 %1600 }
 0x569   : > { %v1819_v9 = vsel %vm1439_vm0, %v4106_v8, 0.0 }
 0x56a   : > { %1820 = vadd.xlane.f32.xlu1 %v1819_v9 }
 0x570   : > { %v3249_v10 = vpop.permute.xlu0 %3248 }
 0x571   : > { %v3250_v11 = vunpack.i.l.bf16 %v3249_v10  ;;  %v3251_v13 = vunpack.i.h.bf16 %v3249_v10 }
 0x573   : > { %1631 = vmatpush.msra.mxu1 %v3250_v11 }
 0x575   : > { %1632 = vmatpush.msra.mxu1 %v3251_v13 }
 0x577   : > { %1633 = vmatpush.msra.mxu1 %v1601_v58 }
 0x579   : > { %1862 = vmatpush.msrb.mxu1 %v3255_v14  ;;  %1831 = vrot.lane.b32.xlu0 %v3985_v30, %s3511_s8 }
 0x57b   : > { %1863 = vmatpush.msrb.mxu1 %v3256_v15 }
 0x583   : > { %3258 = vrot.lane.b32.xlu1 %v3983_v29, %s3512_s6 }
 0x593   : > { %v1806_v16 = vpop.xlane.xlu1 %1805 }
 0x594   : > { %v1809_v17 = vsub.f32 %v4071_v24, %v1806_v16 }
 0x596   : > { %v1814_v18 = vmul.f32 1.442695, %v1809_v17 }
 0x598   : > { %3300 = vpow2.f32 %v1814_v18 }
 0x59e   : > { %v4115_v19 = vpop.eup %3300 }
 0x59f   : > { %v1822_v20 = vsel %vm1439_vm0, %v4115_v19, 0.0 }
 0x5a3   : > { %1823 = vadd.xlane.f32.xlu0 %v1822_v20 }
 0x5b7   : > { %1652 = vrot.lane.b32.xlu0 %v4016_v33, %s3510_s1 }
 0x5b8   : > { %v1584_v21 = vpop.xlane.xlu1 %1583 }
 0x5b9   : > { %3302 = vrcp.f32 %v1584_v21 }
 0x5bf   : > { %v3303_v22 = vpop.eup %3302  ;;  %1877 = vrot.lane.b32.xlu0 %v4021_v34, %s3511_s8 }
 0x5c0   : > { %v1594_v29 = vmul.f32 %v3303_v22, %v4079_v41  ;;  %v1587_v23 = vpop.xlane.xlu2 %1586 }
 0x5c1   : > { %3304 = vrcp.f32 %v1587_v23 }
 0x5c2   : > { %3067 = vmatmul.msk.f32.vlgmr.msra.gmra.mxu1 %vm1439_vm0, %v1594_v29 }
 0x5c7   : > { %v3305_v24 = vpop.eup %3304  ;;  %1875 = vrot.lane.b32.xlu0 %v4026_v36, %s3511_s8 }
 0x5c8   : > { %v1590_v25 = vpop.xlane.xlu2 %1589  ;;  %v1595_v27 = vmul.f32 %v3305_v24, %v4085_v46 }
 0x5c9   : > { %3306 = vrcp.f32 %v1590_v25 }
 0x5ca   : > { %3068 = vmatmul.msk.f32.gmra.mxu1 %vm1439_vm0, %v1595_v27 }
 0x5cf   : > { %v3307_v32 = vpop.eup %3306  ;;  %2064 = vrot.lane.b32.xlu0 %v4021_v34, %s3512_s6 }
 0x5d0   : > { %v1987_v35 = vpop.xlane.xlu2 %1986  ;;  %v1818_v38 = vpop.xlane.xlu0 %1817  ;;  %v1596_v40 = vmul.f32 %v3307_v32, %v4089_v52 }
 0x5d1   : > { %v1994_v41 = vsub.f32 %v4094_v57, %v1987_v35 }
 0x5d2   : > { %3069 = vmatmul.msk.f32.gmra.mxu1 %vm1439_vm0, %v1596_v40 }
 0x5d3   : > { %v1997_v42 = vmul.f32 1.442695, %v1994_v41 }
 0x5d5   : > { %3308 = vpow2.f32 %v1997_v42 }
 0x5d8   : > { %v1993_v39 = vpop.xlane.xlu2 %1992  ;;  %v1990_v44 = vpop.xlane.xlu0 %1989 }
 0x5d9   : > { %v1996_v45 = vsub.f32 %v1984_v6, %v1993_v39  ;;  %v1995_v46 = vsub.f32 %v1983_v5, %v1990_v44  ;;  %v3265_v44 = vld [vmem:[%s4576_s21] ss:$0 sm:$0xff] }
 0x5db   : > { %v3309_v47 = vpop.eup %3308  ;;  %v2001_v48 = vmul.f32 1.442695, %v1996_v45  ;;  %v1999_v49 = vmul.f32 1.442695, %v1995_v46 }
 0x5dc   : > { %v2003_v50 = vsel %vm1439_vm0, %v3309_v47, 0.0 }
 0x5dd   : > { %3310 = vpow2.f32 %v2001_v48  ;;  %2004 = vadd.xlane.f32.xlu2 %v2003_v50  ;;  %v1821_v55 = vpop.xlane.xlu1 %1820  ;;  %v3344_v50 = vld [vmem:[#allocation2] sm:$0xff] }
 0x5de   : > { %3312 = vpow2.f32 %v1999_v49 }
 0x5df   : > { %3314 = vrcp.f32 %v1818_v38 }
 0x5e0   : > { %3316 = vrcp.f32 %v1821_v55 }
 0x5e3   : > { %v3311_v51 = vpop.eup %3310 }
 0x5e4   : > { %v3313_v52 = vpop.eup %3312  ;;  %v2009_v53 = vsel %vm1439_vm0, %v3311_v51, 0.0 }
 0x5e5   : > { %2010 = vadd.xlane.f32.xlu1 %v2009_v53  ;;  %v2006_v54 = vsel %vm1439_vm0, %v3313_v52, 0.0  ;;  %v3315_v56 = vpop.eup %3314 }
 0x5e6   : > { %2007 = vadd.xlane.f32.xlu2 %v2006_v54  ;;  %v1828_v57 = vmul.f32 %v3315_v56, %v4096_v59  ;;  %v3317_v61 = vpop.eup %3316 }
 0x5e7   : > { %v1829_v62 = vmul.f32 %v3317_v61, %v4106_v8 }
 0x5eb   : > { %v1832_v60 = vpop.permute.xlu0 %1831 }
 0x5ec   : > { %1864 = vmatpush.msrb.mxu1 %v1832_v60  ;;  %v3345_v60 = vld [vmem:[#allocation2 + $0x8] sm:$0xff] }
 0x5ed   : > { %3090 = vmatmul.msk.f32.vlgmr.msrb.gmra.mxu1 %vm1439_vm0, %v1828_v57 }
 0x5f5   : > { %3091 = vmatmul.msk.f32.gmra.mxu1 %vm1439_vm0, %v1829_v62  ;;  %v3259_v0 = vpop.permute.xlu1 %3258 }
 0x5f6   : > { %v3260_v1 = vunpack.i.l.bf16 %v3259_v0  ;;  %v3261_v2 = vunpack.i.h.bf16 %v3259_v0 }
 0x5f8   : > { %2049 = vmatpush.msra.mxu0 %v3260_v1 }
 0x5fa   : > { %2050 = vmatpush.msra.mxu0 %v3261_v2 }
 0x5fe   : > { %2018 = vrot.lane.b32.xlu2 %v3985_v30, %s3512_s6  ;;  %1881 = vrot.lane.b32.xlu1 %v4011_v31, %s3511_s8 }
 0x606   : > { %1654 = vrot.lane.b32.xlu2 %v4011_v31, %s3510_s1  ;;  %2062 = vrot.lane.b32.xlu1 %v4026_v36, %s3512_s6 }
 0x60e   : > { %1650 = vrot.lane.b32.xlu2 %v4021_v34, %s3510_s1 }
 0x616   : > { %v1824_v59 = vpop.xlane.xlu0 %1823  ;;  %1648 = vrot.lane.b32.xlu2 %v4026_v36, %s3510_s1  ;;  %s4580_s1 = scalar_lea.vmem %s4486_s15, %s3723_s7 }
 0x617   : > { %3318 = vrcp.f32 %v1824_v59  ;;  %v3346_v59 = vld [vmem:[#allocation2 + $0x10] sm:$0xff] }
 0x61d   : > { %v3319_v3 = vpop.eup %3318 }
 0x61e   : > { %v1830_v30 = vmul.f32 %v3319_v3, %v4115_v19  ;;  %1879 = vrot.lane.b32.xlu2 %v4016_v33, %s3511_s8 }
 0x620   : > { %3092 = vmatmul.msk.f32.gmra.mxu1 %vm1439_vm0, %v1830_v30  ;;  %v2221_v30 = vld [vmem:[%s3781_s20 + $0x78] sm:$0xff] }
 0x626   : > { %2068 = vrot.lane.b32.xlu2 %v4011_v31, %s3512_s6 }
 0x629   : > { %v1653_v31 = vpop.permute.xlu0 %1652 }
 0x62e   : > { %2066 = vrot.lane.b32.xlu2 %v4016_v33, %s3512_s6  ;;  %s4581_s6 = sld [smem:[#allocation40_spill]] (!%p3135_p1) }
 0x631   : > { %v1878_v58 = vpop.permute.xlu0 %1877 }
 0x639   : > { %v1876_v17 = vpop.permute.xlu0 %1875 }
 0x63f   : > { %v1635_v12 = vpop.f32.mrf.mxu1 }
 0x641   : > { %v2065_v22 = vpop.permute.xlu0 %2064 }
 0x647   : > { %v1638_v15 = vpop.f32.mrf.mxu1 }
 0x64f   : > { %v1641_v19 = vpop.f32.mrf.mxu1 }
 0x650   : > { %v2005_v34 = vpop.xlane.xlu2 %2004 }
 0x651   : > { %3320 = vrcp.f32 %v2005_v34  ;;  %v2220_v34 = vld [vmem:[%s3781_s20 + $0x70] sm:$0xff] }
 0x657   : > { %v3321_v5 = vpop.eup %3320 }
 0x658   : > { %v2015_v36 = vmul.f32 %v3321_v5, %v3309_v47  ;;  %v2011_v7 = vpop.xlane.xlu1 %2010 }
 0x659   : > { %v2008_v4 = vpop.xlane.xlu2 %2007 }
 0x65a   : > { %3322 = vrcp.f32 %v2008_v4  ;;  %v2219_v4 = vld [vmem:[%s3781_s20 + $0x68] sm:$0xff] }
 0x65b   : > { %3324 = vrcp.f32 %v2011_v7 }
 0x660   : > { %v3323_v63 = vpop.eup %3322 }
 0x661   : > { %v2019_v6 = vpop.permute.xlu2 %2018  ;;  %v2016_v9 = vmul.f32 %v3323_v63, %v3313_v52  ;;  %v3325_v33 = vpop.eup %3324 }
 0x662   : > { %2051 = vmatpush.msra.mxu0 %v2019_v6  ;;  %v2017_v11 = vmul.f32 %v3325_v33, %v3311_v51  ;;  %v2218_v6 = vld [vmem:[%s3781_s20 + $0x60] sm:$0xff] }
 0x663   : > { %3106 = vmatmul.msk.f32.vlgmr.msra.gmra.mxu0 %vm1439_vm0, %v2015_v36 }
 0x669   : > { %v1655_v8 = vpop.permute.xlu2 %1654 }
 0x66a   : > { %3070 = vmatpush.xpose.msk.msra.mxu2 %vm1388_vm14, %v1655_v8  ;;  %v1866_v21 = vpop.f32.mrf.mxu1  ;;  %v2217_v8 = vld [vmem:[%s3781_s20 + $0x58] sm:$0xff] }
 0x66b   : > { %3107 = vmatmul.msk.f32.gmra.mxu0 %vm1439_vm0, %v2016_v9 }
 0x66e   : > { %3071 = vmatpush.xpose.msk.msra.mxu2 %vm1388_vm14, %v1653_v31 }
 0x670   : > { %v1882_v13 = vpop.permute.xlu1 %1881 }
 0x671   : > { %v1651_v10 = vpop.permute.xlu2 %1650 }
 0x672   : > { %3072 = vmatpush.xpose.msk.msra.mxu2 %vm1388_vm14, %v1651_v10  ;;  %v1869_v23 = vpop.f32.mrf.mxu1  ;;  %v2216_v10 = vld [vmem:[%s3781_s20 + $0x50] sm:$0xff] }
 0x673   : > { %3108 = vmatmul.msk.f32.gmra.mxu0 %vm1439_vm0, %v2017_v11 }
 0x678   : > { %v2063_v29 = vpop.permute.xlu1 %2062 }
 0x679   : > { %v1649_v14 = vpop.permute.xlu2 %1648 }
 0x67a   : > { %3073 = vmatpush.xpose.msk.msra.mxu2 %vm1388_vm14, %v1649_v14 }
 0x67d   : > { %3074 = vmatmul.msk.f32.vlgmr.msra.gmra.mxu2 %vm1388_vm14, %v1635_v12 }
 0x67e   : > { %3093 = vmatpush.xpose.msk.msrb.mxu2 %vm1388_vm14, %v1882_v13  ;;  %v2215_v13 = vld [vmem:[%s3781_s20 + $0x48] sm:$0xff] }
 0x681   : > { %v1880_v16 = vpop.permute.xlu2 %1879 }
 0x682   : > { %3094 = vmatpush.xpose.msk.msrb.mxu2 %vm1388_vm14, %v1880_v16  ;;  %v2214_v16 = vld [vmem:[%s3781_s20 + $0x40] sm:$0xff] }
 0x685   : > { %3075 = vmatmul.msk.f32.gmra.mxu2 %vm1388_vm14, %v1638_v15 }
 0x686   : > { %3095 = vmatpush.xpose.msk.msrb.mxu2 %vm1388_vm14, %v1878_v58 }
 0x689   : > { %v2069_v18 = vpop.permute.xlu2 %2068 }
 0x68a   : > { %3096 = vmatpush.xpose.msk.msrb.mxu2 %vm1388_vm14, %v1876_v17  ;;  %3109 = vmatpush.xpose.msk.msra.mxu1 %vm1388_vm14, %v2069_v18 }
 0x68d   : > { %3076 = vmatmul.msk.f32.gmra.mxu2 %vm1388_vm14, %v1641_v19  ;;  %v2213_v19 = vld [vmem:[%s3781_s20 + $0x38] sm:$0xff] }
 0x68e   : > { %3116 = vmatpush.xpose.msk.msra.mxu2 %vm1109_vm2, %v2221_v30 }
 0x691   : > { %v2067_v20 = vpop.permute.xlu2 %2066 }
 0x692   : > { %3110 = vmatpush.xpose.msk.msra.mxu1 %vm1388_vm14, %v2067_v20  ;;  %3117 = vmatpush.xpose.msk.msra.mxu2 %vm1109_vm2, %v2220_v34 }
 0x695   : > { %3097 = vmatmul.msk.f32.vlgmr.msrb.gmra.mxu2 %vm1388_vm14, %v1866_v21  ;;  %v2212_v21 = vld [vmem:[%s3781_s20 + $0x30] sm:$0xff] }
 0x696   : > { %3111 = vmatpush.xpose.msk.msra.mxu1 %vm1388_vm14, %v2065_v22  ;;  %3118 = vmatpush.xpose.msk.msra.mxu2 %vm1109_vm2, %v2219_v4  ;;  %v2211_v22 = vld [vmem:[%s3781_s20 + $0x28] sm:$0xff] }
 0x69a   : > { %3112 = vmatpush.xpose.msk.msra.mxu1 %vm1388_vm14, %v2063_v29  ;;  %3119 = vmatpush.xpose.msk.msra.mxu2 %vm1109_vm2, %v2218_v6  ;;  %v2210_v29 = vld [vmem:[%s3781_s20 + $0x20] sm:$0xff] }
 0x69d   : > { %3098 = vmatmul.msk.f32.gmra.mxu2 %vm1388_vm14, %v1869_v23  ;;  %v1872_v24 = vpop.f32.mrf.mxu1  ;;  %v2209_v23 = vld [vmem:[%s3781_s20 + $0x18] sm:$0xff] }
 0x69e   : > { %3120 = vmatpush.xpose.msk.msra.mxu2 %vm1109_vm2, %v2217_v8 }
 0x6a2   : > { %3121 = vmatpush.xpose.msk.msra.mxu2 %vm1109_vm2, %v2216_v10  ;;  %v3268_v10 = vld [vmem:[%s4580_s1] ss:$0 sm:$0xff]  ;;  %s4585_s1 = sld [smem:[#allocation42_spill]] (!%p3135_p1) }
 0x6a5   : > { %3099 = vmatmul.msk.f32.gmra.mxu2 %vm1388_vm14, %v1872_v24  ;;  %v2208_v24 = vld [vmem:[%s3781_s20 + $0x10] sm:$0xff] }
 0x6a6   : > { %3122 = vmatpush.xpose.msk.msra.mxu2 %vm1109_vm2, %v2215_v13 }
 0x6aa   : > { %3123 = vmatpush.xpose.msk.msra.mxu2 %vm1109_vm2, %v2214_v16 }
 0x6ae   : > { %3124 = vmatpush.xpose.msk.msra.mxu2 %vm1109_vm2, %v2213_v19 }
 0x6b2   : > { %3125 = vmatpush.xpose.msk.msra.mxu2 %vm1109_vm2, %v2212_v21 }
 0x6b6   : > { %3126 = vmatpush.xpose.msk.msra.mxu2 %vm1109_vm2, %v2211_v22 }
 0x6ba   : > { %3127 = vmatpush.xpose.msk.msra.mxu2 %vm1109_vm2, %v2210_v29 }
 0x6be   : > { %3128 = vmatpush.xpose.msk.msra.mxu2 %vm1109_vm2, %v2209_v23 }
 0x6c2   : > { %3129 = vmatpush.xpose.msk.msra.mxu2 %vm1109_vm2, %v2208_v24 }
 0x6e0   : > { %v2053_v25 = vpop.f32.mrf.mxu0 }
 0x6e1   : > { %3113 = vmatmul.msk.f32.vlgmr.msra.gmra.mxu1 %vm1388_vm14, %v2053_v25  ;;  %v2207_v25 = vld [vmem:[%s3781_s20 + $0x8] sm:$0xff] }
 0x6e2   : > { %3130 = vmatpush.xpose.msk.msra.mxu2 %vm1109_vm2, %v2207_v25  ;;  %v2430_v25 = vld [vmem:[%s3790_s10 + $0x8] sm:$0xff] }
 0x6e8   : > { %v2056_v27 = vpop.f32.mrf.mxu0 }
 0x6e9   : > { %3114 = vmatmul.msk.f32.gmra.mxu1 %vm1388_vm14, %v2056_v27  ;;  %v2206_v27 = vld [vmem:[%s3781_s20] sm:$0xff] }
 0x6ea   : > { %3131 = vmatpush.xpose.msk.msra.mxu2 %vm1109_vm2, %v2206_v27 }
 0x6f0   : > { %v2059_v32 = vpop.f32.mrf.mxu0 }
 0x6f1   : > { %3115 = vmatmul.msk.f32.gmra.mxu1 %vm1388_vm14, %v2059_v32 }
 0x700   : > { %v1690_v35 = vpop.f32.mrf.mxu2 }
 0x701   : > { %v1734_v42 = vadd.f32 %v4075_v26, %v1690_v35 }
 0x708   : > { %v1693_v38 = vpop.f32.mrf.mxu2 }
 0x709   : > { %v1737_v49 = vadd.f32 %v4077_v37, %v1693_v38 }
 0x710   : > { %v1696_v40 = vpop.f32.mrf.mxu2 }
 0x711   : > { %v1740_v57 = vadd.f32 %v4083_v43, %v1696_v40 }
 0x718   : > { %v1917_v41 = vpop.f32.mrf.mxu2 }
 0x719   : > { %v1926_v39 = vadd.f32 %v1917_v41, %v1734_v42 }
 0x720   : > { %v1920_v47 = vpop.f32.mrf.mxu2 }
 0x721   : > { %v1927_v52 = vadd.f32 %v1920_v47, %v1737_v49 }
 0x728   : > { %v1923_v56 = vpop.f32.mrf.mxu2 }
 0x729   : > { %v1928_v37 = vadd.f32 %v1923_v56, %v1740_v57 }
 0x75e   : > { %v2104_v45 = vpop.f32.mrf.mxu1 }
 0x75f   : > { %v2113_v46 = vadd.f32 %v2104_v45, %v1926_v39 }
 0x761   : > { %v2120_v48 = vadd.f32 %v3265_v44, %v2113_v46 }
 0x763   : > { %v4192_v51 = vadd.f32 %v3344_v50, %v2120_v48 }
 0x765   : > { %v2128_v53 = vsel %vm1109_vm2, %v4192_v51, 0.0 }
 0x766   : > { %2129 = vadd.xlane.f32.xlu2 %v2128_v53  ;;  %v2107_v26 = vpop.f32.mrf.mxu1 }
 0x767   : > { %v2114_v54 = vadd.f32 %v2107_v26, %v1927_v52 }
 0x769   : > { %v2121_v55 = vadd.f32 %v3265_v44, %v2114_v54  ;;  %v3266_v54 = vld [vmem:[%s4577_s19] ss:$0 sm:$0xff] }
 0x76b   : > { %v4197_v61 = vadd.f32 %v3345_v60, %v2121_v55  ;;  %v3267_v60 = vld [vmem:[%s4579_s0] ss:$0 sm:$0xff]  ;;  %s4584_s0 = sld [smem:[#allocation39_spill]] (!%p3135_p1) }
 0x76d   : > { %v2131_v62 = vsel %vm1109_vm2, %v4197_v61, 0.0 }
 0x76e   : > { %2132 = vadd.xlane.f32.xlu0 %v2131_v62  ;;  %v2110_v0 = vpop.f32.mrf.mxu1 }
 0x76f   : > { %v2115_v1 = vadd.f32 %v2110_v0, %v1928_v37 }
 0x771   : > { %v2122_v2 = vadd.f32 %v3265_v44, %v2115_v1 }
 0x773   : > { %v4201_v3 = vadd.f32 %v3346_v59, %v2122_v2 }
 0x775   : > { %v2134_v43 = vsel %vm1109_vm2, %v4201_v3, 0.0 }
 0x776   : > { %2135 = vadd.xlane.f32.xlu1 %v2134_v43 }
 0x7d9   : > { %v2130_v5 = vpop.xlane.xlu2 %2129 }
 0x7da   : > { %v2137_v36 = vmul.f32 %v2130_v5, %v3846_v28 }
 0x7dc   : > { %v4214_v7 = vsub.f32 %v4192_v51, %v2137_v36 }
 0x7de   : > { %v2143_v63 = vmul.f32 %v4214_v7, %v4214_v7 }
 0x7e0   : > { %v2146_v9 = vsel %vm1109_vm2, %v2143_v63, 0.0 }
 0x7e1   : > { %2147 = vadd.xlane.f32.xlu2 %v2146_v9  ;;  %v2133_v31 = vpop.xlane.xlu0 %2132 }
 0x7e2   : > { %v2138_v33 = vmul.f32 %v2133_v31, %v3846_v28 }
 0x7e4   : > { %v4225_v11 = vsub.f32 %v4197_v61, %v2138_v33 }
 0x7e6   : > { %v2144_v12 = vmul.f32 %v4225_v11, %v4225_v11 }
 0x7e8   : > { %v2149_v14 = vsel %vm1109_vm2, %v2144_v12, 0.0 }
 0x7e9   : > { %2150 = vadd.xlane.f32.xlu0 %v2149_v14  ;;  %v2136_v58 = vpop.xlane.xlu1 %2135 }
 0x7ea   : > { %v2139_v15 = vmul.f32 %v2136_v58, %v3846_v28 }
 0x7ec   : > { %v4236_v17 = vsub.f32 %v4201_v3, %v2139_v15 }
 0x7ee   : > { %v2145_v18 = vmul.f32 %v4236_v17, %v4236_v17 }
 0x7f0   : > { %v2152_v20 = vsel %vm1109_vm2, %v2145_v18, 0.0  ;;  %v2432_v18 = vld [vmem:[%s3790_s10 + $0x18] sm:$0xff] }
 0x7f1   : > { %2153 = vadd.xlane.f32.xlu2 %v2152_v20  ;;  %2449 = vmatpush.xpose.msra.mxu3 %v2432_v18  ;;  %v2431_v20 = vld [vmem:[%s3790_s10 + $0x10] sm:$0xff] }
 0x7f5   : > { %2450 = vmatpush.xpose.msra.mxu3 %v2431_v20 }
 0x7f9   : > { %2451 = vmatpush.xpose.msra.mxu3 %v2430_v25 }
 0x854   : > { %v2148_v32 = vpop.xlane.xlu2 %2147 }
 0x855   : > { %v2155_v35 = vmul.f32 %v2148_v32, %v3846_v28 }
 0x857   : > { %v2158_v38 = vadd.f32 1e-06, %v2155_v35 }
 0x859   : > { %3326 = vrsqrt.f32 %v2158_v38  ;;  %vm2167_vm3 = vweird.f32 %v2158_v38 }
 0x85c   : > { %v2151_v40 = vpop.xlane.xlu0 %2150 }
 0x85d   : > { %v2156_v41 = vmul.f32 %v2151_v40, %v3846_v28 }
 0x85f   : > { %v3327_v42 = vpop.eup %3326  ;;  %v2159_v39 = vadd.f32 1e-06, %v2156_v41 }
 0x860   : > { %v2162_v44 = vmul.f32 %v3327_v42, %v2158_v38  ;;  %vm2168_vm1 = vweird.f32 %v3327_v42 }
 0x861   : > { %3328 = vrsqrt.f32 %v2159_v39  ;;  %vm2169_vm4 = vmor %vm2167_vm3, %vm2168_vm1  ;;  %vm2177_vm6 = vweird.f32 %v2159_v39 }
 0x862   : > { %v2163_v45 = vmul.f32 %v3327_v42, %v2162_v44 }
 0x864   : > { %v2164_v46 = vmul.f32 0.5, %v2163_v45  ;;  %v2154_v47 = vpop.xlane.xlu2 %2153 }
 0x865   : > { %v2157_v48 = vmul.f32 %v2154_v47, %v3846_v28 }
 0x866   : > { %v2165_v49 = vsub.f32 1.5, %v2164_v46 }
 0x867   : > { %v3329_v50 = vpop.eup %3328  ;;  %v2160_v52 = vadd.f32 1e-06, %v2157_v48 }
 0x868   : > { %v2166_v53 = vmul.f32 %v3327_v42, %v2165_v49  ;;  %v2172_v26 = vmul.f32 %v3329_v50, %v2159_v39  ;;  %vm2178_vm5 = vweird.f32 %v3329_v50 }
 0x869   : > { %3330 = vrsqrt.f32 %v2160_v52  ;;  %vm2179_vm7 = vmor %vm2177_vm6, %vm2178_vm5  ;;  %vm2187_vm9 = vweird.f32 %v2160_v52 }
 0x86a   : > { %v2170_v55 = vsel %vm2169_vm4, %v3327_v42, %v2166_v53  ;;  %v2173_v56 = vmul.f32 %v3329_v50, %v2172_v26  ;;  %v2429_v42 = vld [vmem:[%s3790_s10] sm:$0xff] }
 0x86b   : > { %v2191_v57 = vmul.f32 %v2170_v55, %v4214_v7  ;;  %2452 = vmatpush.xpose.msra.mxu3 %v2429_v42 }
 0x86c   : > { %v2174_v37 = vmul.f32 0.5, %v2173_v56 }
 0x86d   : > { %v2197_v62 = vmul.f32 %v3266_v54, %v2191_v57 }
 0x86e   : > { %v2175_v0 = vsub.f32 1.5, %v2174_v37 }
 0x86f   : > { %v3331_v1 = vpop.eup %3330  ;;  %v2203_v2 = vadd.f32 %v3267_v60, %v2197_v62 }
 0x870   : > { %v2176_v59 = vmul.f32 %v3329_v50, %v2175_v0  ;;  %v2182_v43 = vmul.f32 %v3331_v1, %v2160_v52  ;;  %vm2188_vm8 = vweird.f32 %v3331_v1 }
 0x871   : > { %3132 = vmatmul.msk.f32.vlgmr.msra.gmra.mxu2 %vm1109_vm2, %v2203_v2  ;;  %vm2189_vm10 = vmor %vm2187_vm9, %vm2188_vm8 }
 0x872   : > { %v2180_v30 = vsel %vm2179_vm7, %v3329_v50, %v2176_v59  ;;  %v2183_v34 = vmul.f32 %v3331_v1, %v2182_v43 }
 0x873   : > { %v2192_v4 = vmul.f32 %v2180_v30, %v4225_v11 }
 0x874   : > { %v2184_v5 = vmul.f32 0.5, %v2183_v34 }
 0x875   : > { %v2198_v36 = vmul.f32 %v3266_v54, %v2192_v4 }
 0x876   : > { %v2185_v6 = vsub.f32 1.5, %v2184_v5 }
 0x877   : > { %v2204_v7 = vadd.f32 %v3267_v60, %v2198_v36 }
 0x878   : > { %v2186_v63 = vmul.f32 %v3331_v1, %v2185_v6 }
 0x879   : > { %3133 = vmatmul.msk.f32.gmra.mxu2 %vm1109_vm2, %v2204_v7 }
 0x87a   : > { %v2190_v8 = vsel %vm2189_vm10, %v3331_v1, %v2186_v63 }
 0x87b   : > { %v2193_v9 = vmul.f32 %v2190_v8, %v4236_v17 }
 0x87d   : > { %v2199_v31 = vmul.f32 %v3266_v54, %v2193_v9 }
 0x87f   : > { %v2205_v33 = vadd.f32 %v3267_v60, %v2199_v31 }
 0x881   : > { %3134 = vmatmul.msk.f32.gmra.mxu2 %vm1109_vm2, %v2205_v33 }
 0x8f4   : > { %v2300_v11 = vpop.f32.mrf.mxu2 }
 0x8f5   : > { %v4282_v12 = vadd.f32 %v3268_v10, %v2300_v11 }
 0x8f7   : > { %v4285_v13 = vmul.f32 0.70710677, %v4282_v12 }
 0x8f9   : > { %v2321_v14 = vand.u32 2147483647, %v4285_v13  ;;  %vm2315_vm8 = vcmp.ge.f32.partialorder %v4285_v13, 0.0 }
 0x8fb   : > { %v2324_v58 = vmul.f32 0.3275911, %v2321_v14  ;;  %v2402_v53 = vsub.f32 0.0, %v2321_v14 }
 0x8fc   : > { %v2303_v15 = vpop.f32.mrf.mxu2 }
 0x8fd   : > { %v2327_v16 = vadd.f32 1.0, %v2324_v58  ;;  %v4288_v17 = vadd.f32 %v3268_v10, %v2303_v15  ;;  %v2405_v60 = vmul.f32 %v2402_v53, %v2321_v14 }
 0x8ff   : > { %3332 = vrcp.f32 %v2327_v16  ;;  %v4292_v19 = vmul.f32 0.70710677, %v4288_v17  ;;  %v2341_v40 = vand.u32 2147483648, %v2327_v16  ;;  %v2339_v44 = vand.u32 2147483647, %v2327_v16 }
 0x900   : > { %vm2335_vm12 = vweird.f32 %v2327_v16  ;;  %v2408_v34 = vmul.f32 1.442695, %v2405_v60 }
 0x901   : > { %v4296_v21 = vand.u32 2147483647, %v4292_v19  ;;  %v2342_v47 = vor.u32 1.1754944e-38, %v2341_v40  ;;  %vm2340_vm14 = vcmp.eq.f32.partialorder %v2339_v44, 8.507059e+37  ;;  %vm2316_vm9 = vcmp.ge.f32.partialorder %v4292_v19, 0.0 }
 0x903   : > { %v2325_v22 = vmul.f32 0.3275911, %v4296_v21  ;;  %v2403_v36 = vsub.f32 0.0, %v4296_v21 }
 0x904   : > { %v2306_v29 = vpop.f32.mrf.mxu2 }
 0x905   : > { %v3333_v23 = vpop.eup %3332  ;;  %v4299_v24 = vadd.f32 %v3268_v10, %v2306_v29  ;;  %v2328_v32 = vadd.f32 1.0, %v2325_v22  ;;  %v2406_v14 = vmul.f32 %v2403_v36, %v4296_v21 }
 0x906   : > { %v2331_v27 = vmul.f32 %v3333_v23, %v2327_v16  ;;  %vm2336_vm11 = vweird.f32 %v3333_v23 }
 0x907   : > { %v4303_v35 = vmul.f32 0.70710677, %v4299_v24  ;;  %3334 = vrcp.f32 %v2328_v32  ;;  %vm2337_vm13 = vmor %vm2335_vm12, %vm2336_vm11  ;;  %v2356_v57 = vand.u32 2147483648, %v2328_v32  ;;  %v2354_v62 = vand.u32 2147483647, %v2328_v32 }
 0x908   : > { %v2332_v38 = vsub.f32 1.0, %v2331_v27  ;;  %vm2350_vm0 = vweird.f32 %v2328_v32  ;;  %v2410_v27 = vmul.f32 1.442695, %v2406_v14 }
 0x909   : > { %v4306_v41 = vand.u32 2147483647, %v4303_v35  ;;  %v2357_v30 = vor.u32 1.1754944e-38, %v2356_v57  ;;  %vm2355_vm3 = vcmp.eq.f32.partialorder %v2354_v62, 8.507059e+37  ;;  %vm2317_vm10 = vcmp.ge.f32.partialorder %v4303_v35, 0.0 }
 0x90a   : > { %v2333_v39 = vmul.f32 %v3333_v23, %v2332_v38 }
 0x90b   : > { %v2326_v45 = vmul.f32 0.3275911, %v4306_v41  ;;  %v2404_v22 = vsub.f32 0.0, %v4306_v41 }
 0x90c   : > { %v2334_v46 = vadd.f32 %v3333_v23, %v2333_v39 }
 0x90d   : > { %v2329_v48 = vadd.f32 1.0, %v2326_v45  ;;  %v3335_v49 = vpop.eup %3334  ;;  %v2407_v39 = vmul.f32 %v2404_v22, %v4306_v41 }
 0x90e   : > { %v2338_v50 = vsel %vm2337_vm13, %v3333_v23, %v2334_v46  ;;  %v2346_v26 = vmul.f32 %v3335_v49, %v2328_v32  ;;  %vm2351_vm15 = vweird.f32 %v3335_v49 }
 0x90f   : > { %v2343_v52 = vsel %vm2340_vm14, %v2342_v47, %v2338_v50  ;;  %3336 = vrcp.f32 %v2329_v48  ;;  %vm2352_vm1 = vmor %vm2350_vm0, %vm2351_vm15  ;;  %v2371_v8 = vand.u32 2147483648, %v2329_v48  ;;  %v2369_v33 = vand.u32 2147483647, %v2329_v48 }
 0x910   : > { %v2375_v54 = vmul.f32 1.0614054, %v2343_v52  ;;  %v2347_v55 = vsub.f32 1.0, %v2346_v26  ;;  %3338 = vpow2.f32 %v2408_v34  ;;  %vm2365_vm5 = vweird.f32 %v2329_v48 }
 0x911   : > { %v2372_v16 = vor.u32 1.1754944e-38, %v2371_v8  ;;  %vm2370_vm7 = vcmp.eq.f32.partialorder %v2369_v33, 8.507059e+37  ;;  %3340 = vpow2.f32 %v2410_v27  ;;  %v3513_v47 = vmov -1.0  }
 0x912   : > { %v2378_v56 = vadd.f32 -1.4531521, %v2375_v54  ;;  %v2348_v37 = vmul.f32 %v3335_v49, %v2347_v55  ;;  %v2309_v54 = vmul.f32 0.5, %v4282_v12  ;;  %v2310_v12 = vmul.f32 0.5, %v4288_v17 }
 0x913   : > { %v2320_v19 = vsel %vm2317_vm10, 1.0, %v3513_v47 }
 0x914   : > { %v2381_v0 = vmul.f32 %v2378_v56, %v2343_v52  ;;  %v2349_v2 = vadd.f32 %v3335_v49, %v2348_v37 }
 0x915   : > { %v3337_v1 = vpop.eup %3336 }
 0x916   : > { %v2384_v59 = vadd.f32 1.4214138, %v2381_v0  ;;  %v2361_v43 = vmul.f32 %v3337_v1, %v2329_v48  ;;  %v2353_v4 = vsel %vm2352_vm1, %v3335_v49, %v2349_v2  ;;  %vm2366_vm4 = vweird.f32 %v3337_v1  ;;  %v3339_v38 = vpop.eup %3338 }
 0x917   : > { %v2358_v7 = vsel %vm2355_vm3, %v2357_v30, %v2353_v4  ;;  %vm2367_vm6 = vmor %vm2365_vm5, %vm2366_vm4  ;;  %v2318_v48 = vsel %vm2315_vm8, 1.0, %v3513_v47  ;;  %v3341_v57 = vpop.eup %3340 }
 0x918   : > { %v2387_v5 = vmul.f32 %v2384_v59, %v2343_v52  ;;  %v2362_v6 = vsub.f32 1.0, %v2361_v43  ;;  %v2376_v63 = vmul.f32 1.0614054, %v2358_v7 }
 0x91a   : > { %v2390_v9 = vadd.f32 -0.28449672, %v2387_v5  ;;  %v2363_v31 = vmul.f32 %v3337_v1, %v2362_v6  ;;  %v2379_v10 = vadd.f32 -1.4531521, %v2376_v63 }
 0x91c   : > { %v2393_v11 = vmul.f32 %v2390_v9, %v2343_v52  ;;  %v2364_v58 = vadd.f32 %v3337_v1, %v2363_v31  ;;  %v2382_v15 = vmul.f32 %v2379_v10, %v2358_v7  ;;  %v3269_v9 = vld [vmem:[%s1032_s4] ss:$0 sm:$0xff] }
 0x91e   : > { %v2396_v18 = vadd.f32 0.2548296, %v2393_v11  ;;  %v2368_v20 = vsel %vm2367_vm6, %v3337_v1, %v2364_v58  ;;  %v2385_v29 = vadd.f32 1.4214138, %v2382_v15  ;;  %v2319_v1 = vsel %vm2316_vm9, 1.0, %v3513_v47 }
 0x91f   : > { %v2373_v23 = vsel %vm2370_vm7, %v2372_v16, %v2368_v20 }
 0x920   : > { %v2399_v25 = vmul.f32 %v2396_v18, %v2343_v52  ;;  %v2377_v32 = vmul.f32 1.0614054, %v2373_v23  ;;  %v2388_v40 = vmul.f32 %v2385_v29, %v2358_v7  ;;  %v2412_v52 = vmul.f32 1.442695, %v2407_v39 }
 0x922   : > { %v2414_v21 = vmul.f32 %v3339_v38, %v2399_v25  ;;  %v2380_v42 = vadd.f32 -1.4531521, %v2377_v32  ;;  %v2391_v44 = vadd.f32 -0.28449672, %v2388_v40  ;;  %3342 = vpow2.f32 %v2412_v52 }
 0x924   : > { %v2417_v45 = vsub.f32 1.0, %v2414_v21  ;;  %v2383_v46 = vmul.f32 %v2380_v42, %v2373_v23  ;;  %v2394_v49 = vmul.f32 %v2391_v44, %v2358_v7 }
 0x926   : > { %v2420_v50 = vmul.f32 %v2417_v45, %v2318_v48  ;;  %v2386_v53 = vadd.f32 1.4214138, %v2383_v46  ;;  %v2397_v26 = vadd.f32 0.2548296, %v2394_v49 }
 0x928   : > { %v2423_v55 = vadd.f32 1.0, %v2420_v50  ;;  %v2389_v56 = vmul.f32 %v2386_v53, %v2373_v23  ;;  %v2400_v13 = vmul.f32 %v2397_v26, %v2358_v7  ;;  %v3343_v30 = vpop.eup %3342  ;;  %v2311_v7 = vmul.f32 0.5, %v4299_v24 }
 0x92a   : > { %v2426_v60 = vmul.f32 %v2423_v55, %v2309_v54  ;;  %v2392_v37 = vadd.f32 -0.28449672, %v2389_v56  ;;  %v2415_v41 = vmul.f32 %v3341_v57, %v2400_v13 }
 0x92c   : > { %2453 = vmatmul.f32.vlgmr.msra.gmra.mxu3 %v2426_v60  ;;  %v2395_v62 = vmul.f32 %v2392_v37, %v2373_v23  ;;  %v2418_v0 = vsub.f32 1.0, %v2415_v41 }
 0x92e   : > { %v2398_v2 = vadd.f32 0.2548296, %v2395_v62  ;;  %v2421_v59 = vmul.f32 %v2418_v0, %v2319_v1 }
 0x930   : > { %v2401_v43 = vmul.f32 %v2398_v2, %v2373_v23  ;;  %v2424_v34 = vadd.f32 1.0, %v2421_v59 }
 0x932   : > { %v2416_v4 = vmul.f32 %v3343_v30, %v2401_v43  ;;  %v2427_v5 = vmul.f32 %v2424_v34, %v2310_v12 }
 0x934   : > { %v2419_v36 = vsub.f32 1.0, %v2416_v4  ;;  %2456 = vmatmul.f32.gmra.mxu3 %v2427_v5 }
 0x936   : > { %v2422_v6 = vmul.f32 %v2419_v36, %v2320_v19 }
 0x938   : > { %v2425_v63 = vadd.f32 1.0, %v2422_v6 }
 0x93a   : > { %v2428_v8 = vmul.f32 %v2425_v63, %v2311_v7 }
 0x93c   : > { %2459 = vmatmul.f32.gmra.mxu3 %v2428_v8 }
 0x9af   : > { %v2454_v17 = vpop.f32.mrf.mxu3 }
 0x9b0   : > { %v2455_v31 = vadd.f32 %v3269_v9, %v2454_v17 }
 0x9b2   : > { %v2463_v35 = vadd.f32 %v2455_v31, %v4192_v51 }
 0x9b4   : > { %2466 = vst.msk [vmem:[#allocation2] sm:$0xff] %vm1109_vm2, %v2463_v35 }
 0x9b7   : > { %v2457_v33 = vpop.f32.mrf.mxu3 }
 0x9b8   : > { %v2458_v10 = vadd.f32 %v3269_v9, %v2457_v33 }
 0x9ba   : > { %v2464_v11 = vadd.f32 %v2458_v10, %v4197_v61 }
 0x9bc   : > { %2467 = vst.msk [vmem:[#allocation2 + $0x8] sm:$0xff] %vm1109_vm2, %v2464_v11 }
 0x9bf   : > { %v2460_v24 = vpop.f32.mrf.mxu3 }
 0x9c0   : > { %v2461_v14 = vadd.f32 %v3269_v9, %v2460_v24  ;;  %2472 = sbr.rel (%p3135_p1) target bundleno = 3058 (0xbf2), region = 116 }
 0x9c2   : > { %v2465_v58 = vadd.f32 %v2461_v14, %v4201_v3 }
 0x9c4   : > { %2468 = vst.msk [vmem:[#allocation2 + $0x10] sm:$0xff] %vm1109_vm2, %v2465_v58 }
 0x9c5   : > { %v2473_v15 = vld [vmem:[#allocation2] sm:$0xff]  ;;  %v2474_v16 = vld [vmem:[#allocation2 + $0x8] sm:$0xff]  ;;  %vm2594_vm11 = vcmask 256000   ;;  %vm2560_vm15 = vcmask 253952   ;;  %vm2686_vm10 = vcmask 73728  }
 0x9c6   : > { %v2478_v51 = vsel %vm1109_vm2, %v2473_v15, 0.0  ;;  %v4336_v61 = vld [vmem:[%s4581_s6] sm:$0x7]  ;;  %v2481_v18 = vsel %vm1109_vm2, %v2474_v16, 0.0  ;;  %v2655_v44 = vld [vmem:[%s4582_s29 + $0x8] sm:$0x3] }
 0x9c7   : > { %2479 = vadd.xlane.f32.xlu0 %v2478_v51  ;;  %v2593_v3 = vmul.f32 %v4336_v61, %v4336_v61  ;;  %2482 = vadd.xlane.f32.xlu2 %v2481_v18  ;;  %v2654_v46 = vld [vmem:[%s4582_s29] sm:$0xff] }
 0x9c8   : > { %3138 = vmatpush.xpose.msk.msra.mxu1 %vm1109_vm2, %v2655_v44  ;;  %v4362_v56 = vld [vmem:[%s4583_s22] ss:$0 sm:$0xff] }
 0x9c9   : > { %v2595_v20 = vsel %vm2594_vm11, %v2593_v3, 0.0  ;;  %v4367_v37 = vld [vmem:[%s4584_s0] ss:$0 sm:$0xff] }
 0x9ca   : > { %2596 = vadd.xlane.f32.xlu1 %v2595_v20  ;;  %v2656_v44 = vld [vmem:[%s4585_s1] sm:$0x1] }
 0x9cb   : > { %v2475_v22 = vld [vmem:[#allocation2 + $0x10] sm:$0xff] }
 0x9cc   : > { %v2484_v29 = vsel %vm1109_vm2, %v2475_v22, 0.0  ;;  %3139 = vmatpush.xpose.msk.msra.mxu1 %vm1109_vm2, %v2654_v46 }
 0x9cf   : > { %2485 = vadd.xlane.f32.xlu2 %v2484_v29 }
 0xa3a   : > { %v2480_v23 = vpop.xlane.xlu0 %2479  ;;  %v2483_v40 = vpop.xlane.xlu2 %2482 }
 0xa3b   : > { %v2487_v25 = vmul.f32 %v2480_v23, %v3846_v28  ;;  %v2488_v21 = vmul.f32 %v2483_v40, %v3846_v28 }
 0xa3d   : > { %v2490_v27 = vsub.f32 %v2473_v15, %v2487_v25  ;;  %v4345_v42 = vsub.f32 %v2474_v16, %v2488_v21  ;;  %v2597_v12 = vpop.xlane.xlu1 %2596 }
 0xa3e   : > { %vm2605_vm0 = vcmp.eq.f32.partialorder %v2597_v12, inf  ;;  %v2608_v63 = vand.u32 2147483648, %v2597_v12  ;;  %vm2607_vm1 = vcmp.eq.f32.partialorder %v2597_v12, 0.0 }
 0xa3f   : > { %v2493_v32 = vmul.f32 %v2490_v27, %v2490_v27  ;;  %v2494_v39 = vmul.f32 %v4345_v42, %v4345_v42 }
 0xa41   : > { %v2496_v38 = vsel %vm1109_vm2, %v2493_v32, 0.0  ;;  %v2499_v45 = vsel %vm1109_vm2, %v2494_v39, 0.0 }
 0xa42   : > { %2497 = vadd.xlane.f32.xlu0 %v2496_v38  ;;  %v2486_v57 = vpop.xlane.xlu2 %2485 }
 0xa43   : > { %v2489_v62 = vmul.f32 %v2486_v57, %v3846_v28 }
 0xa45   : > { %v4379_v1 = vsub.f32 %v2475_v22, %v2489_v62 }
 0xa47   : > { %v2495_v43 = vmul.f32 %v4379_v1, %v4379_v1 }
 0xa49   : > { %v2502_v30 = vsel %vm1109_vm2, %v2495_v43, 0.0 }
 0xa4a   : > { %2500 = vadd.xlane.f32.xlu0 %v2499_v45 }
 0xab5   : > { %v2498_v47 = vpop.xlane.xlu0 %2497 }
 0xab6   : > { %v2505_v48 = vmul.f32 %v2498_v47, %v3846_v28 }
 0xab8   : > { %v2508_v49 = vadd.f32 1e-06, %v2505_v48 }
 0xaba   : > { %3349 = vrsqrt.f32 %v2508_v49  ;;  %vm2517_vm13 = vweird.f32 %v2508_v49 }
 0xabb   : > { %3351 = vrsqrt.f32 %v2597_v12 }
 0xabd   : > { %v2501_v35 = vpop.xlane.xlu0 %2500 }
 0xabe   : > { %v2506_v10 = vmul.f32 %v2501_v35, %v3846_v28 }
 0xac0   : > { %v3350_v50 = vpop.eup %3349  ;;  %v2509_v24 = vadd.f32 1e-06, %v2506_v10 }
 0xac1   : > { %v2512_v53 = vmul.f32 %v3350_v50, %v2508_v49  ;;  %vm2518_vm12 = vweird.f32 %v3350_v50  ;;  %v3352_v34 = vpop.eup %3351 }
 0xac2   : > { %vm2519_vm14 = vmor %vm2517_vm13, %vm2518_vm12  ;;  %v2599_v4 = vmul.f32 %v3352_v34, %v2597_v12  ;;  %vm2527_vm7 = vweird.f32 %v2509_v24 }
 0xac3   : > { %v2513_v52 = vmul.f32 %v3350_v50, %v2512_v53 }
 0xac4   : > { %v2600_v5 = vmul.f32 %v3352_v34, %v2599_v4 }
 0xac5   : > { %v2514_v26 = vmul.f32 0.5, %v2513_v52 }
 0xac6   : > { %v2601_v36 = vmul.f32 0.5, %v2600_v5 }
 0xac7   : > { %v2515_v54 = vsub.f32 1.5, %v2514_v26 }
 0xac8   : > { %v2602_v19 = vsub.f32 1.5, %v2601_v36 }
 0xac9   : > { %v2516_v55 = vmul.f32 %v3350_v50, %v2515_v54 }
 0xaca   : > { %v2603_v6 = vmul.f32 %v3352_v34, %v2602_v19 }
 0xacb   : > { %v2520_v13 = vsel %vm2519_vm14, %v3350_v50, %v2516_v55 }
 0xacc   : > { %v2541_v60 = vmul.f32 %v2520_v13, %v2490_v27  ;;  %v2604_v7 = vmul.f32 %v2603_v6, %v2597_v12 }
 0xace   : > { %v2547_v41 = vmul.f32 %v4362_v56, %v2541_v60  ;;  %v2606_v8 = vsel %vm2605_vm0, %v2597_v12, %v2604_v7 }
 0xacf   : > { %v2609_v9 = vsel %vm2607_vm1, %v2608_v63, %v2606_v8 }
 0xad0   : > { %v4372_v0 = vadd.f32 %v4367_v37, %v2547_v41  ;;  %v2610_v17 = vmax.f32 %v2609_v9, 1e-12 }
 0xad2   : > { %2556 = vst.msk [vmem:[%s3799_s13] sm:$0xff] %vm1109_vm2, %v4372_v0  ;;  %3140 = vmatmul.msk.f32.vlgmr.msra.gmra.mxu1 %vm1109_vm2, %v4372_v0  ;;  %v2559_v2 = vmul.f32 %v4372_v0, %v4372_v0  ;;  %3353 = vrcp.f32 %v2610_v17  ;;  %v2622_v58 = vand.u32 2147483648, %v2610_v17  ;;  %vm2616_vm3 = vweird.f32 %v2610_v17 }
 0xad3   : > { %3355 = vrsqrt.f32 %v2509_v24  ;;  %v2620_v51 = vand.u32 2147483647, %v2610_v17 }
 0xad4   : > { %v2561_v59 = vsel %vm2560_vm15, %v2559_v2, 0.0  ;;  %v2623_v16 = vor.u32 1.1754944e-38, %v2622_v58 }
 0xad5   : > { %2562 = vadd.xlane.f32.xlu1 %v2561_v59  ;;  %vm2621_vm6 = vcmp.eq.f32.partialorder %v2620_v51, 8.507059e+37 }
 0xad8   : > { %v3354_v31 = vpop.eup %3353 }
 0xad9   : > { %v2612_v33 = vmul.f32 %v3354_v31, %v2610_v17  ;;  %vm2617_vm4 = vweird.f32 %v3354_v31  ;;  %v3356_v22 = vpop.eup %3355 }
 0xada   : > { %vm2618_vm5 = vmor %vm2616_vm3, %vm2617_vm4  ;;  %v2522_v29 = vmul.f32 %v3356_v22, %v2509_v24  ;;  %vm2528_vm8 = vweird.f32 %v3356_v22 }
 0xadb   : > { %v2613_v11 = vsub.f32 1.0, %v2612_v33  ;;  %vm2529_vm9 = vmor %vm2527_vm7, %vm2528_vm8 }
 0xadc   : > { %v2523_v23 = vmul.f32 %v3356_v22, %v2522_v29 }
 0xadd   : > { %2503 = vadd.xlane.f32.xlu1 %v2502_v30  ;;  %v2614_v14 = vmul.f32 %v3354_v31, %v2613_v11 }
 0xade   : > { %v2524_v25 = vmul.f32 0.5, %v2523_v23 }
 0xadf   : > { %v2615_v15 = vadd.f32 %v3354_v31, %v2614_v14 }
 0xae0   : > { %v2525_v27 = vsub.f32 1.5, %v2524_v25 }
 0xae1   : > { %v2619_v18 = vsel %vm2618_vm5, %v3354_v31, %v2615_v15  ;;  %vm2652_vm5 = vcmask 16384  }
 0xae2   : > { %v2624_v3 = vsel %vm2621_vm6, %v2623_v16, %v2619_v18  ;;  %v2526_v32 = vmul.f32 %v3356_v22, %v2525_v27 }
 0xae3   : > { %v2625_v20 = vmul.f32 %v2624_v3, %v4336_v61 }
 0xae4   : > { %v2530_v38 = vsel %vm2529_vm9, %v3356_v22, %v2526_v32 }
 0xae5   : > { %3136 = vmatpush.xpose.msk.msra.mxu0 %vm1109_vm2, %v2625_v20  ;;  %v2542_v40 = vmul.f32 %v2530_v38, %v4345_v42 }
 0xae7   : > { %v2548_v21 = vmul.f32 %v4362_v56, %v2542_v40 }
 0xae9   : > { %v2554_v39 = vadd.f32 %v4367_v37, %v2548_v21 }
 0xaeb   : > { %2557 = vst.msk [vmem:[%s3799_s13 + $0x8] sm:$0xff] %vm1109_vm2, %v2554_v39 }
 0xb48   : > { %v2563_v61 = vpop.xlane.xlu1 %2562 }
 0xb49   : > { %3357 = vrsqrt.f32 %v2563_v61  ;;  %vm2571_vm11 = vcmp.eq.f32.partialorder %v2563_v61, inf  ;;  %v2574_v57 = vand.u32 2147483648, %v2563_v61  ;;  %vm2573_vm12 = vcmp.eq.f32.partialorder %v2563_v61, 0.0 }
 0xb4f   : > { %v3358_v45 = vpop.eup %3357  ;;  %v2683_v46 = vpop.f32.mrf.mxu1 }
 0xb50   : > { %v2565_v47 = vmul.f32 %v3358_v45, %v2563_v61  ;;  %v2684_v48 = vadd.f32 %v2683_v46, %v2656_v44  ;;  %v2504_v49 = vpop.xlane.xlu1 %2503 }
 0xb51   : > { %v2507_v42 = vmul.f32 %v2504_v49, %v3846_v28 }
 0xb52   : > { %v2566_v50 = vmul.f32 %v3358_v45, %v2565_v47  ;;  %2687 = vst.msk [vmem:[%s965_s2] sm:$0x1] %vm2686_vm10, %v2684_v48 }
 0xb53   : > { %v2510_v53 = vadd.f32 1e-06, %v2507_v42 }
 0xb54   : > { %v2567_v52 = vmul.f32 0.5, %v2566_v50 }
 0xb55   : > { %3359 = vrsqrt.f32 %v2510_v53  ;;  %vm2537_vm13 = vweird.f32 %v2510_v53 }
 0xb56   : > { %v2568_v26 = vsub.f32 1.5, %v2567_v52 }
 0xb58   : > { %v2569_v54 = vmul.f32 %v3358_v45, %v2568_v26 }
 0xb5a   : > { %v2570_v55 = vmul.f32 %v2569_v54, %v2563_v61 }
 0xb5b   : > { %v3360_v13 = vpop.eup %3359 }
 0xb5c   : > { %v2572_v60 = vsel %vm2571_vm11, %v2563_v61, %v2570_v55  ;;  %v2532_v41 = vmul.f32 %v3360_v13, %v2510_v53  ;;  %vm2538_vm14 = vweird.f32 %v3360_v13 }
 0xb5d   : > { %v2575_v62 = vsel %vm2573_vm12, %v2574_v57, %v2572_v60  ;;  %vm2539_vm15 = vmor %vm2537_vm13, %vm2538_vm14 }
 0xb5e   : > { %v2533_v2 = vmul.f32 %v3360_v13, %v2532_v41  ;;  %v2576_v59 = vmax.f32 %v2575_v62, 1e-12 }
 0xb60   : > { %v2534_v43 = vmul.f32 0.5, %v2533_v2  ;;  %3361 = vrcp.f32 %v2576_v59  ;;  %v2588_v6 = vand.u32 2147483648, %v2576_v59  ;;  %v2586_v8 = vand.u32 2147483647, %v2576_v59 }
 0xb61   : > { %vm2582_vm1 = vweird.f32 %v2576_v59 }
 0xb62   : > { %v2535_v28 = vsub.f32 1.5, %v2534_v43  ;;  %v2589_v17 = vor.u32 1.1754944e-38, %v2588_v6  ;;  %vm2587_vm4 = vcmp.eq.f32.partialorder %v2586_v8, 8.507059e+37 }
 0xb64   : > { %v2536_v30 = vmul.f32 %v3360_v13, %v2535_v28 }
 0xb66   : > { %v3362_v12 = vpop.eup %3361  ;;  %v2540_v34 = vsel %vm2539_vm15, %v3360_v13, %v2536_v30 }
 0xb67   : > { %v2543_v4 = vmul.f32 %v2540_v34, %v4379_v1  ;;  %v2578_v5 = vmul.f32 %v3362_v12, %v2576_v59  ;;  %vm2583_vm0 = vweird.f32 %v3362_v12 }
 0xb68   : > { %vm2584_vm3 = vmor %vm2582_vm1, %vm2583_vm0 }
 0xb69   : > { %v2549_v36 = vmul.f32 %v4362_v56, %v2543_v4  ;;  %v2579_v19 = vsub.f32 1.0, %v2578_v5 }
 0xb6b   : > { %v2555_v7 = vadd.f32 %v4367_v37, %v2549_v36  ;;  %v2580_v63 = vmul.f32 %v3362_v12, %v2579_v19 }
 0xb6d   : > { %2558 = vst.msk [vmem:[%s3799_s13 + $0x10] sm:$0xff] %vm1109_vm2, %v2555_v7  ;;  %v2581_v9 = vadd.f32 %v3362_v12, %v2580_v63 }
 0xb6f   : > { %v2585_v31 = vsel %vm2584_vm3, %v3362_v12, %v2581_v9 }
 0xb70   : > { %v2590_v1 = vsel %vm2587_vm4, %v2589_v17, %v2585_v31 }
 0xb71   : > { %v2591_v35 = vmul.f32 %v2590_v1, %v4372_v0 }
 0xb73   : > { %3137 = vmatmul.msk.f32.vlgmr.msra.gmra.mxu0 %vm1109_vm2, %v2591_v35 }
 0xbf0   : > { %v2649_v56 = vpop.f32.mrf.mxu0 }
 0xbf1   : > { %2653 = vst.msk [vmem:[%s959_s5] sm:$0x1] %vm2652_vm5, %v2649_v56 }
 0xbf2 PF: > { %s4586_s10 = sld [smem:[#allocation16_spill]]  ;;  %s2711_s27 = sshll.u32 %s959_s5, 4  ;;  %s2712_s27 = int_to_ptr.vmem [resolvable:$true] %s2711_s27 }
 0xbf3   : > { %s4587_s13 = sld [smem:[#allocation44_spill]]  ;;  %s2694_s21 = scalar_lea.sflag [#allocation6], %s3717_s9 }
 0xbf9   : > { %s2709_s6 = scalar_lea.hbm %s4587_s13, %s4586_s10  ;;  %s3395_s18 = scalar_lea.hbm %s4587_s13, 2 }
 0xbfa   : > { %s2713_s23 = sshll.u32 %s2709_s6, 4  ;;  %s2714_s23 = int_to_ptr.hbm [resolvable:$true] %s2713_s23 }
 0xbfb   : > { %s3389_s20 = sshra.s32 %s2714_s23, 4  ;;  %s3390_s20 = int_to_ptr.hbm [resolvable:$true] %s3389_s20 }
 0xbfc   : > { %s3391_s3 = scalar_lea.hbm %s3390_s20, 1  ;;  %p3396_p6 = scmp.lt.s32.totalorder %s3390_s20, %s4587_s13 }
 0xbfd   : > { %p3392_p2 = scmp.ne.s32.totalorder %s3390_s20, %s3391_s3  ;;  %p3397_p7 = scmp.lt.s32.totalorder %s3395_s18, %s3391_s3 }
 0xbff   : > { %p3393_p4 = pnand %p3392_p2, %p3696_p3  ;;  %p3398_p8 = por %p3397_p7, %p3396_p6 }
 0xc01   : > { %p3394_p5 = pneg %p3393_p4 }
 0xc03   : > { %p3399_p10 = pnand %p3398_p8, %p3394_p5 }
 0xc05   : > { %3402 = shalt.err (!%p3399_p10)
}
 0xc06   : > { %3162 = dma.vmem_to_hbm [thread:$0]  (%p3696_p3), %s2712_s27, 16, %s2714_s23, %s2694_s21  }
 0xc07   : > { %s4589_s26 = sld [smem:[#allocation45_spill]]  ;;  %s2724_s8 = sshll.u32 %s965_s2, 4  ;;  %s2725_s8 = int_to_ptr.vmem [resolvable:$true] %s2724_s8 }
 0xc08   : > { %s2698_s20 = scalar_lea.sflag [#allocation8], %s3717_s9 }
 0xc0d   : > { %s4590_s6 = smov %s4589_s26  ;;  %s2722_s1 = scalar_lea.hbm %s4589_s26, %s4586_s10 }
 0xc0e   : > { %s2726_s7 = sshll.u32 %s2722_s1, 4  ;;  %s3423_s27 = scalar_lea.hbm %s4590_s6, 2  ;;  %s2727_s7 = int_to_ptr.hbm [resolvable:$true] %s2726_s7 }
 0xc0f   : > { %s3417_s3 = sshra.s32 %s2727_s7, 4  ;;  %s3418_s3 = int_to_ptr.hbm [resolvable:$true] %s3417_s3 }
 0xc10   : > { %s3419_s19 = scalar_lea.hbm %s3418_s3, 1  ;;  %p3424_p0 = scmp.lt.s32.totalorder %s3418_s3, %s4590_s6 }
 0xc11   : > { %p3420_p11 = scmp.ne.s32.totalorder %s3418_s3, %s3419_s19  ;;  %p3425_p1 = scmp.lt.s32.totalorder %s3423_s27, %s3419_s19 }
 0xc13   : > { %p3421_p12 = pnand %p3420_p11, %p3696_p3  ;;  %p3426_p2 = por %p3425_p1, %p3424_p0 }
 0xc15   : > { %p3422_p13 = pneg %p3421_p12 }
 0xc17   : > { %p3427_p4 = pnand %p3426_p2, %p3422_p13 }
 0xc19   : > { %3430 = shalt.err (!%p3427_p4)
}
 0xc1a   : > { %3163 = dma.vmem_to_hbm [thread:$0]  (%p3696_p3), %s2725_s8, 16, %s2727_s7, %s2698_s20  }
 0xc1b PF: > { %s4591_s9 = sld [smem:[#allocation19_spill]] }
 0xc1c   : > { %s4592_s2 = sld [smem:[#allocation12_spill]] }
 0xc21   : > { %p3173_p5 = scmp.ge.s32.totalorder %s4591_s9, 2 }
 0xc22   : > { %s2746_s24 = sand.u32 1, %s4592_s2  }
 0xc23   : > { %p3167_p6 = pnand %p3173_p5, %p3706_p9  ;;  %s2747_s0 = scalar_lea.sflag [#allocation6], %s2746_s24 }
 0xc25   : > { %p3168_p7 = pneg %p3167_p6 }
 0xc27   : > { %3466 = dma.done.wait (%p3168_p7), %s2747_s0, 16  }
 0xc28   : > { %3468 = vsyncadd (%p3168_p7), %s2747_s0, 4294967280  ;;  %s2756_s5 = scalar_lea.sflag [#allocation8], %s2746_s24 }
 0xc29   : > { %3470 = dma.done.wait (%p3168_p7), %s2756_s5, 16  }
 0xc2a   : > { %3472 = vsyncadd (%p3168_p7), %s2756_s5, 4294967280  ;;  %s50_s4 = sadd.s32 1, %s4591_s9   ;;  %s4594_s7 = sld [smem:[#allocation13_spill]] }
 0xc2b   : > { %p47_p8 = scmp.ge.s32.totalorder %s50_s4, 10   ;;  %s4595_s3 = sld [smem:[#allocation14_spill]] }
 0xc2c   : > { %s4596_s26 = sld [smem:[#allocation24_spill]] }
 0xc2d   : > { %s4597_s1 = sld [smem:[#allocation17_spill]]  ;;  %49 = sbr.rel (!%p47_p8) target bundleno = 39 (0x27), region = 222 }
 0xc2e   : > { %s4598_s8 = sld [smem:[#allocation18_spill]] }
 0xc2f   : > { %s4599_s27 = sld [smem:[#allocation20_spill]] }
 0xc30   : > { %s4600_s19 = sld [smem:[#allocation22_spill]] }
 0xc32   :  { %2761 = vsyncpa [#allocation6], 1 }
 0xc33   :  { %2763 = vsyncpa [#allocation6 + $0x1], 1 }
 0xc34   :  { %2764 = vsyncpa [#allocation8], 1 }
 0xc35   :  { %2766 = vsyncpa [#allocation8 + $0x1], 1 }

// kernel: _lambda_.2
= control target key start
LH: loop header
LB: loop body
LE: loop exit
PB: predicated region body
PF: predicated region fallthrough
CT: control target
= control target key end

     0   :  { %s3508_s30 = smov [#allocation4]   ;;  %s4483_s0 = inlined_call_operand.vmem [shape: s32[4], index: 0, kind: input, shape index: {}]   ;;  %s4484_s1 = inlined_call_operand.vmem [shape: f32[2,24,48], index: 1, kind: input, shape index: {}]   ;;  %s4485_s2 = inlined_call_operand.vmem [shape: f32[24,32], index: 2, kind: input, shape index: {}]   ;;  %s4486_s3 = inlined_call_operand.vmem [shape: f32[32,48], index: 3, kind: input, shape index: {}]   ;;  %s4487_s4 = inlined_call_operand.vmem [shape: f32[2,4,24,32], index: 4, kind: input, shape index: {}, may-alias: {4,5}]   ;;  %s4488_s5 = inlined_call_operand.vmem [shape: f32[2,4,24,32], index: 5, kind: input, shape index: {}, may-alias: {4,5}]   ;;  %s4489_s6 = inlined_call_operand.vmem [shape: f32[4,1,32], index: 6, kind: input, shape index: {}]   ;;  %s4490_s7 = inlined_call_operand.vmem [shape: f32[4,1,32], index: 7, kind: input, shape index: {}]   ;;  %s4491_s8 = inlined_call_operand.vmem [shape: f32[4,96,32], index: 8, kind: input, shape index: {}]   ;;  %s4492_s9 = inlined_call_operand.vmem [shape: f32[4,1,96], index: 9, kind: input, shape index: {}]   ;;  %s4493_s10 = inlined_call_operand.vmem [shape: f32[4,32,32], index: 10, kind: input, shape index: {}]   ;;  %s4494_s11 = inlined_call_operand.vmem [shape: f32[4,1,32], index: 11, kind: input, shape index: {}]   ;;  %s4495_s12 = inlined_call_operand.vmem [shape: f32[4,1,32], index: 12, kind: input, shape index: {}]   ;;  %s4496_s13 = inlined_call_operand.vmem [shape: f32[4,1,32], index: 13, kind: input, shape index: {}]   ;;  %s4497_s14 = inlined_call_operand.vmem [shape: f32[4,128,32], index: 14, kind: input, shape index: {}]   ;;  %s4498_s15 = inlined_call_operand.vmem [shape: f32[4,1,128], index: 15, kind: input, shape index: {}]   ;;  %s4499_s16 = inlined_call_operand.vmem [shape: f32[4,32,128], index: 16, kind: input, shape index: {}]   ;;  %s4500_s17 = inlined_call_operand.vmem [shape: f32[4,1,32], index: 17, kind: input, shape index: {}]   ;;  %s4501_s18 = inlined_call_operand.vmem [shape: f32[1,32], index: 18, kind: input, shape index: {}]   ;;  %s4502_s19 = inlined_call_operand.vmem [shape: f32[1,32], index: 19, kind: input, shape index: {}]   ;;  %s4503_s20 = inlined_call_operand.vmem [shape: f32[3,32], index: 20, kind: input, shape index: {}]   ;;  %s4504_s21 = inlined_call_operand.vmem [shape: f32[10,32], index: 21, kind: input, shape index: {}]   ;;  %s4505_s22 = inlined_call_operand.vmem [shape: f32[1,10], index: 22, kind: input, shape index: {}]   ;;  %s4506_s23 = inlined_call_operand.hbm [shape: f32[2,24,32], index: 23, kind: output, shape index: {0}]   ;;  %s4507_s24 = inlined_call_operand.vmem [shape: f32[2,1,3], index: 24, kind: output, shape index: {1}]   ;;  %s4508_s25 = inlined_call_operand.hbm [shape: f32[2,1,10], index: 25, kind: output, shape index: {2}]  }
   0x1   :  { %4531 = sst [smem:[#allocation27_spill]] %s4483_s0 }
   0x2   :  { %4532 = sst [smem:[#allocation28_spill]] %s4484_s1 }
   0x3   :  { %4533 = sst [smem:[#allocation29_spill]] %s4485_s2 }
   0x4   :  { %4534 = sst [smem:[#allocation30_spill]] %s4486_s3 }
   0x5   :  { %4535 = sst [smem:[#allocation31_spill]] %s4487_s4 }
   0x6   :  { %4536 = sst [smem:[#allocation32_spill]] %s4488_s5 }
   0x7   :  { %4537 = sst [smem:[#allocation33_spill]] %s4489_s6 }
   0x8   :  { %4538 = sst [smem:[#allocation34_spill]] %s4490_s7 }
   0x9   :  { %4539 = sst [smem:[#allocation35_spill]] %s4491_s8 }
   0xa   :  { %4540 = sst [smem:[#allocation36_spill]] %s4492_s9 }
   0xb   :  { %4541 = sst [smem:[#allocation37_spill]] %s4493_s10 }
   0xc   :  { %4542 = sst [smem:[#allocation38_spill]] %s4497_s14 }
   0xd   :  { %4543 = sst [smem:[#allocation39_spill]] %s4500_s17 }
   0xe   :  { %4544 = sst [smem:[#allocation40_spill]] %s4501_s18 }
   0xf   :  { %4545 = sst [smem:[#allocation41_spill]] %s4502_s19 }
  0x10   :  { %4546 = sst [smem:[#allocation42_spill]] %s4503_s20 }
  0x11   :  { %4547 = sst [smem:[#allocation43_spill]] %s4504_s21 }
  0x12   :  { %4548 = sst [smem:[#allocation44_spill]] %s4505_s22 }
  0x13   :  { %4549 = sst [smem:[#allocation45_spill]] %s4506_s23 }
  0x14   :  { %4550 = sst [smem:[#allocation46_spill]] %s4507_s24 }
  0x15   :  { %4551 = sst [smem:[#allocation47_spill]] %s4508_s25 }
  0x16   :  { %s4552_s6 = sld [smem:[#allocation27_spill]] }
  0x1c   :  { %s32_s19 = sshll.u32 %s4552_s6, 4  ;;  %s33_s19 = int_to_ptr.vmem [resolvable:$true] %s32_s19 }
  0x1d   :  { %35 = dma.vmem_to_smem %s33_s19, 16, %s3508_s30, [#allocation3] }
  0x1e   :  { %3466 = dma.done.wait [#allocation3], 16 }
  0x1f   :  { %3467 = vsyncadd [#allocation3], 4294967280 }
  0x20   :  { %38 = sfence }
  0x21   :  { %39 = vsyncpa [#allocation6], 0 }
  0x22   :  { %41 = vsyncpa [#allocation6 + $0x1], 0 }
  0x23   :  { %42 = vsyncpa [#allocation8], 0 }
  0x24   :  { %44 = vsyncpa [#allocation8 + $0x1], 0  ;;  %s3652_s7 = smov 0   ;;  %s3654_s3 = smov 0  }
  0x25   :  { %s3656_s26 = smov 0   ;;  %s3658_s1 = smov 0  }
  0x26   :  { %s3660_s8 = smov 0   ;;  %s3662_s27 = smov 0  }
  0x27   :  { %s3664_s19 = smov 0   ;;  %s3666_s4 = smov 0  }
  0x28 LB: > { %4553 = sst [smem:[#allocation12_spill]] %s3478_s7  ;;  %s3006_s28 = sadd.s32 4294967295, %s3506_s4   ;;  %s3506_s4 = sphi %s3666_s4, %s50_s4   ;;  %s3502_s19 = sphi %s3664_s19, %s4620_s19   ;;  %s3498_s27 = sphi %s3662_s27, %s4619_s27   ;;  %s3494_s8 = sphi %s3660_s8, %s4618_s8   ;;  %s3490_s1 = sphi %s3658_s1, %s4617_s1   ;;  %s3486_s26 = sphi %s3656_s26, %s4616_s26   ;;  %s3482_s3 = sphi %s3654_s3, %s4615_s3   ;;  %s3478_s7 = sphi %s3652_s7, %s4614_s7  }
  0x29   : > { %4554 = sst [smem:[#allocation13_spill]] %s3482_s3  ;;  %s3007_s9 = sadd.s32 4294967294, %s3506_s4  }
  0x2a   : > { %4555 = sst [smem:[#allocation14_spill]] %s3486_s26  ;;  %s59_s5 = sadd.s32 1, %s3498_s27 }
  0x2b   : > { %4556 = sst [smem:[#allocation15_spill]] %s3490_s1  ;;  %p60_p0 = scmp.ge.s32.totalorder %s59_s5, 4 }
  0x2c   : > { %4557 = sst [smem:[#allocation16_spill]] %s3494_s8  ;;  %s62_s0 = sadd.s32 1, %s3502_s19 }
  0x2d   : > { %4558 = sst [smem:[#allocation17_spill]] %s3498_s27  ;;  %p620_p1 = scmp.ne.s32.totalorder %s3486_s26, %s3482_s3 }
  0x2e   : > { %4559 = sst [smem:[#allocation18_spill]] %s3502_s19  ;;  %p621_p2 = scmp.eq.s32.totalorder %s3006_s28, 7 }
  0x2f   : > { %4560 = sst [smem:[#allocation19_spill]] %s3506_s4  ;;  %s4622_s5 = smov (%p60_p0, %s59_s5), 0 }
  0x30   : > { %4561 = sst [smem:[#allocation20_spill]] %s4622_s5  ;;  %s4624_s0 = smov (!%p60_p0, %s62_s0), %s3502_s19 }
  0x31   : > { %p3701_p3 = por %p621_p2, %p620_p1  ;;  %p626_p4 = scmp.ne.s32.totalorder %s3482_s3, %s3478_s7 }
  0x32   : > { %p64_p5 = scmp.ge.s32.totalorder %s4624_s0, 2  ;;  %p627_p6 = scmp.eq.s32.totalorder %s3007_s9, 7 }
  0x33   : > { %s4562_s29 = scalar_select %p3701_p3, 1, 0 }
  0x34   : > { %p3010_p7 = scmp.ge.s32.totalorder %s3506_s4, 1  ;;  %p830_p8 = scmp.lt.s32.totalorder %s3506_s4, 9 }
  0x35   : > { %4563 = sst [smem:[#allocation21_spill]] %s4562_s29  ;;  %s4626_s0 = smov (%p64_p5, %s4624_s0), 0 }
  0x36   : > { %4564 = sst [smem:[#allocation22_spill]] %s4626_s0  ;;  %p3711_p9 = por %p627_p6, %p626_p4 }
  0x37   : > { %p831_p10 = pnand %p3010_p7, %p830_p8  ;;  %s607_s6 = ssub.s32 %s3502_s19, %s4626_s0 }
  0x38   : > { %s4565_s2 = scalar_select %p3711_p9, 1, 0 }
  0x39   : > { %s610_s30 = sadd.s32 1, %s3486_s26  ;;  %p608_p11 = scmp.eq.s32.totalorder %s607_s6, 0 }
  0x3a   : > { %4566 = sst [smem:[#allocation23_spill]] %s4565_s2  ;;  %834 = sbr.rel (%p831_p10) target bundleno = 3101 (0xc1d), region = 108 }
  0x3b   : > { %s3719_s28 = scalar_select %p608_p11, %s3486_s26, %s610_s30  }
  0x3d   : > { %4567 = sst [smem:[#allocation24_spill]] %s3719_s28 }
  0x3f   : > { %s3722_s9 = sand.u32 1, %s3482_s3   ;;  %p965_p12 = scmp.lt.s32.totalorder %s3494_s8, 1 }
  0x40   : > { %s3157_s5 = smul.u32 24, %s3722_s9  ;;  %p972_p13 = scmp.lt.s32.totalorder %s3490_s1, 3 }
  0x41   : > { %s3727_s27 = scalar_select %p965_p12, %s3494_s8, 1 }
  0x42   : > { %s3736_s28 = scalar_select %p972_p13, %s3490_s1, 3 }
  0x43   : > { %4568 = sst [smem:[#allocation25_spill]] %s3727_s27  ;;  %s3158_s6 = smul.u32 24, %s3727_s27 }
  0x44   : > { %s4570_s3 = sld [smem:[#allocation28_spill]]  ;;  %s3160_s4 = smul.u32 12, %s3727_s27 }
  0x45   : > { %s3159_s0 = smul.u32 3, %s3736_s28  ;;  %s4575_s1 = sld [smem:[#allocation35_spill]] }
  0x46   : > { %s3161_s24 = smul.u32 96, %s3736_s28  ;;  %s4576_s30 = sld [smem:[#allocation31_spill]] }
  0x47   : > { %s976_s22 = sadd.s32 %s3160_s4, %s3159_s0  ;;  %s4577_s8 = sld [smem:[#allocation32_spill]] }
  0x48   : > { %s3012_s27 = sshll.u32 %s976_s22, 3  ;;  %s3142_s0 = sshll.u32 %s3736_s28, 5 }
  0x49   : > { %s4578_s10 = sld [smem:[#allocation37_spill]]  ;;  %s1023_s23 = scalar_lea.vmem %s4498_s15, %s3736_s28 }
  0x4a   : > { %s3741_s7 = scalar_lea.vmem %s4570_s3, %s3158_s6  ;;  %s4579_s14 = sld [smem:[#allocation38_spill]] }
  0x4b   : > { %4571 = sst [smem:[#allocation26_spill]] %s3741_s7  ;;  %s3761_s17 = scalar_lea.vmem %s4575_s1, %s3161_s24 }
  0x4c   : > { %s3766_s29 = scalar_lea.vmem %s4576_s30, %s3012_s27  ;;  %s3804_s6 = scalar_lea.vmem %s4499_s16, %s3142_s0 }
  0x4d   : > { %s3771_s4 = scalar_lea.vmem %s4577_s8, %s3012_s27  ;;  %s3143_s8 = sshll.u32 %s3736_s28, 7 }
  0x4e   : > { %s4580_s1 = sld [smem:[#allocation39_spill]]  ;;  %s3810_s19 = scalar_lea.vmem [#allocation5], %s3157_s5 }
  0x4f   : > { %s3781_s20 = scalar_lea.vmem %s4578_s10, %s3142_s0  ;;  %s964_s30 = scalar_lea.vmem [#allocation7], %s3722_s9 }
  0x50   : > { %s3795_s2 = scalar_lea.vmem %s4579_s14, %s3143_s8  ;;  %s4581_s10 = sld [smem:[#allocation15_spill]] }
  0x54   : > { %s1031_s25 = scalar_lea.vmem %s4580_s1, %s3736_s28 }
  0x56   : > { %p3021_p0 = scmp.ne.s32.totalorder %s4581_s10, 0 }
  0x57   : > { %s4582_s26 = sld [smem:[#allocation30_spill]] (!%p3021_p0) }
  0x58   : > { %1038 = sbr.rel (%p3021_p0) target bundleno = 244 (0xf4), region = 112  ;;  %s4584_s18 = sld [smem:[#allocation26_spill]] (!%p3021_p0) }
  0x59   : > { %s4585_s7 = sld [smem:[#allocation29_spill]] (!%p3021_p0) }
  0x5d   : > { %s4583_s14 = smov %s4582_s26  ;;  %v1045_v0 = vld [vmem:[%s4582_s26 + $0x18] sm:$0xff]  ;;  %vm1049_vm0 = vcmask 392192   ;;  %vm1097_vm1 = vcmask 261120  }
  0x5e   : > { %3146 = vmatpush.xpose.msk.msra.mxu2 %vm1049_vm0, %v1045_v0  ;;  %3022 = vmatpush.xpose.msk.msra.mxu0 %vm1049_vm0, %v1045_v0  ;;  %v1044_v1 = vld [vmem:[%s4583_s14 + $0x10] sm:$0xff]  ;;  %v1043_v2 = vld [vmem:[%s4583_s14 + $0x8] sm:$0xff]  ;;  %v1042_v3 = vld [vmem:[%s4583_s14] sm:$0xff] }
  0x5f   : > { %3145 = vmatpush.xpose.msk.msra.mxu1 %vm1049_vm0, %v1045_v0  ;;  %v1041_v4 = vld [vmem:[%s4584_s18 + $0x10] sm:$0xff]  ;;  %v1039_v5 = vld [vmem:[%s4584_s18] sm:$0xff]  ;;  %v1040_v6 = vld [vmem:[%s4584_s18 + $0x8] sm:$0xff]  ;;  %s4586_s0 = smov %s4585_s7 }
  0x60   : > { %v1046_v7 = vld [vmem:[%s4585_s7] sm:$0xff]  ;;  %v1047_v8 = vld [vmem:[%s4586_s0 + $0x8] sm:$0xff]  ;;  %v1048_v13 = vld [vmem:[%s4586_s0 + $0x10] sm:$0xff] }
  0x62   : > { %3148 = vmatpush.xpose.msk.msra.mxu2 %vm1049_vm0, %v1044_v1  ;;  %3023 = vmatpush.xpose.msk.msra.mxu0 %vm1049_vm0, %v1044_v1 }
  0x63   : > { %3147 = vmatpush.xpose.msk.msra.mxu1 %vm1049_vm0, %v1044_v1 }
  0x66   : > { %3150 = vmatpush.xpose.msk.msra.mxu2 %vm1049_vm0, %v1043_v2  ;;  %3024 = vmatpush.xpose.msk.msra.mxu0 %vm1049_vm0, %v1043_v2 }
  0x67   : > { %3149 = vmatpush.xpose.msk.msra.mxu1 %vm1049_vm0, %v1043_v2 }
  0x6a   : > { %3152 = vmatpush.xpose.msk.msra.mxu2 %vm1049_vm0, %v1042_v3  ;;  %3025 = vmatpush.xpose.msk.msra.mxu0 %vm1049_vm0, %v1042_v3 }
  0x6b   : > { %3151 = vmatpush.xpose.msk.msra.mxu1 %vm1049_vm0, %v1042_v3 }
  0x6d   : > { %3028 = vmatmul.msk.f32.vlgmr.msra.gmra.mxu2 %vm1049_vm0, %v1041_v4  ;;  %3026 = vmatmul.msk.f32.vlgmr.msra.gmra.mxu0 %vm1049_vm0, %v1039_v5 }
  0x6e   : > { %3027 = vmatmul.msk.f32.vlgmr.msra.gmra.mxu1 %vm1049_vm0, %v1040_v6 }
  0xea   : > { %v1088_v9 = vpop.f32.mrf.mxu0 }
  0xeb   : > { %v1089_v10 = vadd.f32 %v1088_v9, %v1046_v7  ;;  %v1091_v11 = vpop.f32.mrf.mxu1 }
  0xec   : > { %v1092_v12 = vadd.f32 %v1091_v11, %v1047_v8 }
  0xed   : > { %1098 = vst.msk [vmem:[#allocation2] sm:$0xff] %vm1097_vm1, %v1089_v10 }
  0xee   : > { %1099 = vst.msk [vmem:[#allocation2 + $0x8] sm:$0xff] %vm1097_vm1, %v1092_v12 }
  0xf0   : > { %v1094_v14 = vpop.f32.mrf.mxu2 }
  0xf1   : > { %v1095_v15 = vadd.f32 %v1094_v14, %v1048_v13 }
  0xf3   : > { %1100 = vst.msk [vmem:[#allocation2 + $0x10] sm:$0xff] %vm1097_vm1, %v1095_v15 }
  0xf4 PF: > { %vm1106_vm2 = vcmask 261120   ;;  %v1101_v20 = vld [vmem:[#allocation2] sm:$0xff]  ;;  %v3509_v22 = vmov 32.0   ;;  %v1214_v44 = vld [vmem:[%s3761_s17 + $0x18] sm:$0xff]  ;;  %v1213_v45 = vld [vmem:[%s3761_s17 + $0x10] sm:$0xff]  ;;  %s4587_s5 = sld [smem:[#allocation36_spill]]  ;;  %s4594_s24 = scalar_lea.vmem %s4494_s11, %s3736_s28 }
  0xf5   : > { %v1102_v17 = vld [vmem:[#allocation2 + $0x8] sm:$0xff]  ;;  %v1107_v21 = vsel %vm1106_vm2, %v1101_v20, 0.0  ;;  %3273 = vrcp.f32 %v3509_v22  ;;  %3153 = vmatpush.xpose.msk.msra.mxu1 %vm1106_vm2, %v1214_v44  ;;  %3029 = vmatpush.xpose.msk.msra.mxu0 %vm1106_vm2, %v1214_v44  ;;  %v1211_v47 = vld [vmem:[%s3761_s17] sm:$0xff]  ;;  %v1218_v48 = vld [vmem:[%s3761_s17 + $0x38] sm:$0xff]  ;;  %s3510_s21 = smov 96   ;;  %s4589_s7 = sld [smem:[#allocation33_spill]] }
  0xf6   : > { %v1110_v19 = vsel %vm1106_vm2, %v1102_v17, 0.0  ;;  %v1212_v46 = vld [vmem:[%s3761_s17 + $0x8] sm:$0xff]  ;;  %v1217_v49 = vld [vmem:[%s3761_s17 + $0x30] sm:$0xff]  ;;  %v1215_v53 = vld [vmem:[%s3761_s17 + $0x20] sm:$0xff]  ;;  %s4591_s26 = sld [smem:[#allocation34_spill]]  ;;  %vm1385_vm14 = vcmask 64512  }
  0xf7   : > { %1111 = vadd.xlane.f32.xlu1 %v1110_v19  ;;  %v1216_v50 = vld [vmem:[%s3761_s17 + $0x28] sm:$0xff]  ;;  %v1222_v55 = vld [vmem:[%s3761_s17 + $0x58] sm:$0xff]  ;;  %v1221_v56 = vld [vmem:[%s3761_s17 + $0x50] sm:$0xff]  ;;  %s4593_s22 = sld [smem:[#allocation15_spill]]  ;;  %vm1436_vm0 = vcmask 195584   ;;  %s3512_s10 = smov 64  }
  0xf8   : > { %v1220_v62 = vld [vmem:[%s3761_s17 + $0x48] sm:$0xff]  ;;  %v1219_v1 = vld [vmem:[%s3761_s17 + $0x40] sm:$0xff] }
  0xf9   : > { %3154 = vmatpush.xpose.msk.msra.mxu1 %vm1106_vm2, %v1213_v45  ;;  %3030 = vmatpush.xpose.msk.msra.mxu0 %vm1106_vm2, %v1213_v45 }
  0xfa   : > { %v1103_v16 = vld [vmem:[#allocation2 + $0x10] sm:$0xff]  ;;  %s4588_s1 = scalar_lea.vmem %s4587_s5, %s3736_s28  ;;  %s3513_s5 = smov 120  }
  0xfb   : > { %v1113_v18 = vsel %vm1106_vm2, %v1103_v16, 0.0  ;;  %v3274_v23 = vpop.eup %3273  ;;  %v3908_v63 = vld [vmem:[%s4588_s1] ss:$0 sm:$0xff]  ;;  %s4590_s17 = scalar_lea.vmem %s4589_s7, %s3736_s28  ;;  %s3514_s1 = smov 112  }
  0xfc   : > { %1114 = vadd.xlane.f32.xlu0 %v1113_v18  ;;  %v1117_v24 = vmul.f32 32.0, %v3274_v23  ;;  %vm1121_vm3 = vweird.f32 %v3274_v23  ;;  %v3265_v10 = vld [vmem:[%s4590_s17] ss:$0 sm:$0xff]  ;;  %s4592_s18 = scalar_lea.vmem %s4591_s26, %s3736_s28  ;;  %s4595_s17 = scalar_lea.vmem %s4495_s12, %s3736_s28 }
  0xfd   : > { %3155 = vmatpush.xpose.msk.msra.mxu1 %vm1106_vm2, %v1212_v46  ;;  %3031 = vmatpush.xpose.msk.msra.mxu0 %vm1106_vm2, %v1212_v46  ;;  %v3266_v14 = vld [vmem:[%s4592_s18] ss:$0 sm:$0xff]  ;;  %s4596_s26 = scalar_lea.vmem %s4496_s13, %s3736_s28  ;;  %p3133_p1 = scmp.ne.s32.totalorder %s4593_s22, 3 }
  0xfe   : > { %v1118_v25 = vsub.f32 1.0, %v1117_v24  ;;  %s4601_s7 = sld [smem:[#allocation40_spill]] (!%p3133_p1) }
  0xff   : > { %s4602_s27 = sld [smem:[#allocation41_spill]] (!%p3133_p1) }
 0x100   : > { %v1119_v26 = vmul.f32 %v3274_v23, %v1118_v25  ;;  %s4605_s28 = sld [smem:[#allocation46_spill]] (!%p3133_p1) }
 0x101   : > { %3156 = vmatpush.xpose.msk.msra.mxu1 %vm1106_vm2, %v1211_v47  ;;  %3032 = vmatpush.xpose.msk.msra.mxu0 %vm1106_vm2, %v1211_v47 }
 0x102   : > { %v1120_v27 = vadd.f32 %v3274_v23, %v1119_v26 }
 0x104   : > { %1108 = vadd.xlane.f32.xlu0 %v1107_v21  ;;  %v3856_v28 = vsel %vm1121_vm3, %v3274_v23, %v1120_v27 }
 0x105   : > { %3036 = vmatpush.xpose.msk.msrb.mxu1 %vm1106_vm2, %v1218_v48  ;;  %3043 = vmatpush.xpose.msk.msrb.mxu0 %vm1106_vm2, %v1222_v55 }
 0x109   : > { %3037 = vmatpush.xpose.msk.msrb.mxu1 %vm1106_vm2, %v1217_v49  ;;  %3044 = vmatpush.xpose.msk.msrb.mxu0 %vm1106_vm2, %v1221_v56 }
 0x10d   : > { %3038 = vmatpush.xpose.msk.msrb.mxu1 %vm1106_vm2, %v1216_v50  ;;  %3045 = vmatpush.xpose.msk.msrb.mxu0 %vm1106_vm2, %v1220_v62 }
 0x111   : > { %3039 = vmatpush.xpose.msk.msrb.mxu1 %vm1106_vm2, %v1215_v53  ;;  %3046 = vmatpush.xpose.msk.msrb.mxu0 %vm1106_vm2, %v1219_v1 }
 0x118   : > { %1274 = vrot.lane.b32.xlu0 %v3908_v63, %s3510_s21  ;;  %s3515_s21 = smov 104  }
 0x16a   : > { %v1112_v33 = vpop.xlane.xlu1 %1111 }
 0x16b   : > { %v1124_v37 = vmul.f32 %v3856_v28, %v1112_v33 }
 0x16d   : > { %v3868_v39 = vsub.f32 %v1102_v17, %v1124_v37 }
 0x16f   : > { %v1115_v29 = vpop.xlane.xlu0 %1114  ;;  %v1130_v42 = vmul.f32 %v3868_v39, %v3868_v39 }
 0x170   : > { %v1125_v30 = vmul.f32 %v3856_v28, %v1115_v29 }
 0x171   : > { %v1135_v43 = vsel %vm1106_vm2, %v1130_v42, 0.0 }
 0x172   : > { %v3859_v31 = vsub.f32 %v1103_v16, %v1125_v30 }
 0x174   : > { %v1131_v32 = vmul.f32 %v3859_v31, %v3859_v31 }
 0x176   : > { %v1138_v34 = vsel %vm1106_vm2, %v1131_v32, 0.0 }
 0x177   : > { %1139 = vadd.xlane.f32.xlu1 %v1138_v34  ;;  %v1109_v35 = vpop.xlane.xlu0 %1108 }
 0x178   : > { %v1123_v36 = vmul.f32 %v3856_v28, %v1109_v35 }
 0x17a   : > { %v3866_v38 = vsub.f32 %v1101_v20, %v1123_v36 }
 0x17c   : > { %v1129_v40 = vmul.f32 %v3866_v38, %v3866_v38 }
 0x17e   : > { %v1132_v41 = vsel %vm1106_vm2, %v1129_v40, 0.0 }
 0x17f   : > { %1133 = vadd.xlane.f32.xlu2 %v1132_v41  ;;  %v1197_v41 = vld [vmem:[%s3771_s4 + $0x10] sm:$0xff] }
 0x187   : > { %1136 = vadd.xlane.f32.xlu2 %v1135_v43 }
 0x18a   : > { %v1275_v45 = vpop.permute.xlu0 %1274 }
 0x1ea   : > { %v1140_v51 = vpop.xlane.xlu1 %1139 }
 0x1eb   : > { %v1143_v52 = vmul.f32 %v1140_v51, %v3856_v28 }
 0x1ed   : > { %v1146_v54 = vadd.f32 1e-06, %v1143_v52 }
 0x1ef   : > { %3275 = vrsqrt.f32 %v1146_v54  ;;  %vm1173_vm5 = vweird.f32 %v1146_v54 }
 0x1f2   : > { %v1134_v57 = vpop.xlane.xlu2 %1133 }
 0x1f3   : > { %v1141_v58 = vmul.f32 %v1134_v57, %v3856_v28  ;;  %v3511_v57 = vmov -1e+30  }
 0x1f5   : > { %v3276_v59 = vpop.eup %3275  ;;  %v1144_v60 = vadd.f32 1e-06, %v1141_v58 }
 0x1f6   : > { %v1168_v61 = vmul.f32 %v3276_v59, %v1146_v54  ;;  %vm1174_vm4 = vweird.f32 %v3276_v59 }
 0x1f7   : > { %3277 = vrsqrt.f32 %v1144_v60  ;;  %vm1175_vm6 = vmor %vm1173_vm5, %vm1174_vm4  ;;  %vm1153_vm8 = vweird.f32 %v1144_v60 }
 0x1f8   : > { %v1169_v0 = vmul.f32 %v3276_v59, %v1168_v61 }
 0x1fa   : > { %v1170_v2 = vmul.f32 0.5, %v1169_v0  ;;  %v1137_v3 = vpop.xlane.xlu2 %1136 }
 0x1fb   : > { %v1142_v4 = vmul.f32 %v1137_v3, %v3856_v28 }
 0x1fc   : > { %v1171_v5 = vsub.f32 1.5, %v1170_v2 }
 0x1fd   : > { %v3278_v6 = vpop.eup %3277  ;;  %v1145_v7 = vadd.f32 1e-06, %v1142_v4 }
 0x1fe   : > { %v1172_v8 = vmul.f32 %v3276_v59, %v1171_v5  ;;  %v1148_v9 = vmul.f32 %v3278_v6, %v1144_v60  ;;  %vm1154_vm7 = vweird.f32 %v3278_v6 }
 0x1ff   : > { %3279 = vrsqrt.f32 %v1145_v7  ;;  %vm1155_vm9 = vmor %vm1153_vm8, %vm1154_vm7  ;;  %vm1163_vm11 = vweird.f32 %v1145_v7 }
 0x200   : > { %v1176_v11 = vsel %vm1175_vm6, %v3276_v59, %v1172_v8  ;;  %v1149_v12 = vmul.f32 %v3278_v6, %v1148_v9 }
 0x201   : > { %v1179_v13 = vmul.f32 %v1176_v11, %v3859_v31  ;;  %v1198_v31 = vlaneseq }
 0x202   : > { %v1150_v15 = vmul.f32 0.5, %v1149_v12 }
 0x203   : > { %v1185_v16 = vmul.f32 %v3265_v10, %v1179_v13  ;;  %v1199_v35 = vshrl.u32 %v1198_v31, 7  ;;  %v1377_v55 = vand.u32 127, %v1198_v31  ;;  %v4021_v31 = vld [vmem:[%s3781_s20 + $0x18] sm:$0xff] }
 0x204   : > { %v1151_v17 = vsub.f32 1.5, %v1150_v15 }
 0x205   : > { %v3280_v18 = vpop.eup %3279  ;;  %v1191_v19 = vadd.f32 %v3266_v14, %v1185_v16  ;;  %v1201_v37 = vadd.s32 16, %v1199_v35 }
 0x206   : > { %v1152_v20 = vmul.f32 %v3278_v6, %v1151_v17  ;;  %v1158_v21 = vmul.f32 %v3280_v18, %v1145_v7  ;;  %vm1164_vm10 = vweird.f32 %v3280_v18 }
 0x207   : > { %3035 = vmatmul.msk.f32.vlgmr.msra.gmra.mxu1 %vm1106_vm2, %v1191_v19  ;;  %vm1165_vm12 = vmor %vm1163_vm11, %vm1164_vm10  ;;  %vm1204_vm13 = vcmp.ge.s32.totalorder %v1201_v37, 17 }
 0x208   : > { %v1156_v22 = vsel %vm1155_vm9, %v3278_v6, %v1152_v20  ;;  %v1159_v23 = vmul.f32 %v3280_v18, %v1158_v21  ;;  %v1210_v42 = vsel %vm1204_vm13, %v1197_v41, %v1191_v19 }
 0x209   : > { %v1177_v24 = vmul.f32 %v1156_v22, %v3866_v38  ;;  %v1194_v38 = vld [vmem:[%s3766_s29 + $0x10] sm:$0xff]  ;;  %s1374_s29 = sld [smem:[#allocation4 + %s4593_s22]] }
 0x20a   : > { %v1160_v25 = vmul.f32 0.5, %v1159_v23  ;;  %v1207_v40 = vsel %vm1204_vm13, %v1194_v38, %v1191_v19 }
 0x20b   : > { %v1183_v26 = vmul.f32 %v3265_v10, %v1177_v24 }
 0x20c   : > { %v1161_v27 = vsub.f32 1.5, %v1160_v25 }
 0x20d   : > { %v1189_v29 = vadd.f32 %v3266_v14, %v1183_v26 }
 0x20e   : > { %v1162_v30 = vmul.f32 %v3280_v18, %v1161_v27 }
 0x20f   : > { %3033 = vmatmul.msk.f32.vlgmr.msra.gmra.mxu0 %vm1106_vm2, %v1189_v29  ;;  %3040 = vmatmul.msk.f32.vlgmr.msrb.gmra.mxu1 %vm1106_vm2, %v1189_v29  ;;  %s1375_s4 = sadd.s32 17, %s1374_s29  ;;  %s4603_s29 = sld [smem:[#allocation44_spill]] (!%p3133_p1) }
 0x210   : > { %v1166_v32 = vsel %vm1165_vm12, %v3280_v18, %v1162_v30  ;;  %v1378_v56 = vstv %s1375_s4 }
 0x211   : > { %v1178_v33 = vmul.f32 %v1166_v32, %v3868_v39  ;;  %vm1379_vm15 = vcmp.lt.s32.totalorder %v1377_v55, %v1378_v56 }
 0x212   : > { %v3967_v58 = vsel %vm1379_vm15, 0.0, %v3511_v57 }
 0x213   : > { %v1184_v34 = vmul.f32 %v3265_v10, %v1178_v33  ;;  %v4026_v33 = vld [vmem:[%s3781_s20 + $0x10] sm:$0xff] }
 0x215   : > { %v1190_v36 = vadd.f32 %v3266_v14, %v1184_v34  ;;  %v4031_v34 = vld [vmem:[%s3781_s20 + $0x8] sm:$0xff] }
 0x217   : > { %3034 = vmatmul.msk.f32.gmra.mxu0 %vm1106_vm2, %v1190_v36  ;;  %3041 = vmatmul.msk.f32.gmra.mxu1 %vm1106_vm2, %v1190_v36 }
 0x21f   : > { %3042 = vmatmul.msk.f32.gmra.mxu1 %vm1106_vm2, %v1207_v40  ;;  %3047 = vmatmul.msk.f32.vlgmr.msrb.gmra.mxu0 %vm1106_vm2, %v1189_v29 }
 0x227   : > { %3048 = vmatmul.msk.f32.gmra.mxu0 %vm1106_vm2, %v1190_v36  ;;  %v4036_v36 = vld [vmem:[%s3781_s20] sm:$0xff] }
 0x22f   : > { %3049 = vmatmul.msk.f32.gmra.mxu0 %vm1106_vm2, %v1210_v42 }
 0x284   : > { %v1271_v39 = vpop.f32.mrf.mxu1 }
 0x285   : > { %v3962_v54 = vadd.f32 %v3908_v63, %v1271_v39 }
 0x28c   : > { %v1315_v43 = vpop.f32.mrf.mxu1  ;;  %v1265_v49 = vpop.f32.mrf.mxu0 }
 0x28d   : > { %v3947_v50 = vadd.f32 %v1315_v43, %v1275_v45  ;;  %v3952_v51 = vadd.f32 %v3908_v63, %v1265_v49 }
 0x294   : > { %v1318_v44 = vpop.f32.mrf.mxu1  ;;  %v1268_v52 = vpop.f32.mrf.mxu0 }
 0x295   : > { %v3943_v48 = vadd.f32 %v1318_v44, %v1275_v45  ;;  %v3957_v53 = vadd.f32 %v3908_v63, %v1268_v52 }
 0x29c   : > { %v1321_v46 = vpop.f32.mrf.mxu1  ;;  %v1365_v19 = vpop.f32.mrf.mxu0 }
 0x29d   : > { %v3939_v47 = vadd.f32 %v1321_v46, %v1275_v45 }
 0x29f   : > { %3050 = vmatpush.xpose.msk.msra.mxu3 %vm1385_vm14, %v3939_v47 }
 0x2a3   : > { %3051 = vmatpush.xpose.msk.msra.mxu3 %vm1385_vm14, %v3943_v48 }
 0x2a4   : > { %v1368_v23 = vpop.f32.mrf.mxu0 }
 0x2a7   : > { %3052 = vmatpush.xpose.msk.msra.mxu3 %vm1385_vm14, %v3947_v50 }
 0x2aa   : > { %3053 = vmatmul.msk.f32.vlgmr.msra.gmra.mxu3 %vm1385_vm14, %v3952_v51 }
 0x2ac   : > { %v1371_v24 = vpop.f32.mrf.mxu0 }
 0x2b2   : > { %3054 = vmatmul.msk.f32.gmra.mxu3 %vm1385_vm14, %v3957_v53 }
 0x2ba   : > { %3055 = vmatmul.msk.f32.gmra.mxu3 %vm1385_vm14, %v3962_v54 }
 0x32d   : > { %v1421_v59 = vpop.f32.mrf.mxu3 }
 0x32e   : > { %v1430_v60 = vmul.f32 0.35355338, %v1421_v59 }
 0x330   : > { %v1433_v61 = vadd.f32 %v1430_v60, %v3967_v58 }
 0x332   : > { %v1437_v62 = vsel %vm1436_vm0, %v1433_v61, -inf }
 0x333   : > { %1438 = vmax.xlane.f32.xlu1 %v1437_v62 }
 0x335   : > { %v1424_v0 = vpop.f32.mrf.mxu3 }
 0x336   : > { %v1431_v1 = vmul.f32 0.35355338, %v1424_v0 }
 0x338   : > { %v1434_v2 = vadd.f32 %v1431_v1, %v3967_v58 }
 0x33a   : > { %v1440_v3 = vsel %vm1436_vm0, %v1434_v2, -inf }
 0x33b   : > { %1441 = vmax.xlane.f32.xlu2 %v1440_v3 }
 0x33d   : > { %v1427_v4 = vpop.f32.mrf.mxu3 }
 0x33e   : > { %v1432_v5 = vmul.f32 0.35355338, %v1427_v4 }
 0x340   : > { %v1435_v6 = vadd.f32 %v1432_v5, %v3967_v58 }
 0x342   : > { %v1443_v7 = vsel %vm1436_vm0, %v1435_v6, -inf }
 0x343   : > { %1444 = vmax.xlane.f32.xlu1 %v1443_v7 }
 0x35c   : > { %1324 = vrot.lane.b32.xlu1 %v3908_v63, %s3512_s10  ;;  %s4598_s10 = sld [smem:[#allocation42_spill]] (!%p3133_p1) }
 0x364   : > { %1513 = vrot.lane.b32.xlu1 %v3943_v48, %s3513_s5 }
 0x36c   : > { %1505 = vrot.lane.b32.xlu1 %v3952_v51, %s3513_s5 }
 0x374   : > { %1749 = vrot.lane.b32.xlu1 %v3939_v47, %s3514_s1 }
 0x37c   : > { %1747 = vrot.lane.b32.xlu1 %v3943_v48, %s3514_s1 }
 0x384   : > { %1745 = vrot.lane.b32.xlu1 %v3947_v50, %s3514_s1 }
 0x38c   : > { %1739 = vrot.lane.b32.xlu1 %v3952_v51, %s3514_s1 }
 0x394   : > { %1928 = vrot.lane.b32.xlu1 %v3957_v53, %s3515_s21 }
 0x3a6   : > { %v1439_v63 = vpop.xlane.xlu1 %1438 }
 0x3a7   : > { %v1446_v8 = vsub.f32 %v1433_v61, %v1439_v63 }
 0x3a9   : > { %v1449_v9 = vmul.f32 1.442695, %v1446_v8 }
 0x3ab   : > { %3281 = vpow2.f32 %v1449_v9 }
 0x3ae   : > { %v1442_v10 = vpop.xlane.xlu2 %1441 }
 0x3af   : > { %v1447_v11 = vsub.f32 %v1434_v2, %v1442_v10 }
 0x3b1   : > { %v3282_v12 = vpop.eup %3281  ;;  %v1451_v13 = vmul.f32 1.442695, %v1447_v11 }
 0x3b2   : > { %v1455_v14 = vsel %vm1436_vm0, %v3282_v12, 0.0 }
 0x3b3   : > { %3283 = vpow2.f32 %v1451_v13  ;;  %1456 = vadd.xlane.f32.xlu2 %v1455_v14 }
 0x3b6   : > { %v1445_v15 = vpop.xlane.xlu1 %1444 }
 0x3b7   : > { %v1448_v16 = vsub.f32 %v1435_v6, %v1445_v15 }
 0x3b9   : > { %v3284_v17 = vpop.eup %3283  ;;  %v1453_v18 = vmul.f32 1.442695, %v1448_v16 }
 0x3ba   : > { %v1458_v20 = vsel %vm1436_vm0, %v3284_v17, 0.0 }
 0x3bb   : > { %3285 = vpow2.f32 %v1453_v18  ;;  %1459 = vadd.xlane.f32.xlu2 %v1458_v20 }
 0x3c1   : > { %v3286_v21 = vpop.eup %3285 }
 0x3c2   : > { %v1461_v22 = vsel %vm1436_vm0, %v3286_v21, 0.0 }
 0x3c3   : > { %1462 = vadd.xlane.f32.xlu0 %v1461_v22 }
 0x3ce   : > { %v1325_v25 = vpop.permute.xlu1 %1324 }
 0x3cf   : > { %v1369_v26 = vadd.f32 %v1368_v23, %v1325_v25  ;;  %v1372_v27 = vadd.f32 %v1371_v24, %v1325_v25  ;;  %v3995_v30 = vadd.f32 %v1365_v19, %v1325_v25 }
 0x3d1   : > { %1492 = vmatpush.msrb.mxu3 %v1372_v27  ;;  %v3993_v29 = vpack.i.bf16 %v1369_v26, %v1372_v27 }
 0x3d3   : > { %1515 = vrot.lane.b32.xlu2 %v3939_v47, %s3513_s5  ;;  %1493 = vmatpush.msrb.mxu3 %v1369_v26 }
 0x3d5   : > { %1494 = vmatpush.msrb.mxu3 %v3995_v30 }
 0x3d6   : > { %v1514_v32 = vpop.permute.xlu1 %1513 }
 0x3d7   : > { %1936 = vrot.lane.b32.xlu0 %v3939_v47, %s3515_s21  ;;  %3075 = vmatpush.xpose.msk.msra.mxu3 %vm1385_vm14, %v4021_v31 }
 0x3db   : > { %1511 = vrot.lane.b32.xlu2 %v3947_v50, %s3513_s5  ;;  %3076 = vmatpush.xpose.msk.msra.mxu3 %vm1385_vm14, %v4026_v33 }
 0x3de   : > { %v1506_v37 = vpop.permute.xlu1 %1505 }
 0x3df   : > { %1926 = vrot.lane.b32.xlu0 %v3952_v51, %s3515_s21  ;;  %3077 = vmatpush.xpose.msk.msra.mxu3 %vm1385_vm14, %v4031_v34 }
 0x3e3   : > { %1507 = vrot.lane.b32.xlu2 %v3957_v53, %s3513_s5  ;;  %3078 = vmatpush.xpose.msk.msra.mxu3 %vm1385_vm14, %v4036_v36 }
 0x3e6   : > { %v1750_v42 = vpop.permute.xlu1 %1749 }
 0x3e7   : > { %1743 = vrot.lane.b32.xlu0 %v3962_v54, %s3514_s1 }
 0x3eb   : > { %1509 = vrot.lane.b32.xlu2 %v3962_v54, %s3513_s5 }
 0x3ee   : > { %v1748_v47 = vpop.permute.xlu1 %1747 }
 0x3f3   : > { %1934 = vrot.lane.b32.xlu2 %v3943_v48, %s3515_s21 }
 0x3f6   : > { %v1746_v51 = vpop.permute.xlu1 %1745 }
 0x3fb   : > { %1932 = vrot.lane.b32.xlu2 %v3947_v50, %s3515_s21 }
 0x3fe   : > { %v1740_v55 = vpop.permute.xlu1 %1739 }
 0x403   : > { %1741 = vrot.lane.b32.xlu2 %v3957_v53, %s3514_s1 }
 0x406   : > { %v1929_v11 = vpop.permute.xlu1 %1928 }
 0x40b   : > { %1930 = vrot.lane.b32.xlu2 %v3962_v54, %s3515_s21 }
 0x426   : > { %v1457_v35 = vpop.xlane.xlu2 %1456 }
 0x427   : > { %3287 = vrcp.f32 %v1457_v35 }
 0x42d   : > { %v3288_v38 = vpop.eup %3287 }
 0x42e   : > { %v1460_v40 = vpop.xlane.xlu2 %1459  ;;  %v1467_v41 = vmul.f32 %v3288_v38, %v3282_v12 }
 0x42f   : > { %3289 = vrcp.f32 %v1460_v40 }
 0x430   : > { %3056 = vmatmul.msk.f32.vlgmr.msrb.gmra.mxu3 %vm1436_vm0, %v1467_v41 }
 0x435   : > { %v3290_v39 = vpop.eup %3289 }
 0x436   : > { %v1516_v43 = vpop.permute.xlu2 %1515  ;;  %v1463_v44 = vpop.xlane.xlu0 %1462  ;;  %v1468_v45 = vmul.f32 %v3290_v39, %v3284_v17 }
 0x437   : > { %3291 = vrcp.f32 %v1463_v44  ;;  %3059 = vmatpush.xpose.msk.msra.mxu0 %vm1385_vm14, %v1516_v43 }
 0x438   : > { %3057 = vmatmul.msk.f32.gmra.mxu3 %vm1436_vm0, %v1468_v45 }
 0x43b   : > { %3060 = vmatpush.xpose.msk.msra.mxu0 %vm1385_vm14, %v1514_v32 }
 0x43d   : > { %v3292_v46 = vpop.eup %3291 }
 0x43e   : > { %v1512_v48 = vpop.permute.xlu2 %1511  ;;  %v1469_v49 = vmul.f32 %v3292_v46, %v3286_v21 }
 0x43f   : > { %3061 = vmatpush.xpose.msk.msra.mxu0 %vm1385_vm14, %v1512_v48 }
 0x440   : > { %3058 = vmatmul.msk.f32.gmra.mxu3 %vm1436_vm0, %v1469_v49 }
 0x442   : > { %3062 = vmatmul.msk.f32.vlgmr.msra.gmra.mxu0 %vm1385_vm14, %v1506_v37 }
 0x443   : > { %3082 = vmatpush.xpose.msk.msrb.mxu0 %vm1385_vm14, %v1750_v42 }
 0x446   : > { %v1508_v50 = vpop.permute.xlu2 %1507 }
 0x447   : > { %3083 = vmatpush.xpose.msk.msrb.mxu0 %vm1385_vm14, %v1748_v47 }
 0x449   : > { %v1937_v52 = vpop.permute.xlu0 %1936 }
 0x44a   : > { %3063 = vmatmul.msk.f32.gmra.mxu0 %vm1385_vm14, %v1508_v50  ;;  %3098 = vmatpush.xpose.msk.msrb.mxu3 %vm1385_vm14, %v1937_v52 }
 0x44b   : > { %3084 = vmatpush.xpose.msk.msrb.mxu0 %vm1385_vm14, %v1746_v51 }
 0x44e   : > { %v1510_v53 = vpop.permute.xlu2 %1509 }
 0x451   : > { %v1927_v57 = vpop.permute.xlu0 %1926 }
 0x452   : > { %3064 = vmatmul.msk.f32.gmra.mxu0 %vm1385_vm14, %v1510_v53 }
 0x456   : > { %v1935_v54 = vpop.permute.xlu2 %1934 }
 0x457   : > { %3099 = vmatpush.xpose.msk.msrb.mxu3 %vm1385_vm14, %v1935_v54 }
 0x459   : > { %v1744_v60 = vpop.permute.xlu0 %1743 }
 0x45a   : > { %3085 = vmatmul.msk.f32.vlgmr.msrb.gmra.mxu0 %vm1385_vm14, %v1740_v55 }
 0x45e   : > { %v1933_v56 = vpop.permute.xlu2 %1932 }
 0x45f   : > { %3100 = vmatpush.xpose.msk.msrb.mxu3 %vm1385_vm14, %v1933_v56 }
 0x466   : > { %v1742_v59 = vpop.permute.xlu2 %1741 }
 0x467   : > { %3086 = vmatmul.msk.f32.gmra.mxu0 %vm1385_vm14, %v1742_v59 }
 0x46e   : > { %v1931_v16 = vpop.permute.xlu2 %1930 }
 0x46f   : > { %3087 = vmatmul.msk.f32.gmra.mxu0 %vm1385_vm14, %v1744_v60 }
 0x4b3   : > { %v1496_v61 = vpop.f32.mrf.mxu3 }
 0x4b4   : > { %3079 = vmatmul.msk.f32.vlgmr.msra.gmra.mxu3 %vm1385_vm14, %v1496_v61 }
 0x4bb   : > { %v1499_v62 = vpop.f32.mrf.mxu3 }
 0x4bc   : > { %3080 = vmatmul.msk.f32.gmra.mxu3 %vm1385_vm14, %v1499_v62 }
 0x4bf   : > { %v1546_v0 = vpop.f32.mrf.mxu0 }
 0x4c0   : > { %v1555_v1 = vmul.f32 0.35355338, %v1546_v0 }
 0x4c2   : > { %v1558_v2 = vadd.f32 %v1555_v1, %v3967_v58 }
 0x4c3   : > { %v1502_v3 = vpop.f32.mrf.mxu3 }
 0x4c4   : > { %3081 = vmatmul.msk.f32.gmra.mxu3 %vm1385_vm14, %v1502_v3  ;;  %v1561_v4 = vsel %vm1436_vm0, %v1558_v2, -inf }
 0x4c5   : > { %1562 = vmax.xlane.f32.xlu1 %v1561_v4 }
 0x4c7   : > { %v1549_v5 = vpop.f32.mrf.mxu0 }
 0x4c8   : > { %v1556_v6 = vmul.f32 0.35355338, %v1549_v5 }
 0x4ca   : > { %v1559_v7 = vadd.f32 %v1556_v6, %v3967_v58 }
 0x4cc   : > { %3101 = vmatmul.msk.f32.vlgmr.msrb.gmra.mxu3 %vm1385_vm14, %v1927_v57  ;;  %v1564_v63 = vsel %vm1436_vm0, %v1559_v7, -inf }
 0x4cd   : > { %1565 = vmax.xlane.f32.xlu0 %v1564_v63 }
 0x4cf   : > { %v1552_v8 = vpop.f32.mrf.mxu0 }
 0x4d0   : > { %v1557_v9 = vmul.f32 0.35355338, %v1552_v8 }
 0x4d2   : > { %v1560_v10 = vadd.f32 %v1557_v9, %v3967_v58 }
 0x4d4   : > { %3102 = vmatmul.msk.f32.gmra.mxu3 %vm1385_vm14, %v1929_v11  ;;  %v1567_v12 = vsel %vm1436_vm0, %v1560_v10, -inf }
 0x4d5   : > { %1568 = vmax.xlane.f32.xlu2 %v1567_v12 }
 0x4d7   : > { %v1780_v13 = vpop.f32.mrf.mxu0 }
 0x4d8   : > { %v1789_v14 = vmul.f32 0.35355338, %v1780_v13 }
 0x4da   : > { %v1792_v15 = vadd.f32 %v1789_v14, %v3967_v58 }
 0x4dc   : > { %3103 = vmatmul.msk.f32.gmra.mxu3 %vm1385_vm14, %v1931_v16  ;;  %v1795_v17 = vsel %vm1436_vm0, %v1792_v15, -inf }
 0x4dd   : > { %1796 = vmax.xlane.f32.xlu1 %v1795_v17 }
 0x4e4   : > { %v1783_v18 = vpop.f32.mrf.mxu0 }
 0x4e5   : > { %v1790_v19 = vmul.f32 0.35355338, %v1783_v18 }
 0x4e7   : > { %v1793_v20 = vadd.f32 %v1790_v19, %v3967_v58 }
 0x4e9   : > { %v1798_v21 = vsel %vm1436_vm0, %v1793_v20, -inf }
 0x4ea   : > { %1799 = vmax.xlane.f32.xlu0 %v1798_v21 }
 0x4ec   : > { %v1786_v22 = vpop.f32.mrf.mxu0 }
 0x4ed   : > { %3256 = vrot.lane.b32.xlu2 %v3993_v29, %s3514_s1  ;;  %v1791_v23 = vmul.f32 0.35355338, %v1786_v22 }
 0x4ef   : > { %v4081_v24 = vadd.f32 %v1791_v23, %v3967_v58 }
 0x4f1   : > { %v1801_v25 = vsel %vm1436_vm0, %v4081_v24, -inf }
 0x4f6   : > { %1597 = vrot.lane.b32.xlu1 %v3995_v30, %s3513_s5 }
 0x4fe   : > { %3251 = vrot.lane.b32.xlu0 %v3993_v29, %s3513_s5 }
 0x520   : > { %1802 = vmax.xlane.f32.xlu1 %v1801_v25 }
 0x537   : > { %v4085_v26 = vpop.f32.mrf.mxu3 }
 0x538   : > { %v1563_v27 = vpop.xlane.xlu1 %1562 }
 0x539   : > { %v1570_v32 = vsub.f32 %v1558_v2, %v1563_v27 }
 0x53b   : > { %v1573_v35 = vmul.f32 1.442695, %v1570_v32 }
 0x53d   : > { %3293 = vpow2.f32 %v1573_v35 }
 0x53f   : > { %v4087_v37 = vpop.f32.mrf.mxu3 }
 0x540   : > { %v1566_v38 = vpop.xlane.xlu0 %1565 }
 0x541   : > { %v1571_v40 = vsub.f32 %v1559_v7, %v1566_v38 }
 0x543   : > { %v4089_v41 = vpop.eup %3293  ;;  %v1575_v42 = vmul.f32 1.442695, %v1571_v40 }
 0x544   : > { %v1579_v39 = vsel %vm1436_vm0, %v4089_v41, 0.0 }
 0x545   : > { %3295 = vpow2.f32 %v1575_v42  ;;  %1580 = vadd.xlane.f32.xlu1 %v1579_v39 }
 0x547   : > { %v4093_v43 = vpop.f32.mrf.mxu3 }
 0x548   : > { %v1569_v44 = vpop.xlane.xlu2 %1568 }
 0x549   : > { %v1572_v45 = vsub.f32 %v1560_v10, %v1569_v44 }
 0x54b   : > { %v4095_v46 = vpop.eup %3295  ;;  %v1577_v47 = vmul.f32 1.442695, %v1572_v45 }
 0x54c   : > { %v1582_v48 = vsel %vm1436_vm0, %v4095_v46, 0.0 }
 0x54d   : > { %3297 = vpow2.f32 %v1577_v47  ;;  %1583 = vadd.xlane.f32.xlu2 %v1582_v48 }
 0x54f   : > { %v1967_v49 = vpop.f32.mrf.mxu3 }
 0x550   : > { %v1797_v50 = vpop.xlane.xlu1 %1796  ;;  %v1976_v54 = vmul.f32 0.35355338, %v1967_v49  ;;  %v3257_v12 = vpop.permute.xlu2 %3256 }
 0x551   : > { %v1804_v51 = vsub.f32 %v1792_v15, %v1797_v50  ;;  %v3258_v14 = vunpack.i.l.bf16 %v3257_v12  ;;  %v3259_v15 = vunpack.i.h.bf16 %v3257_v12 }
 0x552   : > { %v4104_v57 = vadd.f32 %v1976_v54, %v3967_v58 }
 0x553   : > { %v4099_v52 = vpop.eup %3297  ;;  %v1807_v53 = vmul.f32 1.442695, %v1804_v51 }
 0x554   : > { %v1585_v55 = vsel %vm1436_vm0, %v4099_v52, 0.0  ;;  %v1982_v61 = vsel %vm1436_vm0, %v4104_v57, -inf }
 0x555   : > { %3299 = vpow2.f32 %v1807_v53  ;;  %1586 = vadd.xlane.f32.xlu2 %v1585_v55 }
 0x557   : > { %v1970_v56 = vpop.f32.mrf.mxu3 }
 0x558   : > { %v1977_v60 = vmul.f32 0.35355338, %v1970_v56 }
 0x55a   : > { %v1980_v5 = vadd.f32 %v1977_v60, %v3967_v58 }
 0x55b   : > { %v4106_v59 = vpop.eup %3299 }
 0x55c   : > { %v1813_v62 = vsel %vm1436_vm0, %v4106_v59, 0.0  ;;  %v1985_v63 = vsel %vm1436_vm0, %v1980_v5, -inf }
 0x55d   : > { %1983 = vmax.xlane.f32.xlu2 %v1982_v61  ;;  %v1800_v0 = vpop.xlane.xlu0 %1799  ;;  %1814 = vadd.xlane.f32.xlu0 %v1813_v62 }
 0x55e   : > { %v1805_v1 = vsub.f32 %v1793_v20, %v1800_v0 }
 0x55f   : > { %v1973_v2 = vpop.f32.mrf.mxu3 }
 0x560   : > { %v1809_v3 = vmul.f32 1.442695, %v1805_v1  ;;  %v1978_v4 = vmul.f32 0.35355338, %v1973_v2 }
 0x562   : > { %3301 = vpow2.f32 %v1809_v3  ;;  %v1981_v6 = vadd.f32 %v1978_v4, %v3967_v58 }
 0x564   : > { %v1988_v7 = vsel %vm1436_vm0, %v1981_v6, -inf }
 0x565   : > { %1989 = vmax.xlane.f32.xlu2 %v1988_v7  ;;  %1986 = vmax.xlane.f32.xlu0 %v1985_v63 }
 0x568   : > { %v4116_v8 = vpop.eup %3301  ;;  %v1598_v58 = vpop.permute.xlu1 %1597 }
 0x569   : > { %v1816_v9 = vsel %vm1436_vm0, %v4116_v8, 0.0 }
 0x56a   : > { %1817 = vadd.xlane.f32.xlu1 %v1816_v9 }
 0x570   : > { %v3252_v10 = vpop.permute.xlu0 %3251 }
 0x571   : > { %v3253_v11 = vunpack.i.l.bf16 %v3252_v10  ;;  %v3254_v13 = vunpack.i.h.bf16 %v3252_v10 }
 0x573   : > { %1628 = vmatpush.msra.mxu1 %v3253_v11 }
 0x575   : > { %1629 = vmatpush.msra.mxu1 %v3254_v13 }
 0x577   : > { %1630 = vmatpush.msra.mxu1 %v1598_v58 }
 0x579   : > { %1859 = vmatpush.msrb.mxu1 %v3258_v14  ;;  %1828 = vrot.lane.b32.xlu0 %v3995_v30, %s3514_s1 }
 0x57b   : > { %1860 = vmatpush.msrb.mxu1 %v3259_v15 }
 0x583   : > { %3261 = vrot.lane.b32.xlu1 %v3993_v29, %s3515_s21 }
 0x593   : > { %v1803_v16 = vpop.xlane.xlu1 %1802 }
 0x594   : > { %v1806_v17 = vsub.f32 %v4081_v24, %v1803_v16 }
 0x596   : > { %v1811_v18 = vmul.f32 1.442695, %v1806_v17 }
 0x598   : > { %3303 = vpow2.f32 %v1811_v18 }
 0x59e   : > { %v4125_v19 = vpop.eup %3303 }
 0x59f   : > { %v1819_v20 = vsel %vm1436_vm0, %v4125_v19, 0.0 }
 0x5a3   : > { %1820 = vadd.xlane.f32.xlu0 %v1819_v20 }
 0x5b7   : > { %1649 = vrot.lane.b32.xlu0 %v4026_v33, %s3513_s5 }
 0x5b8   : > { %v1581_v21 = vpop.xlane.xlu1 %1580 }
 0x5b9   : > { %3305 = vrcp.f32 %v1581_v21 }
 0x5bf   : > { %v3306_v22 = vpop.eup %3305  ;;  %1874 = vrot.lane.b32.xlu0 %v4031_v34, %s3514_s1 }
 0x5c0   : > { %v1591_v29 = vmul.f32 %v3306_v22, %v4089_v41  ;;  %v1584_v23 = vpop.xlane.xlu2 %1583 }
 0x5c1   : > { %3307 = vrcp.f32 %v1584_v23 }
 0x5c2   : > { %3065 = vmatmul.msk.f32.vlgmr.msra.gmra.mxu1 %vm1436_vm0, %v1591_v29 }
 0x5c7   : > { %v3308_v24 = vpop.eup %3307  ;;  %1872 = vrot.lane.b32.xlu0 %v4036_v36, %s3514_s1 }
 0x5c8   : > { %v1587_v25 = vpop.xlane.xlu2 %1586  ;;  %v1592_v27 = vmul.f32 %v3308_v24, %v4095_v46 }
 0x5c9   : > { %3309 = vrcp.f32 %v1587_v25 }
 0x5ca   : > { %3066 = vmatmul.msk.f32.gmra.mxu1 %vm1436_vm0, %v1592_v27 }
 0x5cf   : > { %v3310_v32 = vpop.eup %3309  ;;  %2061 = vrot.lane.b32.xlu0 %v4031_v34, %s3515_s21 }
 0x5d0   : > { %v1984_v35 = vpop.xlane.xlu2 %1983  ;;  %v1815_v38 = vpop.xlane.xlu0 %1814  ;;  %v1593_v40 = vmul.f32 %v3310_v32, %v4099_v52 }
 0x5d1   : > { %v1991_v41 = vsub.f32 %v4104_v57, %v1984_v35 }
 0x5d2   : > { %3067 = vmatmul.msk.f32.gmra.mxu1 %vm1436_vm0, %v1593_v40 }
 0x5d3   : > { %v1994_v42 = vmul.f32 1.442695, %v1991_v41 }
 0x5d5   : > { %3311 = vpow2.f32 %v1994_v42 }
 0x5d8   : > { %v1990_v39 = vpop.xlane.xlu2 %1989  ;;  %v1987_v44 = vpop.xlane.xlu0 %1986 }
 0x5d9   : > { %v1993_v45 = vsub.f32 %v1981_v6, %v1990_v39  ;;  %v1992_v46 = vsub.f32 %v1980_v5, %v1987_v44  ;;  %v3268_v44 = vld [vmem:[%s4594_s24] ss:$0 sm:$0xff] }
 0x5db   : > { %v3312_v47 = vpop.eup %3311  ;;  %v1998_v48 = vmul.f32 1.442695, %v1993_v45  ;;  %v1996_v49 = vmul.f32 1.442695, %v1992_v46 }
 0x5dc   : > { %v2000_v50 = vsel %vm1436_vm0, %v3312_v47, 0.0 }
 0x5dd   : > { %3313 = vpow2.f32 %v1998_v48  ;;  %2001 = vadd.xlane.f32.xlu2 %v2000_v50  ;;  %v1818_v55 = vpop.xlane.xlu1 %1817  ;;  %v3347_v50 = vld [vmem:[#allocation2] sm:$0xff] }
 0x5de   : > { %3315 = vpow2.f32 %v1996_v49 }
 0x5df   : > { %3317 = vrcp.f32 %v1815_v38 }
 0x5e0   : > { %3319 = vrcp.f32 %v1818_v55 }
 0x5e3   : > { %v3314_v51 = vpop.eup %3313 }
 0x5e4   : > { %v3316_v52 = vpop.eup %3315  ;;  %v2006_v53 = vsel %vm1436_vm0, %v3314_v51, 0.0 }
 0x5e5   : > { %2007 = vadd.xlane.f32.xlu1 %v2006_v53  ;;  %v2003_v54 = vsel %vm1436_vm0, %v3316_v52, 0.0  ;;  %v3318_v56 = vpop.eup %3317 }
 0x5e6   : > { %2004 = vadd.xlane.f32.xlu2 %v2003_v54  ;;  %v1825_v57 = vmul.f32 %v3318_v56, %v4106_v59  ;;  %v3320_v61 = vpop.eup %3319 }
 0x5e7   : > { %v1826_v62 = vmul.f32 %v3320_v61, %v4116_v8 }
 0x5eb   : > { %v1829_v60 = vpop.permute.xlu0 %1828 }
 0x5ec   : > { %1861 = vmatpush.msrb.mxu1 %v1829_v60  ;;  %v3348_v60 = vld [vmem:[#allocation2 + $0x8] sm:$0xff] }
 0x5ed   : > { %3088 = vmatmul.msk.f32.vlgmr.msrb.gmra.mxu1 %vm1436_vm0, %v1825_v57 }
 0x5f5   : > { %3089 = vmatmul.msk.f32.gmra.mxu1 %vm1436_vm0, %v1826_v62  ;;  %v3262_v0 = vpop.permute.xlu1 %3261 }
 0x5f6   : > { %v3263_v1 = vunpack.i.l.bf16 %v3262_v0  ;;  %v3264_v2 = vunpack.i.h.bf16 %v3262_v0 }
 0x5f8   : > { %2046 = vmatpush.msra.mxu0 %v3263_v1 }
 0x5fa   : > { %2047 = vmatpush.msra.mxu0 %v3264_v2 }
 0x5fe   : > { %2015 = vrot.lane.b32.xlu2 %v3995_v30, %s3515_s21  ;;  %1878 = vrot.lane.b32.xlu1 %v4021_v31, %s3514_s1 }
 0x606   : > { %1651 = vrot.lane.b32.xlu2 %v4021_v31, %s3513_s5  ;;  %2059 = vrot.lane.b32.xlu1 %v4036_v36, %s3515_s21 }
 0x60e   : > { %1647 = vrot.lane.b32.xlu2 %v4031_v34, %s3513_s5 }
 0x616   : > { %v1821_v59 = vpop.xlane.xlu0 %1820  ;;  %1645 = vrot.lane.b32.xlu2 %v4036_v36, %s3513_s5 }
 0x617   : > { %3321 = vrcp.f32 %v1821_v59  ;;  %v3349_v59 = vld [vmem:[#allocation2 + $0x10] sm:$0xff] }
 0x61d   : > { %v3322_v3 = vpop.eup %3321 }
 0x61e   : > { %v1827_v30 = vmul.f32 %v3322_v3, %v4125_v19  ;;  %1876 = vrot.lane.b32.xlu2 %v4026_v33, %s3514_s1  ;;  %s4599_s1 = sld [smem:[#allocation43_spill]] (!%p3133_p1) }
 0x620   : > { %3090 = vmatmul.msk.f32.gmra.mxu1 %vm1436_vm0, %v1827_v30  ;;  %v2218_v30 = vld [vmem:[%s3795_s2 + $0x78] sm:$0xff] }
 0x626   : > { %2065 = vrot.lane.b32.xlu2 %v4021_v31, %s3515_s21 }
 0x629   : > { %v1650_v31 = vpop.permute.xlu0 %1649 }
 0x62e   : > { %2063 = vrot.lane.b32.xlu2 %v4026_v33, %s3515_s21  ;;  %s4600_s21 = smov (!%p3133_p1), %s4599_s1 }
 0x631   : > { %v1875_v58 = vpop.permute.xlu0 %1874 }
 0x639   : > { %v1873_v17 = vpop.permute.xlu0 %1872 }
 0x63f   : > { %v1632_v12 = vpop.f32.mrf.mxu1 }
 0x641   : > { %v2062_v22 = vpop.permute.xlu0 %2061 }
 0x647   : > { %v1635_v15 = vpop.f32.mrf.mxu1 }
 0x64f   : > { %v1638_v19 = vpop.f32.mrf.mxu1 }
 0x650   : > { %v2002_v34 = vpop.xlane.xlu2 %2001 }
 0x651   : > { %3323 = vrcp.f32 %v2002_v34  ;;  %v2217_v34 = vld [vmem:[%s3795_s2 + $0x70] sm:$0xff] }
 0x657   : > { %v3324_v5 = vpop.eup %3323 }
 0x658   : > { %v2012_v36 = vmul.f32 %v3324_v5, %v3312_v47  ;;  %v2008_v7 = vpop.xlane.xlu1 %2007 }
 0x659   : > { %v2005_v4 = vpop.xlane.xlu2 %2004 }
 0x65a   : > { %3325 = vrcp.f32 %v2005_v4  ;;  %v2216_v4 = vld [vmem:[%s3795_s2 + $0x68] sm:$0xff] }
 0x65b   : > { %3327 = vrcp.f32 %v2008_v7 }
 0x660   : > { %v3326_v63 = vpop.eup %3325 }
 0x661   : > { %v2016_v6 = vpop.permute.xlu2 %2015  ;;  %v2013_v9 = vmul.f32 %v3326_v63, %v3316_v52  ;;  %v3328_v33 = vpop.eup %3327 }
 0x662   : > { %2048 = vmatpush.msra.mxu0 %v2016_v6  ;;  %v2014_v11 = vmul.f32 %v3328_v33, %v3314_v51  ;;  %v2215_v6 = vld [vmem:[%s3795_s2 + $0x60] sm:$0xff] }
 0x663   : > { %3104 = vmatmul.msk.f32.vlgmr.msra.gmra.mxu0 %vm1436_vm0, %v2012_v36 }
 0x669   : > { %v1652_v8 = vpop.permute.xlu2 %1651 }
 0x66a   : > { %3068 = vmatpush.xpose.msk.msra.mxu2 %vm1385_vm14, %v1652_v8  ;;  %v1863_v21 = vpop.f32.mrf.mxu1  ;;  %v2214_v8 = vld [vmem:[%s3795_s2 + $0x58] sm:$0xff] }
 0x66b   : > { %3105 = vmatmul.msk.f32.gmra.mxu0 %vm1436_vm0, %v2013_v9 }
 0x66e   : > { %3069 = vmatpush.xpose.msk.msra.mxu2 %vm1385_vm14, %v1650_v31 }
 0x670   : > { %v1879_v13 = vpop.permute.xlu1 %1878 }
 0x671   : > { %v1648_v10 = vpop.permute.xlu2 %1647 }
 0x672   : > { %3070 = vmatpush.xpose.msk.msra.mxu2 %vm1385_vm14, %v1648_v10  ;;  %v1866_v23 = vpop.f32.mrf.mxu1  ;;  %v2213_v10 = vld [vmem:[%s3795_s2 + $0x50] sm:$0xff] }
 0x673   : > { %3106 = vmatmul.msk.f32.gmra.mxu0 %vm1436_vm0, %v2014_v11 }
 0x678   : > { %v2060_v29 = vpop.permute.xlu1 %2059 }
 0x679   : > { %v1646_v14 = vpop.permute.xlu2 %1645 }
 0x67a   : > { %3071 = vmatpush.xpose.msk.msra.mxu2 %vm1385_vm14, %v1646_v14 }
 0x67d   : > { %3072 = vmatmul.msk.f32.vlgmr.msra.gmra.mxu2 %vm1385_vm14, %v1632_v12 }
 0x67e   : > { %3091 = vmatpush.xpose.msk.msrb.mxu2 %vm1385_vm14, %v1879_v13  ;;  %v2212_v13 = vld [vmem:[%s3795_s2 + $0x48] sm:$0xff] }
 0x681   : > { %v1877_v16 = vpop.permute.xlu2 %1876 }
 0x682   : > { %3092 = vmatpush.xpose.msk.msrb.mxu2 %vm1385_vm14, %v1877_v16  ;;  %v2211_v16 = vld [vmem:[%s3795_s2 + $0x40] sm:$0xff] }
 0x685   : > { %3073 = vmatmul.msk.f32.gmra.mxu2 %vm1385_vm14, %v1635_v15 }
 0x686   : > { %3093 = vmatpush.xpose.msk.msrb.mxu2 %vm1385_vm14, %v1875_v58 }
 0x689   : > { %v2066_v18 = vpop.permute.xlu2 %2065 }
 0x68a   : > { %3094 = vmatpush.xpose.msk.msrb.mxu2 %vm1385_vm14, %v1873_v17  ;;  %3107 = vmatpush.xpose.msk.msra.mxu1 %vm1385_vm14, %v2066_v18 }
 0x68d   : > { %3074 = vmatmul.msk.f32.gmra.mxu2 %vm1385_vm14, %v1638_v19  ;;  %v2210_v19 = vld [vmem:[%s3795_s2 + $0x38] sm:$0xff] }
 0x68e   : > { %3114 = vmatpush.xpose.msk.msra.mxu2 %vm1106_vm2, %v2218_v30 }
 0x691   : > { %v2064_v20 = vpop.permute.xlu2 %2063 }
 0x692   : > { %3108 = vmatpush.xpose.msk.msra.mxu1 %vm1385_vm14, %v2064_v20  ;;  %3115 = vmatpush.xpose.msk.msra.mxu2 %vm1106_vm2, %v2217_v34 }
 0x695   : > { %3095 = vmatmul.msk.f32.vlgmr.msrb.gmra.mxu2 %vm1385_vm14, %v1863_v21  ;;  %v2209_v21 = vld [vmem:[%s3795_s2 + $0x30] sm:$0xff] }
 0x696   : > { %3109 = vmatpush.xpose.msk.msra.mxu1 %vm1385_vm14, %v2062_v22  ;;  %3116 = vmatpush.xpose.msk.msra.mxu2 %vm1106_vm2, %v2216_v4  ;;  %v2208_v22 = vld [vmem:[%s3795_s2 + $0x28] sm:$0xff] }
 0x69a   : > { %3110 = vmatpush.xpose.msk.msra.mxu1 %vm1385_vm14, %v2060_v29  ;;  %3117 = vmatpush.xpose.msk.msra.mxu2 %vm1106_vm2, %v2215_v6  ;;  %v2207_v29 = vld [vmem:[%s3795_s2 + $0x20] sm:$0xff] }
 0x69d   : > { %3096 = vmatmul.msk.f32.gmra.mxu2 %vm1385_vm14, %v1866_v23  ;;  %v1869_v24 = vpop.f32.mrf.mxu1  ;;  %v2206_v23 = vld [vmem:[%s3795_s2 + $0x18] sm:$0xff] }
 0x69e   : > { %3118 = vmatpush.xpose.msk.msra.mxu2 %vm1106_vm2, %v2214_v8 }
 0x6a2   : > { %3119 = vmatpush.xpose.msk.msra.mxu2 %vm1106_vm2, %v2213_v10  ;;  %v3271_v10 = vld [vmem:[%s1023_s23] ss:$0 sm:$0xff] }
 0x6a5   : > { %3097 = vmatmul.msk.f32.gmra.mxu2 %vm1385_vm14, %v1869_v24  ;;  %v2205_v24 = vld [vmem:[%s3795_s2 + $0x10] sm:$0xff] }
 0x6a6   : > { %3120 = vmatpush.xpose.msk.msra.mxu2 %vm1106_vm2, %v2212_v13 }
 0x6aa   : > { %3121 = vmatpush.xpose.msk.msra.mxu2 %vm1106_vm2, %v2211_v16 }
 0x6ae   : > { %3122 = vmatpush.xpose.msk.msra.mxu2 %vm1106_vm2, %v2210_v19 }
 0x6b2   : > { %3123 = vmatpush.xpose.msk.msra.mxu2 %vm1106_vm2, %v2209_v21 }
 0x6b6   : > { %3124 = vmatpush.xpose.msk.msra.mxu2 %vm1106_vm2, %v2208_v22 }
 0x6ba   : > { %3125 = vmatpush.xpose.msk.msra.mxu2 %vm1106_vm2, %v2207_v29 }
 0x6be   : > { %3126 = vmatpush.xpose.msk.msra.mxu2 %vm1106_vm2, %v2206_v23 }
 0x6c2   : > { %3127 = vmatpush.xpose.msk.msra.mxu2 %vm1106_vm2, %v2205_v24 }
 0x6e0   : > { %v2050_v25 = vpop.f32.mrf.mxu0 }
 0x6e1   : > { %3111 = vmatmul.msk.f32.vlgmr.msra.gmra.mxu1 %vm1385_vm14, %v2050_v25  ;;  %v2204_v25 = vld [vmem:[%s3795_s2 + $0x8] sm:$0xff] }
 0x6e2   : > { %3128 = vmatpush.xpose.msk.msra.mxu2 %vm1106_vm2, %v2204_v25  ;;  %v2427_v25 = vld [vmem:[%s3804_s6 + $0x8] sm:$0xff] }
 0x6e8   : > { %v2053_v27 = vpop.f32.mrf.mxu0 }
 0x6e9   : > { %3112 = vmatmul.msk.f32.gmra.mxu1 %vm1385_vm14, %v2053_v27  ;;  %v2203_v27 = vld [vmem:[%s3795_s2] sm:$0xff] }
 0x6ea   : > { %3129 = vmatpush.xpose.msk.msra.mxu2 %vm1106_vm2, %v2203_v27 }
 0x6f0   : > { %v2056_v32 = vpop.f32.mrf.mxu0 }
 0x6f1   : > { %3113 = vmatmul.msk.f32.gmra.mxu1 %vm1385_vm14, %v2056_v32 }
 0x700   : > { %v1687_v35 = vpop.f32.mrf.mxu2 }
 0x701   : > { %v1731_v42 = vadd.f32 %v4085_v26, %v1687_v35 }
 0x708   : > { %v1690_v38 = vpop.f32.mrf.mxu2 }
 0x709   : > { %v1734_v49 = vadd.f32 %v4087_v37, %v1690_v38 }
 0x710   : > { %v1693_v40 = vpop.f32.mrf.mxu2 }
 0x711   : > { %v1737_v57 = vadd.f32 %v4093_v43, %v1693_v40 }
 0x718   : > { %v1914_v41 = vpop.f32.mrf.mxu2 }
 0x719   : > { %v1923_v39 = vadd.f32 %v1914_v41, %v1731_v42 }
 0x720   : > { %v1917_v47 = vpop.f32.mrf.mxu2 }
 0x721   : > { %v1924_v52 = vadd.f32 %v1917_v47, %v1734_v49 }
 0x728   : > { %v1920_v56 = vpop.f32.mrf.mxu2 }
 0x729   : > { %v1925_v37 = vadd.f32 %v1920_v56, %v1737_v57 }
 0x75e   : > { %v2101_v45 = vpop.f32.mrf.mxu1 }
 0x75f   : > { %v2110_v46 = vadd.f32 %v2101_v45, %v1923_v39 }
 0x761   : > { %v2117_v48 = vadd.f32 %v3268_v44, %v2110_v46 }
 0x763   : > { %v4202_v51 = vadd.f32 %v3347_v50, %v2117_v48 }
 0x765   : > { %v2125_v53 = vsel %vm1106_vm2, %v4202_v51, 0.0 }
 0x766   : > { %2126 = vadd.xlane.f32.xlu2 %v2125_v53  ;;  %v2104_v26 = vpop.f32.mrf.mxu1 }
 0x767   : > { %v2111_v54 = vadd.f32 %v2104_v26, %v1924_v52 }
 0x769   : > { %v2118_v55 = vadd.f32 %v3268_v44, %v2111_v54  ;;  %v3269_v54 = vld [vmem:[%s4595_s17] ss:$0 sm:$0xff] }
 0x76b   : > { %v4207_v61 = vadd.f32 %v3348_v60, %v2118_v55  ;;  %v3270_v60 = vld [vmem:[%s4596_s26] ss:$0 sm:$0xff] }
 0x76d   : > { %v2128_v62 = vsel %vm1106_vm2, %v4207_v61, 0.0 }
 0x76e   : > { %2129 = vadd.xlane.f32.xlu0 %v2128_v62  ;;  %v2107_v0 = vpop.f32.mrf.mxu1 }
 0x76f   : > { %v2112_v1 = vadd.f32 %v2107_v0, %v1925_v37 }
 0x771   : > { %v2119_v2 = vadd.f32 %v3268_v44, %v2112_v1 }
 0x773   : > { %v4211_v3 = vadd.f32 %v3349_v59, %v2119_v2 }
 0x775   : > { %v2131_v43 = vsel %vm1106_vm2, %v4211_v3, 0.0 }
 0x776   : > { %2132 = vadd.xlane.f32.xlu1 %v2131_v43 }
 0x7d9   : > { %v2127_v5 = vpop.xlane.xlu2 %2126 }
 0x7da   : > { %v2134_v36 = vmul.f32 %v2127_v5, %v3856_v28 }
 0x7dc   : > { %v4224_v7 = vsub.f32 %v4202_v51, %v2134_v36 }
 0x7de   : > { %v2140_v63 = vmul.f32 %v4224_v7, %v4224_v7 }
 0x7e0   : > { %v2143_v9 = vsel %vm1106_vm2, %v2140_v63, 0.0 }
 0x7e1   : > { %2144 = vadd.xlane.f32.xlu2 %v2143_v9  ;;  %v2130_v31 = vpop.xlane.xlu0 %2129 }
 0x7e2   : > { %v2135_v33 = vmul.f32 %v2130_v31, %v3856_v28 }
 0x7e4   : > { %v4235_v11 = vsub.f32 %v4207_v61, %v2135_v33 }
 0x7e6   : > { %v2141_v12 = vmul.f32 %v4235_v11, %v4235_v11 }
 0x7e8   : > { %v2146_v14 = vsel %vm1106_vm2, %v2141_v12, 0.0 }
 0x7e9   : > { %2147 = vadd.xlane.f32.xlu0 %v2146_v14  ;;  %v2133_v58 = vpop.xlane.xlu1 %2132 }
 0x7ea   : > { %v2136_v15 = vmul.f32 %v2133_v58, %v3856_v28 }
 0x7ec   : > { %v4246_v17 = vsub.f32 %v4211_v3, %v2136_v15 }
 0x7ee   : > { %v2142_v18 = vmul.f32 %v4246_v17, %v4246_v17 }
 0x7f0   : > { %v2149_v20 = vsel %vm1106_vm2, %v2142_v18, 0.0  ;;  %v2429_v18 = vld [vmem:[%s3804_s6 + $0x18] sm:$0xff] }
 0x7f1   : > { %2150 = vadd.xlane.f32.xlu2 %v2149_v20  ;;  %2446 = vmatpush.xpose.msra.mxu3 %v2429_v18  ;;  %v2428_v20 = vld [vmem:[%s3804_s6 + $0x10] sm:$0xff] }
 0x7f5   : > { %2447 = vmatpush.xpose.msra.mxu3 %v2428_v20 }
 0x7f9   : > { %2448 = vmatpush.xpose.msra.mxu3 %v2427_v25 }
 0x854   : > { %v2145_v32 = vpop.xlane.xlu2 %2144 }
 0x855   : > { %v2152_v35 = vmul.f32 %v2145_v32, %v3856_v28 }
 0x857   : > { %v2155_v38 = vadd.f32 1e-06, %v2152_v35 }
 0x859   : > { %3329 = vrsqrt.f32 %v2155_v38  ;;  %vm2164_vm3 = vweird.f32 %v2155_v38 }
 0x85c   : > { %v2148_v40 = vpop.xlane.xlu0 %2147 }
 0x85d   : > { %v2153_v41 = vmul.f32 %v2148_v40, %v3856_v28 }
 0x85f   : > { %v3330_v42 = vpop.eup %3329  ;;  %v2156_v39 = vadd.f32 1e-06, %v2153_v41 }
 0x860   : > { %v2159_v44 = vmul.f32 %v3330_v42, %v2155_v38  ;;  %vm2165_vm1 = vweird.f32 %v3330_v42 }
 0x861   : > { %3331 = vrsqrt.f32 %v2156_v39  ;;  %vm2166_vm4 = vmor %vm2164_vm3, %vm2165_vm1  ;;  %vm2174_vm6 = vweird.f32 %v2156_v39 }
 0x862   : > { %v2160_v45 = vmul.f32 %v3330_v42, %v2159_v44 }
 0x864   : > { %v2161_v46 = vmul.f32 0.5, %v2160_v45  ;;  %v2151_v47 = vpop.xlane.xlu2 %2150 }
 0x865   : > { %v2154_v48 = vmul.f32 %v2151_v47, %v3856_v28 }
 0x866   : > { %v2162_v49 = vsub.f32 1.5, %v2161_v46 }
 0x867   : > { %v3332_v50 = vpop.eup %3331  ;;  %v2157_v52 = vadd.f32 1e-06, %v2154_v48 }
 0x868   : > { %v2163_v53 = vmul.f32 %v3330_v42, %v2162_v49  ;;  %v2169_v26 = vmul.f32 %v3332_v50, %v2156_v39  ;;  %vm2175_vm5 = vweird.f32 %v3332_v50 }
 0x869   : > { %3333 = vrsqrt.f32 %v2157_v52  ;;  %vm2176_vm7 = vmor %vm2174_vm6, %vm2175_vm5  ;;  %vm2184_vm9 = vweird.f32 %v2157_v52 }
 0x86a   : > { %v2167_v55 = vsel %vm2166_vm4, %v3330_v42, %v2163_v53  ;;  %v2170_v56 = vmul.f32 %v3332_v50, %v2169_v26  ;;  %v2426_v42 = vld [vmem:[%s3804_s6] sm:$0xff]  ;;  %s4604_s6 = sld [smem:[#allocation25_spill]] (!%p3133_p1) }
 0x86b   : > { %v2188_v57 = vmul.f32 %v2167_v55, %v4224_v7  ;;  %2449 = vmatpush.xpose.msra.mxu3 %v2426_v42 }
 0x86c   : > { %v2171_v37 = vmul.f32 0.5, %v2170_v56 }
 0x86d   : > { %v2194_v62 = vmul.f32 %v3269_v54, %v2188_v57 }
 0x86e   : > { %v2172_v0 = vsub.f32 1.5, %v2171_v37 }
 0x86f   : > { %v3334_v1 = vpop.eup %3333  ;;  %v2200_v2 = vadd.f32 %v3270_v60, %v2194_v62 }
 0x870   : > { %v2173_v59 = vmul.f32 %v3332_v50, %v2172_v0  ;;  %v2179_v43 = vmul.f32 %v3334_v1, %v2157_v52  ;;  %vm2185_vm8 = vweird.f32 %v3334_v1 }
 0x871   : > { %3130 = vmatmul.msk.f32.vlgmr.msra.gmra.mxu2 %vm1106_vm2, %v2200_v2  ;;  %vm2186_vm10 = vmor %vm2184_vm9, %vm2185_vm8 }
 0x872   : > { %v2177_v30 = vsel %vm2176_vm7, %v3332_v50, %v2173_v59  ;;  %v2180_v34 = vmul.f32 %v3334_v1, %v2179_v43 }
 0x873   : > { %v2189_v4 = vmul.f32 %v2177_v30, %v4235_v11 }
 0x874   : > { %v2181_v5 = vmul.f32 0.5, %v2180_v34 }
 0x875   : > { %v2195_v36 = vmul.f32 %v3269_v54, %v2189_v4 }
 0x876   : > { %v2182_v6 = vsub.f32 1.5, %v2181_v5 }
 0x877   : > { %v2201_v7 = vadd.f32 %v3270_v60, %v2195_v36 }
 0x878   : > { %v2183_v63 = vmul.f32 %v3334_v1, %v2182_v6 }
 0x879   : > { %3131 = vmatmul.msk.f32.gmra.mxu2 %vm1106_vm2, %v2201_v7 }
 0x87a   : > { %v2187_v8 = vsel %vm2186_vm10, %v3334_v1, %v2183_v63 }
 0x87b   : > { %v2190_v9 = vmul.f32 %v2187_v8, %v4246_v17 }
 0x87d   : > { %v2196_v31 = vmul.f32 %v3269_v54, %v2190_v9 }
 0x87f   : > { %v2202_v33 = vadd.f32 %v3270_v60, %v2196_v31 }
 0x881   : > { %3132 = vmatmul.msk.f32.gmra.mxu2 %vm1106_vm2, %v2202_v33 }
 0x8f4   : > { %v2297_v11 = vpop.f32.mrf.mxu2 }
 0x8f5   : > { %v4292_v12 = vadd.f32 %v3271_v10, %v2297_v11 }
 0x8f7   : > { %v4295_v13 = vmul.f32 0.70710677, %v4292_v12 }
 0x8f9   : > { %v2318_v14 = vand.u32 2147483647, %v4295_v13  ;;  %vm2312_vm8 = vcmp.ge.f32.partialorder %v4295_v13, 0.0 }
 0x8fb   : > { %v2321_v58 = vmul.f32 0.3275911, %v2318_v14  ;;  %v2399_v53 = vsub.f32 0.0, %v2318_v14 }
 0x8fc   : > { %v2300_v15 = vpop.f32.mrf.mxu2 }
 0x8fd   : > { %v2324_v16 = vadd.f32 1.0, %v2321_v58  ;;  %v4298_v17 = vadd.f32 %v3271_v10, %v2300_v15  ;;  %v2402_v60 = vmul.f32 %v2399_v53, %v2318_v14 }
 0x8ff   : > { %3335 = vrcp.f32 %v2324_v16  ;;  %v4302_v19 = vmul.f32 0.70710677, %v4298_v17  ;;  %v2338_v40 = vand.u32 2147483648, %v2324_v16  ;;  %v2336_v44 = vand.u32 2147483647, %v2324_v16 }
 0x900   : > { %vm2332_vm12 = vweird.f32 %v2324_v16  ;;  %v2405_v34 = vmul.f32 1.442695, %v2402_v60 }
 0x901   : > { %v4306_v21 = vand.u32 2147483647, %v4302_v19  ;;  %v2339_v47 = vor.u32 1.1754944e-38, %v2338_v40  ;;  %vm2337_vm14 = vcmp.eq.f32.partialorder %v2336_v44, 8.507059e+37  ;;  %vm2313_vm9 = vcmp.ge.f32.partialorder %v4302_v19, 0.0 }
 0x903   : > { %v2322_v22 = vmul.f32 0.3275911, %v4306_v21  ;;  %v2400_v36 = vsub.f32 0.0, %v4306_v21 }
 0x904   : > { %v2303_v29 = vpop.f32.mrf.mxu2 }
 0x905   : > { %v3336_v23 = vpop.eup %3335  ;;  %v4309_v24 = vadd.f32 %v3271_v10, %v2303_v29  ;;  %v2325_v32 = vadd.f32 1.0, %v2322_v22  ;;  %v2403_v14 = vmul.f32 %v2400_v36, %v4306_v21 }
 0x906   : > { %v2328_v27 = vmul.f32 %v3336_v23, %v2324_v16  ;;  %vm2333_vm11 = vweird.f32 %v3336_v23 }
 0x907   : > { %v4313_v35 = vmul.f32 0.70710677, %v4309_v24  ;;  %3337 = vrcp.f32 %v2325_v32  ;;  %vm2334_vm13 = vmor %vm2332_vm12, %vm2333_vm11  ;;  %v2353_v57 = vand.u32 2147483648, %v2325_v32  ;;  %v2351_v62 = vand.u32 2147483647, %v2325_v32 }
 0x908   : > { %v2329_v38 = vsub.f32 1.0, %v2328_v27  ;;  %vm2347_vm0 = vweird.f32 %v2325_v32  ;;  %v2407_v27 = vmul.f32 1.442695, %v2403_v14 }
 0x909   : > { %v4316_v41 = vand.u32 2147483647, %v4313_v35  ;;  %v2354_v30 = vor.u32 1.1754944e-38, %v2353_v57  ;;  %vm2352_vm3 = vcmp.eq.f32.partialorder %v2351_v62, 8.507059e+37  ;;  %vm2314_vm10 = vcmp.ge.f32.partialorder %v4313_v35, 0.0 }
 0x90a   : > { %v2330_v39 = vmul.f32 %v3336_v23, %v2329_v38 }
 0x90b   : > { %v2323_v45 = vmul.f32 0.3275911, %v4316_v41  ;;  %v2401_v22 = vsub.f32 0.0, %v4316_v41 }
 0x90c   : > { %v2331_v46 = vadd.f32 %v3336_v23, %v2330_v39 }
 0x90d   : > { %v2326_v48 = vadd.f32 1.0, %v2323_v45  ;;  %v3338_v49 = vpop.eup %3337  ;;  %v2404_v39 = vmul.f32 %v2401_v22, %v4316_v41 }
 0x90e   : > { %v2335_v50 = vsel %vm2334_vm13, %v3336_v23, %v2331_v46  ;;  %v2343_v26 = vmul.f32 %v3338_v49, %v2325_v32  ;;  %vm2348_vm15 = vweird.f32 %v3338_v49 }
 0x90f   : > { %v2340_v52 = vsel %vm2337_vm14, %v2339_v47, %v2335_v50  ;;  %3339 = vrcp.f32 %v2326_v48  ;;  %vm2349_vm1 = vmor %vm2347_vm0, %vm2348_vm15  ;;  %v2368_v8 = vand.u32 2147483648, %v2326_v48  ;;  %v2366_v33 = vand.u32 2147483647, %v2326_v48 }
 0x910   : > { %v2372_v54 = vmul.f32 1.0614054, %v2340_v52  ;;  %v2344_v55 = vsub.f32 1.0, %v2343_v26  ;;  %3341 = vpow2.f32 %v2405_v34  ;;  %vm2362_vm5 = vweird.f32 %v2326_v48 }
 0x911   : > { %v2369_v16 = vor.u32 1.1754944e-38, %v2368_v8  ;;  %vm2367_vm7 = vcmp.eq.f32.partialorder %v2366_v33, 8.507059e+37  ;;  %3343 = vpow2.f32 %v2407_v27  ;;  %v3516_v47 = vmov -1.0  }
 0x912   : > { %v2375_v56 = vadd.f32 -1.4531521, %v2372_v54  ;;  %v2345_v37 = vmul.f32 %v3338_v49, %v2344_v55  ;;  %v2306_v54 = vmul.f32 0.5, %v4292_v12  ;;  %v2307_v12 = vmul.f32 0.5, %v4298_v17 }
 0x913   : > { %v2317_v19 = vsel %vm2314_vm10, 1.0, %v3516_v47 }
 0x914   : > { %v2378_v0 = vmul.f32 %v2375_v56, %v2340_v52  ;;  %v2346_v2 = vadd.f32 %v3338_v49, %v2345_v37 }
 0x915   : > { %v3340_v1 = vpop.eup %3339 }
 0x916   : > { %v2381_v59 = vadd.f32 1.4214138, %v2378_v0  ;;  %v2358_v43 = vmul.f32 %v3340_v1, %v2326_v48  ;;  %v2350_v4 = vsel %vm2349_vm1, %v3338_v49, %v2346_v2  ;;  %vm2363_vm4 = vweird.f32 %v3340_v1  ;;  %v3342_v38 = vpop.eup %3341 }
 0x917   : > { %v2355_v7 = vsel %vm2352_vm3, %v2354_v30, %v2350_v4  ;;  %vm2364_vm6 = vmor %vm2362_vm5, %vm2363_vm4  ;;  %v2315_v48 = vsel %vm2312_vm8, 1.0, %v3516_v47  ;;  %v3344_v57 = vpop.eup %3343 }
 0x918   : > { %v2384_v5 = vmul.f32 %v2381_v59, %v2340_v52  ;;  %v2359_v6 = vsub.f32 1.0, %v2358_v43  ;;  %v2373_v63 = vmul.f32 1.0614054, %v2355_v7 }
 0x91a   : > { %v2387_v9 = vadd.f32 -0.28449672, %v2384_v5  ;;  %v2360_v31 = vmul.f32 %v3340_v1, %v2359_v6  ;;  %v2376_v10 = vadd.f32 -1.4531521, %v2373_v63 }
 0x91c   : > { %v2390_v11 = vmul.f32 %v2387_v9, %v2340_v52  ;;  %v2361_v58 = vadd.f32 %v3340_v1, %v2360_v31  ;;  %v2379_v15 = vmul.f32 %v2376_v10, %v2355_v7  ;;  %v3272_v9 = vld [vmem:[%s1031_s25] ss:$0 sm:$0xff]  ;;  %s4606_s25 = scalar_lea.vmem (!%p3133_p1), %s4605_s28, %s4604_s6 }
 0x91e   : > { %v2393_v18 = vadd.f32 0.2548296, %v2390_v11  ;;  %v2365_v20 = vsel %vm2364_vm6, %v3340_v1, %v2361_v58  ;;  %v2382_v29 = vadd.f32 1.4214138, %v2379_v15  ;;  %v2316_v1 = vsel %vm2313_vm9, 1.0, %v3516_v47 }
 0x91f   : > { %v2370_v23 = vsel %vm2367_vm7, %v2369_v16, %v2365_v20 }
 0x920   : > { %v2396_v25 = vmul.f32 %v2393_v18, %v2340_v52  ;;  %v2374_v32 = vmul.f32 1.0614054, %v2370_v23  ;;  %v2385_v40 = vmul.f32 %v2382_v29, %v2355_v7  ;;  %v2409_v52 = vmul.f32 1.442695, %v2404_v39 }
 0x922   : > { %v2411_v21 = vmul.f32 %v3342_v38, %v2396_v25  ;;  %v2377_v42 = vadd.f32 -1.4531521, %v2374_v32  ;;  %v2388_v44 = vadd.f32 -0.28449672, %v2385_v40  ;;  %3345 = vpow2.f32 %v2409_v52 }
 0x924   : > { %v2414_v45 = vsub.f32 1.0, %v2411_v21  ;;  %v2380_v46 = vmul.f32 %v2377_v42, %v2370_v23  ;;  %v2391_v49 = vmul.f32 %v2388_v44, %v2355_v7 }
 0x926   : > { %v2417_v50 = vmul.f32 %v2414_v45, %v2315_v48  ;;  %v2383_v53 = vadd.f32 1.4214138, %v2380_v46  ;;  %v2394_v26 = vadd.f32 0.2548296, %v2391_v49 }
 0x928   : > { %v2420_v55 = vadd.f32 1.0, %v2417_v50  ;;  %v2386_v56 = vmul.f32 %v2383_v53, %v2370_v23  ;;  %v2397_v13 = vmul.f32 %v2394_v26, %v2355_v7  ;;  %v3346_v30 = vpop.eup %3345  ;;  %v2308_v7 = vmul.f32 0.5, %v4309_v24 }
 0x92a   : > { %v2423_v60 = vmul.f32 %v2420_v55, %v2306_v54  ;;  %v2389_v37 = vadd.f32 -0.28449672, %v2386_v56  ;;  %v2412_v41 = vmul.f32 %v3344_v57, %v2397_v13 }
 0x92c   : > { %2450 = vmatmul.f32.vlgmr.msra.gmra.mxu3 %v2423_v60  ;;  %v2392_v62 = vmul.f32 %v2389_v37, %v2370_v23  ;;  %v2415_v0 = vsub.f32 1.0, %v2412_v41 }
 0x92e   : > { %v2395_v2 = vadd.f32 0.2548296, %v2392_v62  ;;  %v2418_v59 = vmul.f32 %v2415_v0, %v2316_v1 }
 0x930   : > { %v2398_v43 = vmul.f32 %v2395_v2, %v2370_v23  ;;  %v2421_v34 = vadd.f32 1.0, %v2418_v59 }
 0x932   : > { %v2413_v4 = vmul.f32 %v3346_v30, %v2398_v43  ;;  %v2424_v5 = vmul.f32 %v2421_v34, %v2307_v12 }
 0x934   : > { %v2416_v36 = vsub.f32 1.0, %v2413_v4  ;;  %2453 = vmatmul.f32.gmra.mxu3 %v2424_v5 }
 0x936   : > { %v2419_v6 = vmul.f32 %v2416_v36, %v2317_v19 }
 0x938   : > { %v2422_v63 = vadd.f32 1.0, %v2419_v6 }
 0x93a   : > { %v2425_v8 = vmul.f32 %v2422_v63, %v2308_v7 }
 0x93c   : > { %2456 = vmatmul.f32.gmra.mxu3 %v2425_v8 }
 0x9af   : > { %v2451_v17 = vpop.f32.mrf.mxu3 }
 0x9b0   : > { %v2452_v31 = vadd.f32 %v3272_v9, %v2451_v17 }
 0x9b2   : > { %v2460_v35 = vadd.f32 %v2452_v31, %v4202_v51 }
 0x9b4   : > { %2463 = vst.msk [vmem:[#allocation2] sm:$0xff] %vm1106_vm2, %v2460_v35 }
 0x9b7   : > { %v2454_v33 = vpop.f32.mrf.mxu3 }
 0x9b8   : > { %v2455_v10 = vadd.f32 %v3272_v9, %v2454_v33 }
 0x9ba   : > { %v2461_v11 = vadd.f32 %v2455_v10, %v4207_v61 }
 0x9bc   : > { %2464 = vst.msk [vmem:[#allocation2 + $0x8] sm:$0xff] %vm1106_vm2, %v2461_v11 }
 0x9bf   : > { %v2457_v24 = vpop.f32.mrf.mxu3 }
 0x9c0   : > { %v2458_v14 = vadd.f32 %v3272_v9, %v2457_v24  ;;  %2469 = sbr.rel (%p3133_p1) target bundleno = 3058 (0xbf2), region = 116 }
 0x9c2   : > { %v2462_v58 = vadd.f32 %v2458_v14, %v4211_v3 }
 0x9c4   : > { %2465 = vst.msk [vmem:[#allocation2 + $0x10] sm:$0xff] %vm1106_vm2, %v2462_v58 }
 0x9c5   : > { %v2470_v15 = vld [vmem:[#allocation2] sm:$0xff]  ;;  %v2471_v16 = vld [vmem:[#allocation2 + $0x8] sm:$0xff]  ;;  %vm2591_vm11 = vcmask 256000   ;;  %vm2557_vm15 = vcmask 253952   ;;  %vm2683_vm10 = vcmask 73728  }
 0x9c6   : > { %v2475_v51 = vsel %vm1106_vm2, %v2470_v15, 0.0  ;;  %v4346_v61 = vld [vmem:[%s4598_s10] sm:$0x7]  ;;  %v2478_v18 = vsel %vm1106_vm2, %v2471_v16, 0.0  ;;  %v2652_v44 = vld [vmem:[%s4599_s1 + $0x8] sm:$0x3] }
 0x9c7   : > { %2476 = vadd.xlane.f32.xlu0 %v2475_v51  ;;  %v2590_v3 = vmul.f32 %v4346_v61, %v4346_v61  ;;  %2479 = vadd.xlane.f32.xlu2 %v2478_v18  ;;  %v2651_v46 = vld [vmem:[%s4600_s21] sm:$0xff] }
 0x9c8   : > { %3136 = vmatpush.xpose.msk.msra.mxu1 %vm1106_vm2, %v2652_v44  ;;  %v4372_v56 = vld [vmem:[%s4601_s7] ss:$0 sm:$0xff] }
 0x9c9   : > { %v2592_v20 = vsel %vm2591_vm11, %v2590_v3, 0.0  ;;  %v4377_v37 = vld [vmem:[%s4602_s27] ss:$0 sm:$0xff] }
 0x9ca   : > { %2593 = vadd.xlane.f32.xlu1 %v2592_v20  ;;  %v2653_v44 = vld [vmem:[%s4603_s29] sm:$0x1] }
 0x9cb   : > { %v2472_v22 = vld [vmem:[#allocation2 + $0x10] sm:$0xff] }
 0x9cc   : > { %v2481_v29 = vsel %vm1106_vm2, %v2472_v22, 0.0  ;;  %3137 = vmatpush.xpose.msk.msra.mxu1 %vm1106_vm2, %v2651_v46 }
 0x9cf   : > { %2482 = vadd.xlane.f32.xlu2 %v2481_v29 }
 0xa3a   : > { %v2477_v23 = vpop.xlane.xlu0 %2476  ;;  %v2480_v40 = vpop.xlane.xlu2 %2479 }
 0xa3b   : > { %v2484_v25 = vmul.f32 %v2477_v23, %v3856_v28  ;;  %v2485_v21 = vmul.f32 %v2480_v40, %v3856_v28 }
 0xa3d   : > { %v2487_v27 = vsub.f32 %v2470_v15, %v2484_v25  ;;  %v4355_v42 = vsub.f32 %v2471_v16, %v2485_v21  ;;  %v2594_v12 = vpop.xlane.xlu1 %2593 }
 0xa3e   : > { %vm2602_vm0 = vcmp.eq.f32.partialorder %v2594_v12, inf  ;;  %v2605_v63 = vand.u32 2147483648, %v2594_v12  ;;  %vm2604_vm1 = vcmp.eq.f32.partialorder %v2594_v12, 0.0 }
 0xa3f   : > { %v2490_v32 = vmul.f32 %v2487_v27, %v2487_v27  ;;  %v2491_v39 = vmul.f32 %v4355_v42, %v4355_v42 }
 0xa41   : > { %v2493_v38 = vsel %vm1106_vm2, %v2490_v32, 0.0  ;;  %v2496_v45 = vsel %vm1106_vm2, %v2491_v39, 0.0 }
 0xa42   : > { %2494 = vadd.xlane.f32.xlu0 %v2493_v38  ;;  %v2483_v57 = vpop.xlane.xlu2 %2482 }
 0xa43   : > { %v2486_v62 = vmul.f32 %v2483_v57, %v3856_v28 }
 0xa45   : > { %v4389_v1 = vsub.f32 %v2472_v22, %v2486_v62 }
 0xa47   : > { %v2492_v43 = vmul.f32 %v4389_v1, %v4389_v1 }
 0xa49   : > { %v2499_v30 = vsel %vm1106_vm2, %v2492_v43, 0.0 }
 0xa4a   : > { %2497 = vadd.xlane.f32.xlu0 %v2496_v45 }
 0xab5   : > { %v2495_v47 = vpop.xlane.xlu0 %2494 }
 0xab6   : > { %v2502_v48 = vmul.f32 %v2495_v47, %v3856_v28 }
 0xab8   : > { %v2505_v49 = vadd.f32 1e-06, %v2502_v48 }
 0xaba   : > { %3352 = vrsqrt.f32 %v2505_v49  ;;  %vm2514_vm13 = vweird.f32 %v2505_v49 }
 0xabb   : > { %3354 = vrsqrt.f32 %v2594_v12 }
 0xabd   : > { %v2498_v35 = vpop.xlane.xlu0 %2497 }
 0xabe   : > { %v2503_v10 = vmul.f32 %v2498_v35, %v3856_v28 }
 0xac0   : > { %v3353_v50 = vpop.eup %3352  ;;  %v2506_v24 = vadd.f32 1e-06, %v2503_v10 }
 0xac1   : > { %v2509_v53 = vmul.f32 %v3353_v50, %v2505_v49  ;;  %vm2515_vm12 = vweird.f32 %v3353_v50  ;;  %v3355_v34 = vpop.eup %3354 }
 0xac2   : > { %vm2516_vm14 = vmor %vm2514_vm13, %vm2515_vm12  ;;  %v2596_v4 = vmul.f32 %v3355_v34, %v2594_v12  ;;  %vm2524_vm7 = vweird.f32 %v2506_v24 }
 0xac3   : > { %v2510_v52 = vmul.f32 %v3353_v50, %v2509_v53 }
 0xac4   : > { %v2597_v5 = vmul.f32 %v3355_v34, %v2596_v4 }
 0xac5   : > { %v2511_v26 = vmul.f32 0.5, %v2510_v52 }
 0xac6   : > { %v2598_v36 = vmul.f32 0.5, %v2597_v5 }
 0xac7   : > { %v2512_v54 = vsub.f32 1.5, %v2511_v26 }
 0xac8   : > { %v2599_v19 = vsub.f32 1.5, %v2598_v36 }
 0xac9   : > { %v2513_v55 = vmul.f32 %v3353_v50, %v2512_v54 }
 0xaca   : > { %v2600_v6 = vmul.f32 %v3355_v34, %v2599_v19 }
 0xacb   : > { %v2517_v13 = vsel %vm2516_vm14, %v3353_v50, %v2513_v55 }
 0xacc   : > { %v2538_v60 = vmul.f32 %v2517_v13, %v2487_v27  ;;  %v2601_v7 = vmul.f32 %v2600_v6, %v2594_v12 }
 0xace   : > { %v2544_v41 = vmul.f32 %v4372_v56, %v2538_v60  ;;  %v2603_v8 = vsel %vm2602_vm0, %v2594_v12, %v2601_v7 }
 0xacf   : > { %v2606_v9 = vsel %vm2604_vm1, %v2605_v63, %v2603_v8 }
 0xad0   : > { %v4382_v0 = vadd.f32 %v4377_v37, %v2544_v41  ;;  %v2607_v17 = vmax.f32 %v2606_v9, 1e-12 }
 0xad2   : > { %2553 = vst.msk [vmem:[%s3810_s19] sm:$0xff] %vm1106_vm2, %v4382_v0  ;;  %3138 = vmatmul.msk.f32.vlgmr.msra.gmra.mxu1 %vm1106_vm2, %v4382_v0  ;;  %v2556_v2 = vmul.f32 %v4382_v0, %v4382_v0  ;;  %3356 = vrcp.f32 %v2607_v17  ;;  %v2619_v58 = vand.u32 2147483648, %v2607_v17  ;;  %vm2613_vm3 = vweird.f32 %v2607_v17 }
 0xad3   : > { %3358 = vrsqrt.f32 %v2506_v24  ;;  %v2617_v51 = vand.u32 2147483647, %v2607_v17 }
 0xad4   : > { %v2558_v59 = vsel %vm2557_vm15, %v2556_v2, 0.0  ;;  %v2620_v16 = vor.u32 1.1754944e-38, %v2619_v58 }
 0xad5   : > { %2559 = vadd.xlane.f32.xlu1 %v2558_v59  ;;  %vm2618_vm6 = vcmp.eq.f32.partialorder %v2617_v51, 8.507059e+37 }
 0xad8   : > { %v3357_v31 = vpop.eup %3356 }
 0xad9   : > { %v2609_v33 = vmul.f32 %v3357_v31, %v2607_v17  ;;  %vm2614_vm4 = vweird.f32 %v3357_v31  ;;  %v3359_v22 = vpop.eup %3358 }
 0xada   : > { %vm2615_vm5 = vmor %vm2613_vm3, %vm2614_vm4  ;;  %v2519_v29 = vmul.f32 %v3359_v22, %v2506_v24  ;;  %vm2525_vm8 = vweird.f32 %v3359_v22 }
 0xadb   : > { %v2610_v11 = vsub.f32 1.0, %v2609_v33  ;;  %vm2526_vm9 = vmor %vm2524_vm7, %vm2525_vm8 }
 0xadc   : > { %v2520_v23 = vmul.f32 %v3359_v22, %v2519_v29 }
 0xadd   : > { %2500 = vadd.xlane.f32.xlu1 %v2499_v30  ;;  %v2611_v14 = vmul.f32 %v3357_v31, %v2610_v11 }
 0xade   : > { %v2521_v25 = vmul.f32 0.5, %v2520_v23 }
 0xadf   : > { %v2612_v15 = vadd.f32 %v3357_v31, %v2611_v14 }
 0xae0   : > { %v2522_v27 = vsub.f32 1.5, %v2521_v25 }
 0xae1   : > { %v2616_v18 = vsel %vm2615_vm5, %v3357_v31, %v2612_v15  ;;  %vm2649_vm5 = vcmask 16384  }
 0xae2   : > { %v2621_v3 = vsel %vm2618_vm6, %v2620_v16, %v2616_v18  ;;  %v2523_v32 = vmul.f32 %v3359_v22, %v2522_v27 }
 0xae3   : > { %v2622_v20 = vmul.f32 %v2621_v3, %v4346_v61 }
 0xae4   : > { %v2527_v38 = vsel %vm2526_vm9, %v3359_v22, %v2523_v32 }
 0xae5   : > { %3134 = vmatpush.xpose.msk.msra.mxu0 %vm1106_vm2, %v2622_v20  ;;  %v2539_v40 = vmul.f32 %v2527_v38, %v4355_v42 }
 0xae7   : > { %v2545_v21 = vmul.f32 %v4372_v56, %v2539_v40 }
 0xae9   : > { %v2551_v39 = vadd.f32 %v4377_v37, %v2545_v21 }
 0xaeb   : > { %2554 = vst.msk [vmem:[%s3810_s19 + $0x8] sm:$0xff] %vm1106_vm2, %v2551_v39 }
 0xb48   : > { %v2560_v61 = vpop.xlane.xlu1 %2559 }
 0xb49   : > { %3360 = vrsqrt.f32 %v2560_v61  ;;  %vm2568_vm11 = vcmp.eq.f32.partialorder %v2560_v61, inf  ;;  %v2571_v57 = vand.u32 2147483648, %v2560_v61  ;;  %vm2570_vm12 = vcmp.eq.f32.partialorder %v2560_v61, 0.0 }
 0xb4f   : > { %v3361_v45 = vpop.eup %3360  ;;  %v2680_v46 = vpop.f32.mrf.mxu1 }
 0xb50   : > { %v2562_v47 = vmul.f32 %v3361_v45, %v2560_v61  ;;  %v2681_v48 = vadd.f32 %v2680_v46, %v2653_v44  ;;  %v2501_v49 = vpop.xlane.xlu1 %2500 }
 0xb51   : > { %v2504_v42 = vmul.f32 %v2501_v49, %v3856_v28 }
 0xb52   : > { %v2563_v50 = vmul.f32 %v3361_v45, %v2562_v47  ;;  %2684 = vst.msk [vmem:[%s964_s30] sm:$0x1] %vm2683_vm10, %v2681_v48 }
 0xb53   : > { %v2507_v53 = vadd.f32 1e-06, %v2504_v42 }
 0xb54   : > { %v2564_v52 = vmul.f32 0.5, %v2563_v50 }
 0xb55   : > { %3362 = vrsqrt.f32 %v2507_v53  ;;  %vm2534_vm13 = vweird.f32 %v2507_v53 }
 0xb56   : > { %v2565_v26 = vsub.f32 1.5, %v2564_v52 }
 0xb58   : > { %v2566_v54 = vmul.f32 %v3361_v45, %v2565_v26 }
 0xb5a   : > { %v2567_v55 = vmul.f32 %v2566_v54, %v2560_v61 }
 0xb5b   : > { %v3363_v13 = vpop.eup %3362 }
 0xb5c   : > { %v2569_v60 = vsel %vm2568_vm11, %v2560_v61, %v2567_v55  ;;  %v2529_v41 = vmul.f32 %v3363_v13, %v2507_v53  ;;  %vm2535_vm14 = vweird.f32 %v3363_v13 }
 0xb5d   : > { %v2572_v62 = vsel %vm2570_vm12, %v2571_v57, %v2569_v60  ;;  %vm2536_vm15 = vmor %vm2534_vm13, %vm2535_vm14 }
 0xb5e   : > { %v2530_v2 = vmul.f32 %v3363_v13, %v2529_v41  ;;  %v2573_v59 = vmax.f32 %v2572_v62, 1e-12 }
 0xb60   : > { %v2531_v43 = vmul.f32 0.5, %v2530_v2  ;;  %3364 = vrcp.f32 %v2573_v59  ;;  %v2585_v6 = vand.u32 2147483648, %v2573_v59  ;;  %v2583_v8 = vand.u32 2147483647, %v2573_v59 }
 0xb61   : > { %vm2579_vm1 = vweird.f32 %v2573_v59 }
 0xb62   : > { %v2532_v28 = vsub.f32 1.5, %v2531_v43  ;;  %v2586_v17 = vor.u32 1.1754944e-38, %v2585_v6  ;;  %vm2584_vm4 = vcmp.eq.f32.partialorder %v2583_v8, 8.507059e+37 }
 0xb64   : > { %v2533_v30 = vmul.f32 %v3363_v13, %v2532_v28 }
 0xb66   : > { %v3365_v12 = vpop.eup %3364  ;;  %v2537_v34 = vsel %vm2536_vm15, %v3363_v13, %v2533_v30 }
 0xb67   : > { %v2540_v4 = vmul.f32 %v2537_v34, %v4389_v1  ;;  %v2575_v5 = vmul.f32 %v3365_v12, %v2573_v59  ;;  %vm2580_vm0 = vweird.f32 %v3365_v12 }
 0xb68   : > { %vm2581_vm3 = vmor %vm2579_vm1, %vm2580_vm0 }
 0xb69   : > { %v2546_v36 = vmul.f32 %v4372_v56, %v2540_v4  ;;  %v2576_v19 = vsub.f32 1.0, %v2575_v5 }
 0xb6b   : > { %v2552_v7 = vadd.f32 %v4377_v37, %v2546_v36  ;;  %v2577_v63 = vmul.f32 %v3365_v12, %v2576_v19 }
 0xb6d   : > { %2555 = vst.msk [vmem:[%s3810_s19 + $0x10] sm:$0xff] %vm1106_vm2, %v2552_v7  ;;  %v2578_v9 = vadd.f32 %v3365_v12, %v2577_v63 }
 0xb6f   : > { %v2582_v31 = vsel %vm2581_vm3, %v3365_v12, %v2578_v9 }
 0xb70   : > { %v2587_v1 = vsel %vm2584_vm4, %v2586_v17, %v2582_v31 }
 0xb71   : > { %v2588_v35 = vmul.f32 %v2587_v1, %v4382_v0 }
 0xb73   : > { %3135 = vmatmul.msk.f32.vlgmr.msra.gmra.mxu0 %vm1106_vm2, %v2588_v35 }
 0xbf0   : > { %v2646_v56 = vpop.f32.mrf.mxu0 }
 0xbf1   : > { %2650 = vst.msk [vmem:[%s4606_s25] sm:$0x1] %vm2649_vm5, %v2646_v56 }
 0xbf2 PF: > { %s4607_s10 = sld [smem:[#allocation16_spill]]  ;;  %s2705_s1 = sshll.u32 %s3810_s19, 4  ;;  %s2706_s1 = int_to_ptr.vmem [resolvable:$true] %s2705_s1 }
 0xbf3   : > { %s4609_s24 = sld [smem:[#allocation45_spill]]  ;;  %s2686_s17 = scalar_lea.sflag [#allocation6], %s3722_s9 }
 0xbf8   : > { %s3162_s5 = smul.u32 24, %s4607_s10 }
 0xbf9   : > { %s3398_s29 = scalar_lea.hbm %s4609_s24, 48 }
 0xbfa   : > { %s2704_s2 = scalar_lea.hbm %s4609_s24, %s3162_s5 }
 0xbfb   : > { %s2707_s7 = sshll.u32 %s2704_s2, 4  ;;  %s2708_s7 = int_to_ptr.hbm [resolvable:$true] %s2707_s7 }
 0xbfc   : > { %s3392_s8 = sshra.s32 %s2708_s7, 4  ;;  %s3393_s8 = int_to_ptr.hbm [resolvable:$true] %s3392_s8 }
 0xbfd   : > { %s3394_s27 = scalar_lea.hbm %s3393_s8, 24  ;;  %p3399_p6 = scmp.lt.s32.totalorder %s3393_s8, %s4609_s24 }
 0xbfe   : > { %p3395_p2 = scmp.ne.s32.totalorder %s3393_s8, %s3394_s27  ;;  %p3400_p7 = scmp.lt.s32.totalorder %s3398_s29, %s3394_s27 }
 0xc00   : > { %p3396_p4 = pnand %p3395_p2, %p3701_p3  ;;  %p3401_p8 = por %p3400_p7, %p3399_p6 }
 0xc02   : > { %p3397_p5 = pneg %p3396_p4 }
 0xc04   : > { %p3402_p10 = pnand %p3401_p8, %p3397_p5 }
 0xc06   : > { %3405 = shalt.err (!%p3402_p10)
}
 0xc07   : > { %s3517_s23 = smov 128   ;;  %s3518_s4 = smov 8  }
 0xc08   : > { %3163 = dma.vmem_to_hbm [thread:$0]  (%p3701_p3), %s2706_s1, 384, %s2708_s7, %s2686_s17, %s3517_s23, %s3517_s23, %s3518_s4  }
 0xc09   : > { %s4610_s5 = sld [smem:[#allocation47_spill]]  ;;  %s2724_s3 = sshll.u32 %s964_s30, 4  ;;  %s2725_s3 = int_to_ptr.vmem [resolvable:$true] %s2724_s3 }
 0xc0a   : > { %s2694_s8 = scalar_lea.sflag [#allocation8], %s3722_s9 }
 0xc0f   : > { %s2722_s20 = scalar_lea.hbm %s4610_s5, %s4607_s10  ;;  %s3426_s1 = scalar_lea.hbm %s4610_s5, 2 }
 0xc10   : > { %s2726_s2 = sshll.u32 %s2722_s20, 4  ;;  %s2727_s2 = int_to_ptr.hbm [resolvable:$true] %s2726_s2 }
 0xc11   : > { %s3420_s27 = sshra.s32 %s2727_s2, 4  ;;  %s3421_s27 = int_to_ptr.hbm [resolvable:$true] %s3420_s27 }
 0xc12   : > { %s3422_s26 = scalar_lea.hbm %s3421_s27, 1  ;;  %p3427_p0 = scmp.lt.s32.totalorder %s3421_s27, %s4610_s5 }
 0xc13   : > { %p3423_p11 = scmp.ne.s32.totalorder %s3421_s27, %s3422_s26  ;;  %p3428_p1 = scmp.lt.s32.totalorder %s3426_s1, %s3422_s26 }
 0xc15   : > { %p3424_p12 = pnand %p3423_p11, %p3701_p3  ;;  %p3429_p2 = por %p3428_p1, %p3427_p0 }
 0xc17   : > { %p3425_p13 = pneg %p3424_p12 }
 0xc19   : > { %p3430_p4 = pnand %p3429_p2, %p3425_p13 }
 0xc1b   : > { %3433 = shalt.err (!%p3430_p4)
}
 0xc1c   : > { %3164 = dma.vmem_to_hbm [thread:$0]  (%p3701_p3), %s2725_s3, 16, %s2727_s2, %s2694_s8  }
 0xc1d PF: > { %s4611_s9 = sld [smem:[#allocation19_spill]] }
 0xc1e   : > { %s4612_s30 = sld [smem:[#allocation12_spill]] }
 0xc23   : > { %p3174_p5 = scmp.ge.s32.totalorder %s4611_s9, 2 }
 0xc24   : > { %s2738_s19 = sand.u32 1, %s4612_s30  }
 0xc25   : > { %p3168_p6 = pnand %p3174_p5, %p3711_p9  ;;  %s2739_s6 = scalar_lea.sflag [#allocation6], %s2738_s19 }
 0xc27   : > { %p3169_p7 = pneg %p3168_p6 }
 0xc29   : > { %3469 = dma.done.wait (%p3169_p7), %s2739_s6, 384  }
 0xc2a   : > { %3471 = vsyncadd (%p3169_p7), %s2739_s6, 4294966912  ;;  %s2755_s23 = scalar_lea.sflag [#allocation8], %s2738_s19 }
 0xc2b   : > { %3473 = dma.done.wait (%p3169_p7), %s2755_s23, 16  }
 0xc2c   : > { %3475 = vsyncadd (%p3169_p7), %s2755_s23, 4294967280  ;;  %s50_s4 = sadd.s32 1, %s4611_s9   ;;  %s4614_s7 = sld [smem:[#allocation13_spill]] }
 0xc2d   : > { %p47_p8 = scmp.ge.s32.totalorder %s50_s4, 10   ;;  %s4615_s3 = sld [smem:[#allocation14_spill]] }
 0xc2e   : > { %s4616_s26 = sld [smem:[#allocation24_spill]] }
 0xc2f   : > { %s4617_s1 = sld [smem:[#allocation17_spill]]  ;;  %49 = sbr.rel (!%p47_p8) target bundleno = 40 (0x28), region = 222 }
 0xc30   : > { %s4618_s8 = sld [smem:[#allocation18_spill]] }
 0xc31   : > { %s4619_s27 = sld [smem:[#allocation20_spill]] }
 0xc32   : > { %s4620_s19 = sld [smem:[#allocation22_spill]] }
 0xc34   :  { %2760 = vsyncpa [#allocation6], 1 }
 0xc35   :  { %2762 = vsyncpa [#allocation6 + $0x1], 1 }
 0xc36   :  { %2763 = vsyncpa [#allocation8], 1 }
 0xc37   :  { %2765 = vsyncpa [#allocation8 + $0x1], 1 }

</bundles_post_ra>
